<compile_context>
chip_gen: v6e
topology: v6e:2x2x1
jax: 0.10.0
libtpu: 0.0.40
codegen_flags: <defaults>
</compile_context>

<pallas_src>
import math

import jax
import jax.numpy as jnp
from jax import lax
from jax.experimental import pallas as pl
from jax.experimental.pallas import tpu as pltpu

INPUT_DIM = 2
HIDDEN_DIM = 32        # small stand-in for the default 128
OUTPUT_DIM = 2
NUM_HEADS = 4
NUM_LAYERS = 2
FF_DIM = HIDDEN_DIM * 4
LN_EPS = 1e-5
MAX_POS = 60
LANE = 128             # lane width; fc output is padded to this for dense stores


# ----------------------------- math helpers (used in-kernel) ----------------
def _linear(x, w, b):
    # x: (R, in), w: (out, in) [PyTorch layout], b: (1, out)
    y = lax.dot_general(x, w, (((1,), (1,)), ((), ())),
                        preferred_element_type=jnp.float32)
    return y + b


def _layer_norm(x, w, b):
    mu = jnp.mean(x, axis=-1, keepdims=True)
    var = jnp.mean((x - mu) * (x - mu), axis=-1, keepdims=True)
    return (x - mu) * lax.rsqrt(var + LN_EPS) * w + b


def _mha_core(q3, k3, v3, pad_bias=None):
    # q3: (B, T, D), k3/v3: (B, Skv, D). Batch is folded into the einsum batch
    # dim; heads are a short static loop over lane slices (no per-batch loop).
    D = HIDDEN_DIM
    Dh = D // NUM_HEADS
    scale = 1.0 / math.sqrt(Dh)
    heads = []
    for h in range(NUM_HEADS):
        sl = slice(h * Dh, (h + 1) * Dh)
        s = jnp.einsum('bqd,bkd->bqk', q3[:, :, sl] * scale, k3[:, :, sl],
                       preferred_element_type=jnp.float32)
        if pad_bias is not None:
            s = s + pad_bias
        s = s - jnp.max(s, axis=-1, keepdims=True)
        e = jnp.exp(s)
        # EUP reciprocal instead of a VALU divide.
        p = e * pl.reciprocal(jnp.sum(e, axis=-1, keepdims=True), approx=True)
        heads.append(jnp.einsum('bqk,bkd->bqd', p, v3[:, :, sl],
                                preferred_element_type=jnp.float32))
    return jnp.concatenate(heads, axis=-1)          # (B, T, D)


# ----------------------------- Pallas wrapper --------------------------------
def transformer_decoder(tgt, memory, params):
    B, T, Din = tgt.shape
    _, S, D = memory.shape
    assert Din == INPUT_DIM and D == HIDDEN_DIM and T <= MAX_POS
    S_pad = ((S + 7) // 8) * 8          # sublane-align the memory length
    BT = B * T

    # One-time wrapper-side (XLA) repacking: pure layout plumbing, not compute.
    tgt_flat = tgt.reshape(BT, Din)
    mem_flat = jnp.pad(memory, ((0, 0), (0, S_pad - S), (0, 0))).reshape(B * S_pad, D)
    pos_bt = jnp.tile(params["pos"][0, :T, :], (B, 1))                     # (B*T, D)
    ca_q_w = params["ca_in_w"][:, :D, :]                                   # (L, D, D)
    ca_q_b = params["ca_in_b"][:, :, :D]                                   # (L, 1, D)
    ca_kv_w = params["ca_in_w"][:, D:, :]                                  # (L, 2D, D)
    ca_kv_b = params["ca_in_b"][:, :, D:]                                  # (L, 1, 2D)
    ln_pack = jnp.concatenate([params["ln1_w"], params["ln1_b"],
                               params["ln2_w"], params["ln2_b"],
                               params["ln3_w"], params["ln3_b"]], axis=1)  # (L, 6, D)
    fc_w_pad = jnp.zeros((LANE, D), jnp.float32).at[:OUTPUT_DIM, :].set(params["fc_w"])
    fc_b_pad = jnp.zeros((1, LANE), jnp.float32).at[:, :OUTPUT_DIM].set(params["fc_b"])

    def kernel(tgt_ref, mem_ref, pos_ref, in_w_ref, in_b_ref,
               sa_in_w_ref, sa_in_b_ref, sa_out_w_ref, sa_out_b_ref,
               ca_q_w_ref, ca_q_b_ref, ca_kv_w_ref, ca_kv_b_ref,
               ca_out_w_ref, ca_out_b_ref,
               ff1_w_ref, ff1_b_ref, ff2_w_ref, ff2_b_ref,
               ln_ref, fc_w_ref, fc_b_ref, out_ref):
        # input projection + positional encoding, batch folded into rows
        x = _linear(tgt_ref[...], in_w_ref[...], in_b_ref[...]) + pos_ref[...]  # (B*T, D)
        mem = mem_ref[...]                                                      # (B*S_pad, D)

        # hoisted key-padding bias for the zero-padded cross-attention keys
        if S_pad != S:
            kidx = lax.broadcasted_iota(jnp.int32, (B, T, S_pad), 2)
            pad_bias = jnp.where(kidx < S, 0.0, -1e30).astype(jnp.float32)
        else:
            pad_bias = None

        for l in range(NUM_LAYERS):
            lnp = ln_ref[l]                                               # (6, D)
            # ---- self attention: fused QKV = one matmul over B*T rows ----
            qkv = _linear(x, sa_in_w_ref[l], sa_in_b_ref[l]).reshape(B, T, 3 * D)
            sa = _mha_core(qkv[:, :, :D], qkv[:, :, D:2 * D], qkv[:, :, 2 * D:])
            sa = _linear(sa.reshape(BT, D), sa_out_w_ref[l], sa_out_b_ref[l])
            x = _layer_norm(x + sa, lnp[0:1], lnp[1:2])
            # ---- cross attention: q (1 matmul) + fused KV (1 matmul) ----
            q3 = _linear(x, ca_q_w_ref[l], ca_q_b_ref[l]).reshape(B, T, D)
            kv = _linear(mem, ca_kv_w_ref[l], ca_kv_b_ref[l]).reshape(B, S_pad, 2 * D)
            ca = _mha_core(q3, kv[:, :, :D], kv[:, :, D:], pad_bias)
            ca = _linear(ca.reshape(BT, D), ca_out_w_ref[l], ca_out_b_ref[l])
            x = _layer_norm(x + ca, lnp[2:3], lnp[3:4])
            # ---- feed forward ----
            h = jnp.maximum(_linear(x, ff1_w_ref[l], ff1_b_ref[l]), 0.0)   # relu
            ff = _linear(h, ff2_w_ref[l], ff2_b_ref[l])
            x = _layer_norm(x + ff, lnp[4:5], lnp[5:6])

        # lane-dense (B*T, 128) output slab; wrapper slices back to OUTPUT_DIM
        out_ref[...] = _linear(x, fc_w_ref[...], fc_b_ref[...]).astype(out_ref.dtype)

    inputs = [tgt_flat, mem_flat, pos_bt, params["in_w"], params["in_b"],
              params["sa_in_w"], params["sa_in_b"],
              params["sa_out_w"], params["sa_out_b"],
              ca_q_w, ca_q_b, ca_kv_w, ca_kv_b,
              params["ca_out_w"], params["ca_out_b"],
              params["ff1_w"], params["ff1_b"], params["ff2_w"], params["ff2_b"],
              ln_pack, fc_w_pad, fc_b_pad]

    # Single gridless invocation: the whole problem fits in VMEM, every weight
    # is DMA'd exactly once, no per-grid-step re-pipelining of 20+ blocks.
    out_pad = pl.pallas_call(
        kernel,
        out_shape=jax.ShapeDtypeStruct((BT, LANE), jnp.float32),
        compiler_params=pltpu.CompilerParams(vmem_limit_bytes=32 * 1024 * 1024),
    )(*inputs)
    return out_pad[:, :OUTPUT_DIM].reshape(B, T, OUTPUT_DIM)


# ----------------------------- deterministic params --------------------------
def init_params(key):
    D, Din, Dout, Dff, L = HIDDEN_DIM, INPUT_DIM, OUTPUT_DIM, FF_DIM, NUM_LAYERS
    keys = iter(jax.random.split(key, 64))

    def w(shape, scale):
        return jax.random.normal(next(keys), shape, jnp.float32) * scale

    p = {
        "in_w": w((D, Din), 1.0 / math.sqrt(Din)),
        "in_b": w((1, D), 0.02),
        "pos": w((1, MAX_POS, D), 0.02),
        "fc_w": w((Dout, D), 1.0 / math.sqrt(D)),
        "fc_b": w((1, Dout), 0.02),
        "sa_in_w": w((L, 3 * D, D), 1.0 / math.sqrt(D)),
        "sa_in_b": w((L, 1, 3 * D), 0.02),
        "sa_out_w": w((L, D, D), 1.0 / math.sqrt(D)),
        "sa_out_b": w((L, 1, D), 0.02),
        "ca_in_w": w((L, 3 * D, D), 1.0 / math.sqrt(D)),
        "ca_in_b": w((L, 1, 3 * D), 0.02),
        "ca_out_w": w((L, D, D), 1.0 / math.sqrt(D)),
        "ca_out_b": w((L, 1, D), 0.02),
        "ff1_w": w((L, Dff, D), 1.0 / math.sqrt(D)),
        "ff1_b": w((L, 1, Dff), 0.02),
        "ff2_w": w((L, D, Dff), 1.0 / math.sqrt(Dff)),
        "ff2_b": w((L, 1, D), 0.02),
        "ln1_w": jnp.ones((L, 1, D), jnp.float32),
        "ln1_b": jnp.zeros((L, 1, D), jnp.float32),
        "ln2_w": jnp.ones((L, 1, D), jnp.float32),
        "ln2_b": jnp.zeros((L, 1, D), jnp.float32),
        "ln3_w": jnp.ones((L, 1, D), jnp.float32),
        "ln3_b": jnp.zeros((L, 1, D), jnp.float32),
    }
    return p


# ----------------------------- pure-JAX reference (same semantics) -----------
def reference_forward(tgt, memory, params):
    D = HIDDEN_DIM
    Dh = D // NUM_HEADS

    def mha(q_in, kv_in, in_w, in_b, out_w, out_b):
        q = _linear(q_in, in_w[:D], in_b[:, :D])
        k = _linear(kv_in, in_w[D:2 * D], in_b[:, D:2 * D])
        v = _linear(kv_in, in_w[2 * D:], in_b[:, 2 * D:])
        outs = []
        for h in range(NUM_HEADS):
            sl = slice(h * Dh, (h + 1) * Dh)
            s = (q[:, sl] / math.sqrt(Dh)) @ k[:, sl].T
            p = jax.nn.softmax(s, axis=-1)
            outs.append(p @ v[:, sl])
        return _linear(jnp.concatenate(outs, axis=-1), out_w, out_b)

    def single(t, m):
        x = _linear(t, params["in_w"], params["in_b"]) \
            + params["pos"][0, :t.shape[0], :]
        for l in range(NUM_LAYERS):
            sa = mha(x, x, params["sa_in_w"][l], params["sa_in_b"][l],
                     params["sa_out_w"][l], params["sa_out_b"][l])
            x = _layer_norm(x + sa, params["ln1_w"][l], params["ln1_b"][l])
            ca = mha(x, m, params["ca_in_w"][l], params["ca_in_b"][l],
                     params["ca_out_w"][l], params["ca_out_b"][l])
            x = _layer_norm(x + ca, params["ln2_w"][l], params["ln2_b"][l])
            hdn = jnp.maximum(_linear(x, params["ff1_w"][l],
                                      params["ff1_b"][l]), 0.0)
            ff = _linear(hdn, params["ff2_w"][l], params["ff2_b"][l])
            x = _layer_norm(x + ff, params["ln3_w"][l], params["ln3_b"][l])
        return _linear(x, params["fc_w"], params["fc_b"])

    return jax.vmap(single)(tgt, memory)


if __name__ == "__main__":
    key = jax.random.PRNGKey(0)
    kp, kt, km = jax.random.split(key, 3)
    params = init_params(kp)

    B, T, S = 2, 8, 10
    tgt = jax.random.normal(kt, (B, T, INPUT_DIM), jnp.float32)
    memory = jax.random.normal(km, (B, S, HIDDEN_DIM), jnp.float32)

    out = transformer_decoder(tgt, memory, params)
    out = jax.block_until_ready(out)

    ref = reference_forward(tgt, memory, params)
    assert out.shape == (B, T, OUTPUT_DIM)
    # Tolerance loosened vs f32-exact because softmax uses the EUP approx
    # reciprocal; structural errors would be orders of magnitude larger.
    assert bool(jnp.allclose(out, ref, atol=1e-2, rtol=1e-2)), "mismatch vs reference"

    print("KERNEL_OK")
</pallas_src>

<mosaic_0001>
module attributes {stable_mosaic.version = 11 : i64} {
  func.func @kernel(%arg0: memref<16x2xf32, #tpu.memory_space<vmem>>, %arg1: memref<32x32xf32, #tpu.memory_space<vmem>>, %arg2: memref<16x32xf32, #tpu.memory_space<vmem>>, %arg3: memref<32x2xf32, #tpu.memory_space<vmem>>, %arg4: memref<1x32xf32, #tpu.memory_space<vmem>>, %arg5: memref<2x96x32xf32, #tpu.memory_space<vmem>>, %arg6: memref<2x1x96xf32, #tpu.memory_space<vmem>>, %arg7: memref<2x32x32xf32, #tpu.memory_space<vmem>>, %arg8: memref<2x1x32xf32, #tpu.memory_space<vmem>>, %arg9: memref<2x32x32xf32, #tpu.memory_space<vmem>>, %arg10: memref<2x1x32xf32, #tpu.memory_space<vmem>>, %arg11: memref<2x64x32xf32, #tpu.memory_space<vmem>>, %arg12: memref<2x1x64xf32, #tpu.memory_space<vmem>>, %arg13: memref<2x32x32xf32, #tpu.memory_space<vmem>>, %arg14: memref<2x1x32xf32, #tpu.memory_space<vmem>>, %arg15: memref<2x128x32xf32, #tpu.memory_space<vmem>>, %arg16: memref<2x1x128xf32, #tpu.memory_space<vmem>>, %arg17: memref<2x32x128xf32, #tpu.memory_space<vmem>>, %arg18: memref<2x1x32xf32, #tpu.memory_space<vmem>>, %arg19: memref<2x6x32xf32, #tpu.memory_space<vmem>>, %arg20: memref<128x32xf32, #tpu.memory_space<vmem>>, %arg21: memref<1x128xf32, #tpu.memory_space<vmem>>, %arg22: memref<16x128xf32, #tpu.memory_space<vmem>>) attributes {dimension_semantics = [], scalar_prefetch = 0 : i64, scratch_operands = 0 : i64, tpu.core_type = #tpu.core_type<tc>} {
    %c0 = arith.constant 0 : index
    %c0_0 = arith.constant 0 : index
    %0 = vector.load %arg0[%c0, %c0_0] : memref<16x2xf32, #tpu.memory_space<vmem>>, vector<16x2xf32>
    %c0_1 = arith.constant 0 : index
    %c0_2 = arith.constant 0 : index
    %1 = vector.load %arg3[%c0_1, %c0_2] : memref<32x2xf32, #tpu.memory_space<vmem>>, vector<32x2xf32>
    %c0_3 = arith.constant 0 : index
    %c0_4 = arith.constant 0 : index
    %2 = vector.load %arg4[%c0_3, %c0_4] : memref<1x32xf32, #tpu.memory_space<vmem>>, vector<1x32xf32>
    %cst = arith.constant dense<0.000000e+00> : vector<16x32xf32>
    %3 = tpu.matmul %0, %1, %cst {dimension_numbers = #tpu.dot_dimension_numbers<[1], [1], [0], [0], [0, 0, 1, 0], [], []>} : vector<16x2xf32>, vector<32x2xf32>, vector<16x32xf32> -> vector<16x32xf32>
    %4 = vector.broadcast %2 : vector<1x32xf32> to vector<16x32xf32>
    %5 = arith.addf %3, %4 : vector<16x32xf32>
    %c0_5 = arith.constant 0 : index
    %c0_6 = arith.constant 0 : index
    %6 = vector.load %arg2[%c0_5, %c0_6] : memref<16x32xf32, #tpu.memory_space<vmem>>, vector<16x32xf32>
    %7 = arith.addf %5, %6 : vector<16x32xf32>
    %c0_7 = arith.constant 0 : index
    %c0_8 = arith.constant 0 : index
    %8 = vector.load %arg1[%c0_7, %c0_8] : memref<32x32xf32, #tpu.memory_space<vmem>>, vector<32x32xf32>
    %9 = tpu.iota {dimensions = array<i32: 2>} : vector<2x8x16xi32>
    %c10_i32 = arith.constant 10 : i32
    %10 = vector.broadcast %c10_i32 : i32 to vector<2x8x16xi32>
    %11 = arith.cmpi slt, %9, %10 : vector<2x8x16xi32>
    %cst_9 = arith.constant 0.000000e+00 : f32
    %cst_10 = arith.constant -1.000000e+30 : f32
    %12 = vector.broadcast %cst_9 : f32 to vector<2x8x16xf32>
    %13 = vector.broadcast %cst_10 : f32 to vector<2x8x16xf32>
    %14 = arith.select %11, %12, %13 : vector<2x8x16xi1>, vector<2x8x16xf32>
    %c0_11 = arith.constant 0 : index
    %c0_12 = arith.constant 0 : index
    %c0_13 = arith.constant 0 : index
    %15 = vector.load %arg19[%c0_11, %c0_12, %c0_13] : memref<2x6x32xf32, #tpu.memory_space<vmem>>, vector<1x6x32xf32>
    %16 = vector.shape_cast %15 : vector<1x6x32xf32> to vector<6x32xf32>
    %c0_14 = arith.constant 0 : index
    %c0_15 = arith.constant 0 : index
    %c0_16 = arith.constant 0 : index
    %17 = vector.load %arg5[%c0_14, %c0_15, %c0_16] : memref<2x96x32xf32, #tpu.memory_space<vmem>>, vector<1x96x32xf32>
    %18 = vector.shape_cast %17 : vector<1x96x32xf32> to vector<96x32xf32>
    %c0_17 = arith.constant 0 : index
    %c0_18 = arith.constant 0 : index
    %c0_19 = arith.constant 0 : index
    %19 = vector.load %arg6[%c0_17, %c0_18, %c0_19] : memref<2x1x96xf32, #tpu.memory_space<vmem>>, vector<1x1x96xf32>
    %20 = vector.shape_cast %19 : vector<1x1x96xf32> to vector<1x96xf32>
    %cst_20 = arith.constant dense<0.000000e+00> : vector<16x96xf32>
    %21 = tpu.matmul %7, %18, %cst_20 {dimension_numbers = #tpu.dot_dimension_numbers<[1], [1], [0], [0], [0, 0, 1, 0], [], []>} : vector<16x32xf32>, vector<96x32xf32>, vector<16x96xf32> -> vector<16x96xf32>
    %22 = vector.broadcast %20 : vector<1x96xf32> to vector<16x96xf32>
    %23 = arith.addf %21, %22 : vector<16x96xf32>
    %24 = vector.shape_cast %23 : vector<16x96xf32> to vector<2x8x96xf32>
    %25 = vector.extract_strided_slice %24 {offsets = [0, 0, 0], sizes = [2, 8, 32], strides = [1, 1, 1]} : vector<2x8x96xf32> to vector<2x8x32xf32>
    %26 = vector.extract_strided_slice %24 {offsets = [0, 0, 32], sizes = [2, 8, 32], strides = [1, 1, 1]} : vector<2x8x96xf32> to vector<2x8x32xf32>
    %27 = vector.extract_strided_slice %24 {offsets = [0, 0, 64], sizes = [2, 8, 32], strides = [1, 1, 1]} : vector<2x8x96xf32> to vector<2x8x32xf32>
    %28 = vector.extract_strided_slice %25 {offsets = [0, 0, 0], sizes = [2, 8, 8], strides = [1, 1, 1]} : vector<2x8x32xf32> to vector<2x8x8xf32>
    %cst_21 = arith.constant 0.353553385 : f32
    %29 = vector.broadcast %cst_21 : f32 to vector<2x8x8xf32>
    %30 = arith.mulf %28, %29 : vector<2x8x8xf32>
    %31 = vector.extract_strided_slice %26 {offsets = [0, 0, 0], sizes = [2, 8, 8], strides = [1, 1, 1]} : vector<2x8x32xf32> to vector<2x8x8xf32>
    "tpu.trace_start"() <{level = 10 : i32, message = "bqd,bkd->bqk"}> : () -> ()
    %cst_22 = arith.constant dense<0.000000e+00> : vector<2x8x8xf32>
    %32 = tpu.matmul %30, %31, %cst_22 {dimension_numbers = #tpu.dot_dimension_numbers<[2], [2], [1], [1], [0, 0, 0, 1, 1, 1], [0], [0]>} : vector<2x8x8xf32>, vector<2x8x8xf32>, vector<2x8x8xf32> -> vector<2x8x8xf32>
    "tpu.trace_stop"() : () -> ()
    %cst_23 = arith.constant dense<0xFF800000> : vector<2x8xf32>
    %33 = vector.multi_reduction <maximumf>, %32, %cst_23 [2] : vector<2x8x8xf32> to vector<2x8xf32>
    %34 = vector.shape_cast %33 : vector<2x8xf32> to vector<2x8x1xf32>
    %35 = vector.broadcast %34 : vector<2x8x1xf32> to vector<2x8x8xf32>
    %36 = arith.subf %32, %35 : vector<2x8x8xf32>
    %37 = math.exp %36 : vector<2x8x8xf32>
    %cst_24 = arith.constant dense<0.000000e+00> : vector<2x8xf32>
    %38 = vector.multi_reduction <add>, %37, %cst_24 [2] : vector<2x8x8xf32> to vector<2x8xf32>
    %39 = vector.shape_cast %38 : vector<2x8xf32> to vector<2x8x1xf32>
    %40 = tpu.reciprocal %39 {approx = true} : vector<2x8x1xf32> -> vector<2x8x1xf32>
    %41 = vector.broadcast %40 : vector<2x8x1xf32> to vector<2x8x8xf32>
    %42 = arith.mulf %37, %41 : vector<2x8x8xf32>
    %43 = vector.extract_strided_slice %27 {offsets = [0, 0, 0], sizes = [2, 8, 8], strides = [1, 1, 1]} : vector<2x8x32xf32> to vector<2x8x8xf32>
    "tpu.trace_start"() <{level = 10 : i32, message = "bqk,bkd->bqd"}> : () -> ()
    %cst_25 = arith.constant dense<0.000000e+00> : vector<2x8x8xf32>
    %44 = tpu.matmul %42, %43, %cst_25 {dimension_numbers = #tpu.dot_dimension_numbers<[2], [1], [1], [2], [0, 0, 0, 1, 1, 2], [0], [0]>} : vector<2x8x8xf32>, vector<2x8x8xf32>, vector<2x8x8xf32> -> vector<2x8x8xf32>
    "tpu.trace_stop"() : () -> ()
    %45 = vector.extract_strided_slice %25 {offsets = [0, 0, 8], sizes = [2, 8, 8], strides = [1, 1, 1]} : vector<2x8x32xf32> to vector<2x8x8xf32>
    %cst_26 = arith.constant 0.353553385 : f32
    %46 = vector.broadcast %cst_26 : f32 to vector<2x8x8xf32>
    %47 = arith.mulf %45, %46 : vector<2x8x8xf32>
    %48 = vector.extract_strided_slice %26 {offsets = [0, 0, 8], sizes = [2, 8, 8], strides = [1, 1, 1]} : vector<2x8x32xf32> to vector<2x8x8xf32>
    "tpu.trace_start"() <{level = 10 : i32, message = "bqd,bkd->bqk"}> : () -> ()
    %cst_27 = arith.constant dense<0.000000e+00> : vector<2x8x8xf32>
    %49 = tpu.matmul %47, %48, %cst_27 {dimension_numbers = #tpu.dot_dimension_numbers<[2], [2], [1], [1], [0, 0, 0, 1, 1, 1], [0], [0]>} : vector<2x8x8xf32>, vector<2x8x8xf32>, vector<2x8x8xf32> -> vector<2x8x8xf32>
    "tpu.trace_stop"() : () -> ()
    %cst_28 = arith.constant dense<0xFF800000> : vector<2x8xf32>
    %50 = vector.multi_reduction <maximumf>, %49, %cst_28 [2] : vector<2x8x8xf32> to vector<2x8xf32>
    %51 = vector.shape_cast %50 : vector<2x8xf32> to vector<2x8x1xf32>
    %52 = vector.broadcast %51 : vector<2x8x1xf32> to vector<2x8x8xf32>
    %53 = arith.subf %49, %52 : vector<2x8x8xf32>
    %54 = math.exp %53 : vector<2x8x8xf32>
    %cst_29 = arith.constant dense<0.000000e+00> : vector<2x8xf32>
    %55 = vector.multi_reduction <add>, %54, %cst_29 [2] : vector<2x8x8xf32> to vector<2x8xf32>
    %56 = vector.shape_cast %55 : vector<2x8xf32> to vector<2x8x1xf32>
    %57 = tpu.reciprocal %56 {approx = true} : vector<2x8x1xf32> -> vector<2x8x1xf32>
    %58 = vector.broadcast %57 : vector<2x8x1xf32> to vector<2x8x8xf32>
    %59 = arith.mulf %54, %58 : vector<2x8x8xf32>
    %60 = vector.extract_strided_slice %27 {offsets = [0, 0, 8], sizes = [2, 8, 8], strides = [1, 1, 1]} : vector<2x8x32xf32> to vector<2x8x8xf32>
    "tpu.trace_start"() <{level = 10 : i32, message = "bqk,bkd->bqd"}> : () -> ()
    %cst_30 = arith.constant dense<0.000000e+00> : vector<2x8x8xf32>
    %61 = tpu.matmul %59, %60, %cst_30 {dimension_numbers = #tpu.dot_dimension_numbers<[2], [1], [1], [2], [0, 0, 0, 1, 1, 2], [0], [0]>} : vector<2x8x8xf32>, vector<2x8x8xf32>, vector<2x8x8xf32> -> vector<2x8x8xf32>
    "tpu.trace_stop"() : () -> ()
    %62 = vector.extract_strided_slice %25 {offsets = [0, 0, 16], sizes = [2, 8, 8], strides = [1, 1, 1]} : vector<2x8x32xf32> to vector<2x8x8xf32>
    %cst_31 = arith.constant 0.353553385 : f32
    %63 = vector.broadcast %cst_31 : f32 to vector<2x8x8xf32>
    %64 = arith.mulf %62, %63 : vector<2x8x8xf32>
    %65 = vector.extract_strided_slice %26 {offsets = [0, 0, 16], sizes = [2, 8, 8], strides = [1, 1, 1]} : vector<2x8x32xf32> to vector<2x8x8xf32>
    "tpu.trace_start"() <{level = 10 : i32, message = "bqd,bkd->bqk"}> : () -> ()
    %cst_32 = arith.constant dense<0.000000e+00> : vector<2x8x8xf32>
    %66 = tpu.matmul %64, %65, %cst_32 {dimension_numbers = #tpu.dot_dimension_numbers<[2], [2], [1], [1], [0, 0, 0, 1, 1, 1], [0], [0]>} : vector<2x8x8xf32>, vector<2x8x8xf32>, vector<2x8x8xf32> -> vector<2x8x8xf32>
    "tpu.trace_stop"() : () -> ()
    %cst_33 = arith.constant dense<0xFF800000> : vector<2x8xf32>
    %67 = vector.multi_reduction <maximumf>, %66, %cst_33 [2] : vector<2x8x8xf32> to vector<2x8xf32>
    %68 = vector.shape_cast %67 : vector<2x8xf32> to vector<2x8x1xf32>
    %69 = vector.broadcast %68 : vector<2x8x1xf32> to vector<2x8x8xf32>
    %70 = arith.subf %66, %69 : vector<2x8x8xf32>
    %71 = math.exp %70 : vector<2x8x8xf32>
    %cst_34 = arith.constant dense<0.000000e+00> : vector<2x8xf32>
    %72 = vector.multi_reduction <add>, %71, %cst_34 [2] : vector<2x8x8xf32> to vector<2x8xf32>
    %73 = vector.shape_cast %72 : vector<2x8xf32> to vector<2x8x1xf32>
    %74 = tpu.reciprocal %73 {approx = true} : vector<2x8x1xf32> -> vector<2x8x1xf32>
    %75 = vector.broadcast %74 : vector<2x8x1xf32> to vector<2x8x8xf32>
    %76 = arith.mulf %71, %75 : vector<2x8x8xf32>
    %77 = vector.extract_strided_slice %27 {offsets = [0, 0, 16], sizes = [2, 8, 8], strides = [1, 1, 1]} : vector<2x8x32xf32> to vector<2x8x8xf32>
    "tpu.trace_start"() <{level = 10 : i32, message = "bqk,bkd->bqd"}> : () -> ()
    %cst_35 = arith.constant dense<0.000000e+00> : vector<2x8x8xf32>
    %78 = tpu.matmul %76, %77, %cst_35 {dimension_numbers = #tpu.dot_dimension_numbers<[2], [1], [1], [2], [0, 0, 0, 1, 1, 2], [0], [0]>} : vector<2x8x8xf32>, vector<2x8x8xf32>, vector<2x8x8xf32> -> vector<2x8x8xf32>
    "tpu.trace_stop"() : () -> ()
    %79 = vector.extract_strided_slice %25 {offsets = [0, 0, 24], sizes = [2, 8, 8], strides = [1, 1, 1]} : vector<2x8x32xf32> to vector<2x8x8xf32>
    %cst_36 = arith.constant 0.353553385 : f32
    %80 = vector.broadcast %cst_36 : f32 to vector<2x8x8xf32>
    %81 = arith.mulf %79, %80 : vector<2x8x8xf32>
    %82 = vector.extract_strided_slice %26 {offsets = [0, 0, 24], sizes = [2, 8, 8], strides = [1, 1, 1]} : vector<2x8x32xf32> to vector<2x8x8xf32>
    "tpu.trace_start"() <{level = 10 : i32, message = "bqd,bkd->bqk"}> : () -> ()
    %cst_37 = arith.constant dense<0.000000e+00> : vector<2x8x8xf32>
    %83 = tpu.matmul %81, %82, %cst_37 {dimension_numbers = #tpu.dot_dimension_numbers<[2], [2], [1], [1], [0, 0, 0, 1, 1, 1], [0], [0]>} : vector<2x8x8xf32>, vector<2x8x8xf32>, vector<2x8x8xf32> -> vector<2x8x8xf32>
    "tpu.trace_stop"() : () -> ()
    %cst_38 = arith.constant dense<0xFF800000> : vector<2x8xf32>
    %84 = vector.multi_reduction <maximumf>, %83, %cst_38 [2] : vector<2x8x8xf32> to vector<2x8xf32>
    %85 = vector.shape_cast %84 : vector<2x8xf32> to vector<2x8x1xf32>
    %86 = vector.broadcast %85 : vector<2x8x1xf32> to vector<2x8x8xf32>
    %87 = arith.subf %83, %86 : vector<2x8x8xf32>
    %88 = math.exp %87 : vector<2x8x8xf32>
    %cst_39 = arith.constant dense<0.000000e+00> : vector<2x8xf32>
    %89 = vector.multi_reduction <add>, %88, %cst_39 [2] : vector<2x8x8xf32> to vector<2x8xf32>
    %90 = vector.shape_cast %89 : vector<2x8xf32> to vector<2x8x1xf32>
    %91 = tpu.reciprocal %90 {approx = true} : vector<2x8x1xf32> -> vector<2x8x1xf32>
    %92 = vector.broadcast %91 : vector<2x8x1xf32> to vector<2x8x8xf32>
    %93 = arith.mulf %88, %92 : vector<2x8x8xf32>
    %94 = vector.extract_strided_slice %27 {offsets = [0, 0, 24], sizes = [2, 8, 8], strides = [1, 1, 1]} : vector<2x8x32xf32> to vector<2x8x8xf32>
    "tpu.trace_start"() <{level = 10 : i32, message = "bqk,bkd->bqd"}> : () -> ()
    %cst_40 = arith.constant dense<0.000000e+00> : vector<2x8x8xf32>
    %95 = tpu.matmul %93, %94, %cst_40 {dimension_numbers = #tpu.dot_dimension_numbers<[2], [1], [1], [2], [0, 0, 0, 1, 1, 2], [0], [0]>} : vector<2x8x8xf32>, vector<2x8x8xf32>, vector<2x8x8xf32> -> vector<2x8x8xf32>
    "tpu.trace_stop"() : () -> ()
    %96 = tpu.concatenate %44, %61, %78, %95 in 2 : vector<2x8x8xf32>, vector<2x8x8xf32>, vector<2x8x8xf32>, vector<2x8x8xf32> -> vector<2x8x32xf32>
    %97 = vector.shape_cast %96 : vector<2x8x32xf32> to vector<16x32xf32>
    %c0_41 = arith.constant 0 : index
    %c0_42 = arith.constant 0 : index
    %c0_43 = arith.constant 0 : index
    %98 = vector.load %arg7[%c0_41, %c0_42, %c0_43] : memref<2x32x32xf32, #tpu.memory_space<vmem>>, vector<1x32x32xf32>
    %99 = vector.shape_cast %98 : vector<1x32x32xf32> to vector<32x32xf32>
    %c0_44 = arith.constant 0 : index
    %c0_45 = arith.constant 0 : index
    %c0_46 = arith.constant 0 : index
    %100 = vector.load %arg8[%c0_44, %c0_45, %c0_46] : memref<2x1x32xf32, #tpu.memory_space<vmem>>, vector<1x1x32xf32>
    %101 = vector.shape_cast %100 : vector<1x1x32xf32> to vector<1x32xf32>
    %cst_47 = arith.constant dense<0.000000e+00> : vector<16x32xf32>
    %102 = tpu.matmul %97, %99, %cst_47 {dimension_numbers = #tpu.dot_dimension_numbers<[1], [1], [0], [0], [0, 0, 1, 0], [], []>} : vector<16x32xf32>, vector<32x32xf32>, vector<16x32xf32> -> vector<16x32xf32>
    %103 = vector.broadcast %101 : vector<1x32xf32> to vector<16x32xf32>
    %104 = arith.addf %102, %103 : vector<16x32xf32>
    %105 = arith.addf %7, %104 : vector<16x32xf32>
    %106 = vector.extract_strided_slice %16 {offsets = [0, 0], sizes = [1, 32], strides = [1, 1]} : vector<6x32xf32> to vector<1x32xf32>
    %107 = vector.extract_strided_slice %16 {offsets = [1, 0], sizes = [1, 32], strides = [1, 1]} : vector<6x32xf32> to vector<1x32xf32>
    %cst_48 = arith.constant dense<0.000000e+00> : vector<16xf32>
    %108 = vector.multi_reduction <add>, %105, %cst_48 [1] : vector<16x32xf32> to vector<16xf32>
    %109 = vector.shape_cast %108 : vector<16xf32> to vector<16x1xf32>
    %cst_49 = arith.constant 3.200000e+01 : f32
    %110 = vector.broadcast %cst_49 : f32 to vector<16x1xf32>
    %111 = arith.divf %109, %110 : vector<16x1xf32>
    %112 = vector.broadcast %111 : vector<16x1xf32> to vector<16x32xf32>
    %113 = arith.subf %105, %112 : vector<16x32xf32>
    %114 = vector.broadcast %111 : vector<16x1xf32> to vector<16x32xf32>
    %115 = arith.subf %105, %114 : vector<16x32xf32>
    %116 = arith.mulf %113, %115 : vector<16x32xf32>
    %cst_50 = arith.constant dense<0.000000e+00> : vector<16xf32>
    %117 = vector.multi_reduction <add>, %116, %cst_50 [1] : vector<16x32xf32> to vector<16xf32>
    %118 = vector.shape_cast %117 : vector<16xf32> to vector<16x1xf32>
    %cst_51 = arith.constant 3.200000e+01 : f32
    %119 = vector.broadcast %cst_51 : f32 to vector<16x1xf32>
    %120 = arith.divf %118, %119 : vector<16x1xf32>
    %121 = vector.broadcast %111 : vector<16x1xf32> to vector<16x32xf32>
    %122 = arith.subf %105, %121 : vector<16x32xf32>
    %cst_52 = arith.constant 9.99999974E-6 : f32
    %123 = vector.broadcast %cst_52 : f32 to vector<16x1xf32>
    %124 = arith.addf %120, %123 : vector<16x1xf32>
    %125 = math.rsqrt %124 : vector<16x1xf32>
    %126 = vector.broadcast %125 : vector<16x1xf32> to vector<16x32xf32>
    %127 = arith.mulf %122, %126 : vector<16x32xf32>
    %128 = vector.broadcast %106 : vector<1x32xf32> to vector<16x32xf32>
    %129 = arith.mulf %127, %128 : vector<16x32xf32>
    %130 = vector.broadcast %107 : vector<1x32xf32> to vector<16x32xf32>
    %131 = arith.addf %129, %130 : vector<16x32xf32>
    %c0_53 = arith.constant 0 : index
    %c0_54 = arith.constant 0 : index
    %c0_55 = arith.constant 0 : index
    %132 = vector.load %arg9[%c0_53, %c0_54, %c0_55] : memref<2x32x32xf32, #tpu.memory_space<vmem>>, vector<1x32x32xf32>
    %133 = vector.shape_cast %132 : vector<1x32x32xf32> to vector<32x32xf32>
    %c0_56 = arith.constant 0 : index
    %c0_57 = arith.constant 0 : index
    %c0_58 = arith.constant 0 : index
    %134 = vector.load %arg10[%c0_56, %c0_57, %c0_58] : memref<2x1x32xf32, #tpu.memory_space<vmem>>, vector<1x1x32xf32>
    %135 = vector.shape_cast %134 : vector<1x1x32xf32> to vector<1x32xf32>
    %cst_59 = arith.constant dense<0.000000e+00> : vector<16x32xf32>
    %136 = tpu.matmul %131, %133, %cst_59 {dimension_numbers = #tpu.dot_dimension_numbers<[1], [1], [0], [0], [0, 0, 1, 0], [], []>} : vector<16x32xf32>, vector<32x32xf32>, vector<16x32xf32> -> vector<16x32xf32>
    %137 = vector.broadcast %135 : vector<1x32xf32> to vector<16x32xf32>
    %138 = arith.addf %136, %137 : vector<16x32xf32>
    %139 = vector.shape_cast %138 : vector<16x32xf32> to vector<2x8x32xf32>
    %c0_60 = arith.constant 0 : index
    %c0_61 = arith.constant 0 : index
    %c0_62 = arith.constant 0 : index
    %140 = vector.load %arg11[%c0_60, %c0_61, %c0_62] : memref<2x64x32xf32, #tpu.memory_space<vmem>>, vector<1x64x32xf32>
    %141 = vector.shape_cast %140 : vector<1x64x32xf32> to vector<64x32xf32>
    %c0_63 = arith.constant 0 : index
    %c0_64 = arith.constant 0 : index
    %c0_65 = arith.constant 0 : index
    %142 = vector.load %arg12[%c0_63, %c0_64, %c0_65] : memref<2x1x64xf32, #tpu.memory_space<vmem>>, vector<1x1x64xf32>
    %143 = vector.shape_cast %142 : vector<1x1x64xf32> to vector<1x64xf32>
    %cst_66 = arith.constant dense<0.000000e+00> : vector<32x64xf32>
    %144 = tpu.matmul %8, %141, %cst_66 {dimension_numbers = #tpu.dot_dimension_numbers<[1], [1], [0], [0], [0, 0, 1, 0], [], []>} : vector<32x32xf32>, vector<64x32xf32>, vector<32x64xf32> -> vector<32x64xf32>
    %145 = vector.broadcast %143 : vector<1x64xf32> to vector<32x64xf32>
    %146 = arith.addf %144, %145 : vector<32x64xf32>
    %147 = vector.shape_cast %146 : vector<32x64xf32> to vector<2x16x64xf32>
    %148 = vector.extract_strided_slice %147 {offsets = [0, 0, 0], sizes = [2, 16, 32], strides = [1, 1, 1]} : vector<2x16x64xf32> to vector<2x16x32xf32>
    %149 = vector.extract_strided_slice %147 {offsets = [0, 0, 32], sizes = [2, 16, 32], strides = [1, 1, 1]} : vector<2x16x64xf32> to vector<2x16x32xf32>
    %150 = vector.extract_strided_slice %139 {offsets = [0, 0, 0], sizes = [2, 8, 8], strides = [1, 1, 1]} : vector<2x8x32xf32> to vector<2x8x8xf32>
    %cst_67 = arith.constant 0.353553385 : f32
    %151 = vector.broadcast %cst_67 : f32 to vector<2x8x8xf32>
    %152 = arith.mulf %150, %151 : vector<2x8x8xf32>
    %153 = vector.extract_strided_slice %148 {offsets = [0, 0, 0], sizes = [2, 16, 8], strides = [1, 1, 1]} : vector<2x16x32xf32> to vector<2x16x8xf32>
    "tpu.trace_start"() <{level = 10 : i32, message = "bqd,bkd->bqk"}> : () -> ()
    %cst_68 = arith.constant dense<0.000000e+00> : vector<2x8x16xf32>
    %154 = tpu.matmul %152, %153, %cst_68 {dimension_numbers = #tpu.dot_dimension_numbers<[2], [2], [1], [1], [0, 0, 0, 1, 1, 1], [0], [0]>} : vector<2x8x8xf32>, vector<2x16x8xf32>, vector<2x8x16xf32> -> vector<2x8x16xf32>
    "tpu.trace_stop"() : () -> ()
    %155 = arith.addf %154, %14 : vector<2x8x16xf32>
    %cst_69 = arith.constant dense<0xFF800000> : vector<2x8xf32>
    %156 = vector.multi_reduction <maximumf>, %155, %cst_69 [2] : vector<2x8x16xf32> to vector<2x8xf32>
    %157 = vector.shape_cast %156 : vector<2x8xf32> to vector<2x8x1xf32>
    %158 = vector.broadcast %157 : vector<2x8x1xf32> to vector<2x8x16xf32>
    %159 = arith.subf %155, %158 : vector<2x8x16xf32>
    %160 = math.exp %159 : vector<2x8x16xf32>
    %cst_70 = arith.constant dense<0.000000e+00> : vector<2x8xf32>
    %161 = vector.multi_reduction <add>, %160, %cst_70 [2] : vector<2x8x16xf32> to vector<2x8xf32>
    %162 = vector.shape_cast %161 : vector<2x8xf32> to vector<2x8x1xf32>
    %163 = tpu.reciprocal %162 {approx = true} : vector<2x8x1xf32> -> vector<2x8x1xf32>
    %164 = vector.broadcast %163 : vector<2x8x1xf32> to vector<2x8x16xf32>
    %165 = arith.mulf %160, %164 : vector<2x8x16xf32>
    %166 = vector.extract_strided_slice %149 {offsets = [0, 0, 0], sizes = [2, 16, 8], strides = [1, 1, 1]} : vector<2x16x32xf32> to vector<2x16x8xf32>
    "tpu.trace_start"() <{level = 10 : i32, message = "bqk,bkd->bqd"}> : () -> ()
    %cst_71 = arith.constant dense<0.000000e+00> : vector<2x8x8xf32>
    %167 = tpu.matmul %165, %166, %cst_71 {dimension_numbers = #tpu.dot_dimension_numbers<[2], [1], [1], [2], [0, 0, 0, 1, 1, 2], [0], [0]>} : vector<2x8x16xf32>, vector<2x16x8xf32>, vector<2x8x8xf32> -> vector<2x8x8xf32>
    "tpu.trace_stop"() : () -> ()
    %168 = vector.extract_strided_slice %139 {offsets = [0, 0, 8], sizes = [2, 8, 8], strides = [1, 1, 1]} : vector<2x8x32xf32> to vector<2x8x8xf32>
    %cst_72 = arith.constant 0.353553385 : f32
    %169 = vector.broadcast %cst_72 : f32 to vector<2x8x8xf32>
    %170 = arith.mulf %168, %169 : vector<2x8x8xf32>
    %171 = vector.extract_strided_slice %148 {offsets = [0, 0, 8], sizes = [2, 16, 8], strides = [1, 1, 1]} : vector<2x16x32xf32> to vector<2x16x8xf32>
    "tpu.trace_start"() <{level = 10 : i32, message = "bqd,bkd->bqk"}> : () -> ()
    %cst_73 = arith.constant dense<0.000000e+00> : vector<2x8x16xf32>
    %172 = tpu.matmul %170, %171, %cst_73 {dimension_numbers = #tpu.dot_dimension_numbers<[2], [2], [1], [1], [0, 0, 0, 1, 1, 1], [0], [0]>} : vector<2x8x8xf32>, vector<2x16x8xf32>, vector<2x8x16xf32> -> vector<2x8x16xf32>
    "tpu.trace_stop"() : () -> ()
    %173 = arith.addf %172, %14 : vector<2x8x16xf32>
    %cst_74 = arith.constant dense<0xFF800000> : vector<2x8xf32>
    %174 = vector.multi_reduction <maximumf>, %173, %cst_74 [2] : vector<2x8x16xf32> to vector<2x8xf32>
    %175 = vector.shape_cast %174 : vector<2x8xf32> to vector<2x8x1xf32>
    %176 = vector.broadcast %175 : vector<2x8x1xf32> to vector<2x8x16xf32>
    %177 = arith.subf %173, %176 : vector<2x8x16xf32>
    %178 = math.exp %177 : vector<2x8x16xf32>
    %cst_75 = arith.constant dense<0.000000e+00> : vector<2x8xf32>
    %179 = vector.multi_reduction <add>, %178, %cst_75 [2] : vector<2x8x16xf32> to vector<2x8xf32>
    %180 = vector.shape_cast %179 : vector<2x8xf32> to vector<2x8x1xf32>
    %181 = tpu.reciprocal %180 {approx = true} : vector<2x8x1xf32> -> vector<2x8x1xf32>
    %182 = vector.broadcast %181 : vector<2x8x1xf32> to vector<2x8x16xf32>
    %183 = arith.mulf %178, %182 : vector<2x8x16xf32>
    %184 = vector.extract_strided_slice %149 {offsets = [0, 0, 8], sizes = [2, 16, 8], strides = [1, 1, 1]} : vector<2x16x32xf32> to vector<2x16x8xf32>
    "tpu.trace_start"() <{level = 10 : i32, message = "bqk,bkd->bqd"}> : () -> ()
    %cst_76 = arith.constant dense<0.000000e+00> : vector<2x8x8xf32>
    %185 = tpu.matmul %183, %184, %cst_76 {dimension_numbers = #tpu.dot_dimension_numbers<[2], [1], [1], [2], [0, 0, 0, 1, 1, 2], [0], [0]>} : vector<2x8x16xf32>, vector<2x16x8xf32>, vector<2x8x8xf32> -> vector<2x8x8xf32>
    "tpu.trace_stop"() : () -> ()
    %186 = vector.extract_strided_slice %139 {offsets = [0, 0, 16], sizes = [2, 8, 8], strides = [1, 1, 1]} : vector<2x8x32xf32> to vector<2x8x8xf32>
    %cst_77 = arith.constant 0.353553385 : f32
    %187 = vector.broadcast %cst_77 : f32 to vector<2x8x8xf32>
    %188 = arith.mulf %186, %187 : vector<2x8x8xf32>
    %189 = vector.extract_strided_slice %148 {offsets = [0, 0, 16], sizes = [2, 16, 8], strides = [1, 1, 1]} : vector<2x16x32xf32> to vector<2x16x8xf32>
    "tpu.trace_start"() <{level = 10 : i32, message = "bqd,bkd->bqk"}> : () -> ()
    %cst_78 = arith.constant dense<0.000000e+00> : vector<2x8x16xf32>
    %190 = tpu.matmul %188, %189, %cst_78 {dimension_numbers = #tpu.dot_dimension_numbers<[2], [2], [1], [1], [0, 0, 0, 1, 1, 1], [0], [0]>} : vector<2x8x8xf32>, vector<2x16x8xf32>, vector<2x8x16xf32> -> vector<2x8x16xf32>
    "tpu.trace_stop"() : () -> ()
    %191 = arith.addf %190, %14 : vector<2x8x16xf32>
    %cst_79 = arith.constant dense<0xFF800000> : vector<2x8xf32>
    %192 = vector.multi_reduction <maximumf>, %191, %cst_79 [2] : vector<2x8x16xf32> to vector<2x8xf32>
    %193 = vector.shape_cast %192 : vector<2x8xf32> to vector<2x8x1xf32>
    %194 = vector.broadcast %193 : vector<2x8x1xf32> to vector<2x8x16xf32>
    %195 = arith.subf %191, %194 : vector<2x8x16xf32>
    %196 = math.exp %195 : vector<2x8x16xf32>
    %cst_80 = arith.constant dense<0.000000e+00> : vector<2x8xf32>
    %197 = vector.multi_reduction <add>, %196, %cst_80 [2] : vector<2x8x16xf32> to vector<2x8xf32>
    %198 = vector.shape_cast %197 : vector<2x8xf32> to vector<2x8x1xf32>
    %199 = tpu.reciprocal %198 {approx = true} : vector<2x8x1xf32> -> vector<2x8x1xf32>
    %200 = vector.broadcast %199 : vector<2x8x1xf32> to vector<2x8x16xf32>
    %201 = arith.mulf %196, %200 : vector<2x8x16xf32>
    %202 = vector.extract_strided_slice %149 {offsets = [0, 0, 16], sizes = [2, 16, 8], strides = [1, 1, 1]} : vector<2x16x32xf32> to vector<2x16x8xf32>
    "tpu.trace_start"() <{level = 10 : i32, message = "bqk,bkd->bqd"}> : () -> ()
    %cst_81 = arith.constant dense<0.000000e+00> : vector<2x8x8xf32>
    %203 = tpu.matmul %201, %202, %cst_81 {dimension_numbers = #tpu.dot_dimension_numbers<[2], [1], [1], [2], [0, 0, 0, 1, 1, 2], [0], [0]>} : vector<2x8x16xf32>, vector<2x16x8xf32>, vector<2x8x8xf32> -> vector<2x8x8xf32>
    "tpu.trace_stop"() : () -> ()
    %204 = vector.extract_strided_slice %139 {offsets = [0, 0, 24], sizes = [2, 8, 8], strides = [1, 1, 1]} : vector<2x8x32xf32> to vector<2x8x8xf32>
    %cst_82 = arith.constant 0.353553385 : f32
    %205 = vector.broadcast %cst_82 : f32 to vector<2x8x8xf32>
    %206 = arith.mulf %204, %205 : vector<2x8x8xf32>
    %207 = vector.extract_strided_slice %148 {offsets = [0, 0, 24], sizes = [2, 16, 8], strides = [1, 1, 1]} : vector<2x16x32xf32> to vector<2x16x8xf32>
    "tpu.trace_start"() <{level = 10 : i32, message = "bqd,bkd->bqk"}> : () -> ()
    %cst_83 = arith.constant dense<0.000000e+00> : vector<2x8x16xf32>
    %208 = tpu.matmul %206, %207, %cst_83 {dimension_numbers = #tpu.dot_dimension_numbers<[2], [2], [1], [1], [0, 0, 0, 1, 1, 1], [0], [0]>} : vector<2x8x8xf32>, vector<2x16x8xf32>, vector<2x8x16xf32> -> vector<2x8x16xf32>
    "tpu.trace_stop"() : () -> ()
    %209 = arith.addf %208, %14 : vector<2x8x16xf32>
    %cst_84 = arith.constant dense<0xFF800000> : vector<2x8xf32>
    %210 = vector.multi_reduction <maximumf>, %209, %cst_84 [2] : vector<2x8x16xf32> to vector<2x8xf32>
    %211 = vector.shape_cast %210 : vector<2x8xf32> to vector<2x8x1xf32>
    %212 = vector.broadcast %211 : vector<2x8x1xf32> to vector<2x8x16xf32>
    %213 = arith.subf %209, %212 : vector<2x8x16xf32>
    %214 = math.exp %213 : vector<2x8x16xf32>
    %cst_85 = arith.constant dense<0.000000e+00> : vector<2x8xf32>
    %215 = vector.multi_reduction <add>, %214, %cst_85 [2] : vector<2x8x16xf32> to vector<2x8xf32>
    %216 = vector.shape_cast %215 : vector<2x8xf32> to vector<2x8x1xf32>
    %217 = tpu.reciprocal %216 {approx = true} : vector<2x8x1xf32> -> vector<2x8x1xf32>
    %218 = vector.broadcast %217 : vector<2x8x1xf32> to vector<2x8x16xf32>
    %219 = arith.mulf %214, %218 : vector<2x8x16xf32>
    %220 = vector.extract_strided_slice %149 {offsets = [0, 0, 24], sizes = [2, 16, 8], strides = [1, 1, 1]} : vector<2x16x32xf32> to vector<2x16x8xf32>
    "tpu.trace_start"() <{level = 10 : i32, message = "bqk,bkd->bqd"}> : () -> ()
    %cst_86 = arith.constant dense<0.000000e+00> : vector<2x8x8xf32>
    %221 = tpu.matmul %219, %220, %cst_86 {dimension_numbers = #tpu.dot_dimension_numbers<[2], [1], [1], [2], [0, 0, 0, 1, 1, 2], [0], [0]>} : vector<2x8x16xf32>, vector<2x16x8xf32>, vector<2x8x8xf32> -> vector<2x8x8xf32>
    "tpu.trace_stop"() : () -> ()
    %222 = tpu.concatenate %167, %185, %203, %221 in 2 : vector<2x8x8xf32>, vector<2x8x8xf32>, vector<2x8x8xf32>, vector<2x8x8xf32> -> vector<2x8x32xf32>
    %223 = vector.shape_cast %222 : vector<2x8x32xf32> to vector<16x32xf32>
    %c0_87 = arith.constant 0 : index
    %c0_88 = arith.constant 0 : index
    %c0_89 = arith.constant 0 : index
    %224 = vector.load %arg13[%c0_87, %c0_88, %c0_89] : memref<2x32x32xf32, #tpu.memory_space<vmem>>, vector<1x32x32xf32>
    %225 = vector.shape_cast %224 : vector<1x32x32xf32> to vector<32x32xf32>
    %c0_90 = arith.constant 0 : index
    %c0_91 = arith.constant 0 : index
    %c0_92 = arith.constant 0 : index
    %226 = vector.load %arg14[%c0_90, %c0_91, %c0_92] : memref<2x1x32xf32, #tpu.memory_space<vmem>>, vector<1x1x32xf32>
    %227 = vector.shape_cast %226 : vector<1x1x32xf32> to vector<1x32xf32>
    %cst_93 = arith.constant dense<0.000000e+00> : vector<16x32xf32>
    %228 = tpu.matmul %223, %225, %cst_93 {dimension_numbers = #tpu.dot_dimension_numbers<[1], [1], [0], [0], [0, 0, 1, 0], [], []>} : vector<16x32xf32>, vector<32x32xf32>, vector<16x32xf32> -> vector<16x32xf32>
    %229 = vector.broadcast %227 : vector<1x32xf32> to vector<16x32xf32>
    %230 = arith.addf %228, %229 : vector<16x32xf32>
    %231 = arith.addf %131, %230 : vector<16x32xf32>
    %232 = vector.extract_strided_slice %16 {offsets = [2, 0], sizes = [1, 32], strides = [1, 1]} : vector<6x32xf32> to vector<1x32xf32>
    %233 = vector.extract_strided_slice %16 {offsets = [3, 0], sizes = [1, 32], strides = [1, 1]} : vector<6x32xf32> to vector<1x32xf32>
    %cst_94 = arith.constant dense<0.000000e+00> : vector<16xf32>
    %234 = vector.multi_reduction <add>, %231, %cst_94 [1] : vector<16x32xf32> to vector<16xf32>
    %235 = vector.shape_cast %234 : vector<16xf32> to vector<16x1xf32>
    %cst_95 = arith.constant 3.200000e+01 : f32
    %236 = vector.broadcast %cst_95 : f32 to vector<16x1xf32>
    %237 = arith.divf %235, %236 : vector<16x1xf32>
    %238 = vector.broadcast %237 : vector<16x1xf32> to vector<16x32xf32>
    %239 = arith.subf %231, %238 : vector<16x32xf32>
    %240 = vector.broadcast %237 : vector<16x1xf32> to vector<16x32xf32>
    %241 = arith.subf %231, %240 : vector<16x32xf32>
    %242 = arith.mulf %239, %241 : vector<16x32xf32>
    %cst_96 = arith.constant dense<0.000000e+00> : vector<16xf32>
    %243 = vector.multi_reduction <add>, %242, %cst_96 [1] : vector<16x32xf32> to vector<16xf32>
    %244 = vector.shape_cast %243 : vector<16xf32> to vector<16x1xf32>
    %cst_97 = arith.constant 3.200000e+01 : f32
    %245 = vector.broadcast %cst_97 : f32 to vector<16x1xf32>
    %246 = arith.divf %244, %245 : vector<16x1xf32>
    %247 = vector.broadcast %237 : vector<16x1xf32> to vector<16x32xf32>
    %248 = arith.subf %231, %247 : vector<16x32xf32>
    %cst_98 = arith.constant 9.99999974E-6 : f32
    %249 = vector.broadcast %cst_98 : f32 to vector<16x1xf32>
    %250 = arith.addf %246, %249 : vector<16x1xf32>
    %251 = math.rsqrt %250 : vector<16x1xf32>
    %252 = vector.broadcast %251 : vector<16x1xf32> to vector<16x32xf32>
    %253 = arith.mulf %248, %252 : vector<16x32xf32>
    %254 = vector.broadcast %232 : vector<1x32xf32> to vector<16x32xf32>
    %255 = arith.mulf %253, %254 : vector<16x32xf32>
    %256 = vector.broadcast %233 : vector<1x32xf32> to vector<16x32xf32>
    %257 = arith.addf %255, %256 : vector<16x32xf32>
    %c0_99 = arith.constant 0 : index
    %c0_100 = arith.constant 0 : index
    %c0_101 = arith.constant 0 : index
    %258 = vector.load %arg15[%c0_99, %c0_100, %c0_101] : memref<2x128x32xf32, #tpu.memory_space<vmem>>, vector<1x128x32xf32>
    %259 = vector.shape_cast %258 : vector<1x128x32xf32> to vector<128x32xf32>
    %c0_102 = arith.constant 0 : index
    %c0_103 = arith.constant 0 : index
    %c0_104 = arith.constant 0 : index
    %260 = vector.load %arg16[%c0_102, %c0_103, %c0_104] : memref<2x1x128xf32, #tpu.memory_space<vmem>>, vector<1x1x128xf32>
    %261 = vector.shape_cast %260 : vector<1x1x128xf32> to vector<1x128xf32>
    %cst_105 = arith.constant dense<0.000000e+00> : vector<16x128xf32>
    %262 = tpu.matmul %257, %259, %cst_105 {dimension_numbers = #tpu.dot_dimension_numbers<[1], [1], [0], [0], [0, 0, 1, 0], [], []>} : vector<16x32xf32>, vector<128x32xf32>, vector<16x128xf32> -> vector<16x128xf32>
    %263 = vector.broadcast %261 : vector<1x128xf32> to vector<16x128xf32>
    %264 = arith.addf %262, %263 : vector<16x128xf32>
    %cst_106 = arith.constant 0.000000e+00 : f32
    %265 = vector.broadcast %cst_106 : f32 to vector<16x128xf32>
    %266 = arith.maximumf %264, %265 : vector<16x128xf32>
    %c0_107 = arith.constant 0 : index
    %c0_108 = arith.constant 0 : index
    %c0_109 = arith.constant 0 : index
    %267 = vector.load %arg17[%c0_107, %c0_108, %c0_109] : memref<2x32x128xf32, #tpu.memory_space<vmem>>, vector<1x32x128xf32>
    %268 = vector.shape_cast %267 : vector<1x32x128xf32> to vector<32x128xf32>
    %c0_110 = arith.constant 0 : index
    %c0_111 = arith.constant 0 : index
    %c0_112 = arith.constant 0 : index
    %269 = vector.load %arg18[%c0_110, %c0_111, %c0_112] : memref<2x1x32xf32, #tpu.memory_space<vmem>>, vector<1x1x32xf32>
    %270 = vector.shape_cast %269 : vector<1x1x32xf32> to vector<1x32xf32>
    %cst_113 = arith.constant dense<0.000000e+00> : vector<16x32xf32>
    %271 = tpu.matmul %266, %268, %cst_113 {dimension_numbers = #tpu.dot_dimension_numbers<[1], [1], [0], [0], [0, 0, 1, 0], [], []>} : vector<16x128xf32>, vector<32x128xf32>, vector<16x32xf32> -> vector<16x32xf32>
    %272 = vector.broadcast %270 : vector<1x32xf32> to vector<16x32xf32>
    %273 = arith.addf %271, %272 : vector<16x32xf32>
    %274 = arith.addf %257, %273 : vector<16x32xf32>
    %275 = vector.extract_strided_slice %16 {offsets = [4, 0], sizes = [1, 32], strides = [1, 1]} : vector<6x32xf32> to vector<1x32xf32>
    %276 = vector.extract_strided_slice %16 {offsets = [5, 0], sizes = [1, 32], strides = [1, 1]} : vector<6x32xf32> to vector<1x32xf32>
    %cst_114 = arith.constant dense<0.000000e+00> : vector<16xf32>
    %277 = vector.multi_reduction <add>, %274, %cst_114 [1] : vector<16x32xf32> to vector<16xf32>
    %278 = vector.shape_cast %277 : vector<16xf32> to vector<16x1xf32>
    %cst_115 = arith.constant 3.200000e+01 : f32
    %279 = vector.broadcast %cst_115 : f32 to vector<16x1xf32>
    %280 = arith.divf %278, %279 : vector<16x1xf32>
    %281 = vector.broadcast %280 : vector<16x1xf32> to vector<16x32xf32>
    %282 = arith.subf %274, %281 : vector<16x32xf32>
    %283 = vector.broadcast %280 : vector<16x1xf32> to vector<16x32xf32>
    %284 = arith.subf %274, %283 : vector<16x32xf32>
    %285 = arith.mulf %282, %284 : vector<16x32xf32>
    %cst_116 = arith.constant dense<0.000000e+00> : vector<16xf32>
    %286 = vector.multi_reduction <add>, %285, %cst_116 [1] : vector<16x32xf32> to vector<16xf32>
    %287 = vector.shape_cast %286 : vector<16xf32> to vector<16x1xf32>
    %cst_117 = arith.constant 3.200000e+01 : f32
    %288 = vector.broadcast %cst_117 : f32 to vector<16x1xf32>
    %289 = arith.divf %287, %288 : vector<16x1xf32>
    %290 = vector.broadcast %280 : vector<16x1xf32> to vector<16x32xf32>
    %291 = arith.subf %274, %290 : vector<16x32xf32>
    %cst_118 = arith.constant 9.99999974E-6 : f32
    %292 = vector.broadcast %cst_118 : f32 to vector<16x1xf32>
    %293 = arith.addf %289, %292 : vector<16x1xf32>
    %294 = math.rsqrt %293 : vector<16x1xf32>
    %295 = vector.broadcast %294 : vector<16x1xf32> to vector<16x32xf32>
    %296 = arith.mulf %291, %295 : vector<16x32xf32>
    %297 = vector.broadcast %275 : vector<1x32xf32> to vector<16x32xf32>
    %298 = arith.mulf %296, %297 : vector<16x32xf32>
    %299 = vector.broadcast %276 : vector<1x32xf32> to vector<16x32xf32>
    %300 = arith.addf %298, %299 : vector<16x32xf32>
    %c1 = arith.constant 1 : index
    %c0_119 = arith.constant 0 : index
    %c0_120 = arith.constant 0 : index
    %301 = vector.load %arg19[%c1, %c0_119, %c0_120] : memref<2x6x32xf32, #tpu.memory_space<vmem>>, vector<1x6x32xf32>
    %302 = vector.shape_cast %301 : vector<1x6x32xf32> to vector<6x32xf32>
    %c1_121 = arith.constant 1 : index
    %c0_122 = arith.constant 0 : index
    %c0_123 = arith.constant 0 : index
    %303 = vector.load %arg5[%c1_121, %c0_122, %c0_123] : memref<2x96x32xf32, #tpu.memory_space<vmem>>, vector<1x96x32xf32>
    %304 = vector.shape_cast %303 : vector<1x96x32xf32> to vector<96x32xf32>
    %c1_124 = arith.constant 1 : index
    %c0_125 = arith.constant 0 : index
    %c0_126 = arith.constant 0 : index
    %305 = vector.load %arg6[%c1_124, %c0_125, %c0_126] : memref<2x1x96xf32, #tpu.memory_space<vmem>>, vector<1x1x96xf32>
    %306 = vector.shape_cast %305 : vector<1x1x96xf32> to vector<1x96xf32>
    %cst_127 = arith.constant dense<0.000000e+00> : vector<16x96xf32>
    %307 = tpu.matmul %300, %304, %cst_127 {dimension_numbers = #tpu.dot_dimension_numbers<[1], [1], [0], [0], [0, 0, 1, 0], [], []>} : vector<16x32xf32>, vector<96x32xf32>, vector<16x96xf32> -> vector<16x96xf32>
    %308 = vector.broadcast %306 : vector<1x96xf32> to vector<16x96xf32>
    %309 = arith.addf %307, %308 : vector<16x96xf32>
    %310 = vector.shape_cast %309 : vector<16x96xf32> to vector<2x8x96xf32>
    %311 = vector.extract_strided_slice %310 {offsets = [0, 0, 0], sizes = [2, 8, 32], strides = [1, 1, 1]} : vector<2x8x96xf32> to vector<2x8x32xf32>
    %312 = vector.extract_strided_slice %310 {offsets = [0, 0, 32], sizes = [2, 8, 32], strides = [1, 1, 1]} : vector<2x8x96xf32> to vector<2x8x32xf32>
    %313 = vector.extract_strided_slice %310 {offsets = [0, 0, 64], sizes = [2, 8, 32], strides = [1, 1, 1]} : vector<2x8x96xf32> to vector<2x8x32xf32>
    %314 = vector.extract_strided_slice %311 {offsets = [0, 0, 0], sizes = [2, 8, 8], strides = [1, 1, 1]} : vector<2x8x32xf32> to vector<2x8x8xf32>
    %cst_128 = arith.constant 0.353553385 : f32
    %315 = vector.broadcast %cst_128 : f32 to vector<2x8x8xf32>
    %316 = arith.mulf %314, %315 : vector<2x8x8xf32>
    %317 = vector.extract_strided_slice %312 {offsets = [0, 0, 0], sizes = [2, 8, 8], strides = [1, 1, 1]} : vector<2x8x32xf32> to vector<2x8x8xf32>
    "tpu.trace_start"() <{level = 10 : i32, message = "bqd,bkd->bqk"}> : () -> ()
    %cst_129 = arith.constant dense<0.000000e+00> : vector<2x8x8xf32>
    %318 = tpu.matmul %316, %317, %cst_129 {dimension_numbers = #tpu.dot_dimension_numbers<[2], [2], [1], [1], [0, 0, 0, 1, 1, 1], [0], [0]>} : vector<2x8x8xf32>, vector<2x8x8xf32>, vector<2x8x8xf32> -> vector<2x8x8xf32>
    "tpu.trace_stop"() : () -> ()
    %cst_130 = arith.constant dense<0xFF800000> : vector<2x8xf32>
    %319 = vector.multi_reduction <maximumf>, %318, %cst_130 [2] : vector<2x8x8xf32> to vector<2x8xf32>
    %320 = vector.shape_cast %319 : vector<2x8xf32> to vector<2x8x1xf32>
    %321 = vector.broadcast %320 : vector<2x8x1xf32> to vector<2x8x8xf32>
    %322 = arith.subf %318, %321 : vector<2x8x8xf32>
    %323 = math.exp %322 : vector<2x8x8xf32>
    %cst_131 = arith.constant dense<0.000000e+00> : vector<2x8xf32>
    %324 = vector.multi_reduction <add>, %323, %cst_131 [2] : vector<2x8x8xf32> to vector<2x8xf32>
    %325 = vector.shape_cast %324 : vector<2x8xf32> to vector<2x8x1xf32>
    %326 = tpu.reciprocal %325 {approx = true} : vector<2x8x1xf32> -> vector<2x8x1xf32>
    %327 = vector.broadcast %326 : vector<2x8x1xf32> to vector<2x8x8xf32>
    %328 = arith.mulf %323, %327 : vector<2x8x8xf32>
    %329 = vector.extract_strided_slice %313 {offsets = [0, 0, 0], sizes = [2, 8, 8], strides = [1, 1, 1]} : vector<2x8x32xf32> to vector<2x8x8xf32>
    "tpu.trace_start"() <{level = 10 : i32, message = "bqk,bkd->bqd"}> : () -> ()
    %cst_132 = arith.constant dense<0.000000e+00> : vector<2x8x8xf32>
    %330 = tpu.matmul %328, %329, %cst_132 {dimension_numbers = #tpu.dot_dimension_numbers<[2], [1], [1], [2], [0, 0, 0, 1, 1, 2], [0], [0]>} : vector<2x8x8xf32>, vector<2x8x8xf32>, vector<2x8x8xf32> -> vector<2x8x8xf32>
    "tpu.trace_stop"() : () -> ()
    %331 = vector.extract_strided_slice %311 {offsets = [0, 0, 8], sizes = [2, 8, 8], strides = [1, 1, 1]} : vector<2x8x32xf32> to vector<2x8x8xf32>
    %cst_133 = arith.constant 0.353553385 : f32
    %332 = vector.broadcast %cst_133 : f32 to vector<2x8x8xf32>
    %333 = arith.mulf %331, %332 : vector<2x8x8xf32>
    %334 = vector.extract_strided_slice %312 {offsets = [0, 0, 8], sizes = [2, 8, 8], strides = [1, 1, 1]} : vector<2x8x32xf32> to vector<2x8x8xf32>
    "tpu.trace_start"() <{level = 10 : i32, message = "bqd,bkd->bqk"}> : () -> ()
    %cst_134 = arith.constant dense<0.000000e+00> : vector<2x8x8xf32>
    %335 = tpu.matmul %333, %334, %cst_134 {dimension_numbers = #tpu.dot_dimension_numbers<[2], [2], [1], [1], [0, 0, 0, 1, 1, 1], [0], [0]>} : vector<2x8x8xf32>, vector<2x8x8xf32>, vector<2x8x8xf32> -> vector<2x8x8xf32>
    "tpu.trace_stop"() : () -> ()
    %cst_135 = arith.constant dense<0xFF800000> : vector<2x8xf32>
    %336 = vector.multi_reduction <maximumf>, %335, %cst_135 [2] : vector<2x8x8xf32> to vector<2x8xf32>
    %337 = vector.shape_cast %336 : vector<2x8xf32> to vector<2x8x1xf32>
    %338 = vector.broadcast %337 : vector<2x8x1xf32> to vector<2x8x8xf32>
    %339 = arith.subf %335, %338 : vector<2x8x8xf32>
    %340 = math.exp %339 : vector<2x8x8xf32>
    %cst_136 = arith.constant dense<0.000000e+00> : vector<2x8xf32>
    %341 = vector.multi_reduction <add>, %340, %cst_136 [2] : vector<2x8x8xf32> to vector<2x8xf32>
    %342 = vector.shape_cast %341 : vector<2x8xf32> to vector<2x8x1xf32>
    %343 = tpu.reciprocal %342 {approx = true} : vector<2x8x1xf32> -> vector<2x8x1xf32>
    %344 = vector.broadcast %343 : vector<2x8x1xf32> to vector<2x8x8xf32>
    %345 = arith.mulf %340, %344 : vector<2x8x8xf32>
    %346 = vector.extract_strided_slice %313 {offsets = [0, 0, 8], sizes = [2, 8, 8], strides = [1, 1, 1]} : vector<2x8x32xf32> to vector<2x8x8xf32>
    "tpu.trace_start"() <{level = 10 : i32, message = "bqk,bkd->bqd"}> : () -> ()
    %cst_137 = arith.constant dense<0.000000e+00> : vector<2x8x8xf32>
    %347 = tpu.matmul %345, %346, %cst_137 {dimension_numbers = #tpu.dot_dimension_numbers<[2], [1], [1], [2], [0, 0, 0, 1, 1, 2], [0], [0]>} : vector<2x8x8xf32>, vector<2x8x8xf32>, vector<2x8x8xf32> -> vector<2x8x8xf32>
    "tpu.trace_stop"() : () -> ()
    %348 = vector.extract_strided_slice %311 {offsets = [0, 0, 16], sizes = [2, 8, 8], strides = [1, 1, 1]} : vector<2x8x32xf32> to vector<2x8x8xf32>
    %cst_138 = arith.constant 0.353553385 : f32
    %349 = vector.broadcast %cst_138 : f32 to vector<2x8x8xf32>
    %350 = arith.mulf %348, %349 : vector<2x8x8xf32>
    %351 = vector.extract_strided_slice %312 {offsets = [0, 0, 16], sizes = [2, 8, 8], strides = [1, 1, 1]} : vector<2x8x32xf32> to vector<2x8x8xf32>
    "tpu.trace_start"() <{level = 10 : i32, message = "bqd,bkd->bqk"}> : () -> ()
    %cst_139 = arith.constant dense<0.000000e+00> : vector<2x8x8xf32>
    %352 = tpu.matmul %350, %351, %cst_139 {dimension_numbers = #tpu.dot_dimension_numbers<[2], [2], [1], [1], [0, 0, 0, 1, 1, 1], [0], [0]>} : vector<2x8x8xf32>, vector<2x8x8xf32>, vector<2x8x8xf32> -> vector<2x8x8xf32>
    "tpu.trace_stop"() : () -> ()
    %cst_140 = arith.constant dense<0xFF800000> : vector<2x8xf32>
    %353 = vector.multi_reduction <maximumf>, %352, %cst_140 [2] : vector<2x8x8xf32> to vector<2x8xf32>
    %354 = vector.shape_cast %353 : vector<2x8xf32> to vector<2x8x1xf32>
    %355 = vector.broadcast %354 : vector<2x8x1xf32> to vector<2x8x8xf32>
    %356 = arith.subf %352, %355 : vector<2x8x8xf32>
    %357 = math.exp %356 : vector<2x8x8xf32>
    %cst_141 = arith.constant dense<0.000000e+00> : vector<2x8xf32>
    %358 = vector.multi_reduction <add>, %357, %cst_141 [2] : vector<2x8x8xf32> to vector<2x8xf32>
    %359 = vector.shape_cast %358 : vector<2x8xf32> to vector<2x8x1xf32>
    %360 = tpu.reciprocal %359 {approx = true} : vector<2x8x1xf32> -> vector<2x8x1xf32>
    %361 = vector.broadcast %360 : vector<2x8x1xf32> to vector<2x8x8xf32>
    %362 = arith.mulf %357, %361 : vector<2x8x8xf32>
    %363 = vector.extract_strided_slice %313 {offsets = [0, 0, 16], sizes = [2, 8, 8], strides = [1, 1, 1]} : vector<2x8x32xf32> to vector<2x8x8xf32>
    "tpu.trace_start"() <{level = 10 : i32, message = "bqk,bkd->bqd"}> : () -> ()
    %cst_142 = arith.constant dense<0.000000e+00> : vector<2x8x8xf32>
    %364 = tpu.matmul %362, %363, %cst_142 {dimension_numbers = #tpu.dot_dimension_numbers<[2], [1], [1], [2], [0, 0, 0, 1, 1, 2], [0], [0]>} : vector<2x8x8xf32>, vector<2x8x8xf32>, vector<2x8x8xf32> -> vector<2x8x8xf32>
    "tpu.trace_stop"() : () -> ()
    %365 = vector.extract_strided_slice %311 {offsets = [0, 0, 24], sizes = [2, 8, 8], strides = [1, 1, 1]} : vector<2x8x32xf32> to vector<2x8x8xf32>
    %cst_143 = arith.constant 0.353553385 : f32
    %366 = vector.broadcast %cst_143 : f32 to vector<2x8x8xf32>
    %367 = arith.mulf %365, %366 : vector<2x8x8xf32>
    %368 = vector.extract_strided_slice %312 {offsets = [0, 0, 24], sizes = [2, 8, 8], strides = [1, 1, 1]} : vector<2x8x32xf32> to vector<2x8x8xf32>
    "tpu.trace_start"() <{level = 10 : i32, message = "bqd,bkd->bqk"}> : () -> ()
    %cst_144 = arith.constant dense<0.000000e+00> : vector<2x8x8xf32>
    %369 = tpu.matmul %367, %368, %cst_144 {dimension_numbers = #tpu.dot_dimension_numbers<[2], [2], [1], [1], [0, 0, 0, 1, 1, 1], [0], [0]>} : vector<2x8x8xf32>, vector<2x8x8xf32>, vector<2x8x8xf32> -> vector<2x8x8xf32>
    "tpu.trace_stop"() : () -> ()
    %cst_145 = arith.constant dense<0xFF800000> : vector<2x8xf32>
    %370 = vector.multi_reduction <maximumf>, %369, %cst_145 [2] : vector<2x8x8xf32> to vector<2x8xf32>
    %371 = vector.shape_cast %370 : vector<2x8xf32> to vector<2x8x1xf32>
    %372 = vector.broadcast %371 : vector<2x8x1xf32> to vector<2x8x8xf32>
    %373 = arith.subf %369, %372 : vector<2x8x8xf32>
    %374 = math.exp %373 : vector<2x8x8xf32>
    %cst_146 = arith.constant dense<0.000000e+00> : vector<2x8xf32>
    %375 = vector.multi_reduction <add>, %374, %cst_146 [2] : vector<2x8x8xf32> to vector<2x8xf32>
    %376 = vector.shape_cast %375 : vector<2x8xf32> to vector<2x8x1xf32>
    %377 = tpu.reciprocal %376 {approx = true} : vector<2x8x1xf32> -> vector<2x8x1xf32>
    %378 = vector.broadcast %377 : vector<2x8x1xf32> to vector<2x8x8xf32>
    %379 = arith.mulf %374, %378 : vector<2x8x8xf32>
    %380 = vector.extract_strided_slice %313 {offsets = [0, 0, 24], sizes = [2, 8, 8], strides = [1, 1, 1]} : vector<2x8x32xf32> to vector<2x8x8xf32>
    "tpu.trace_start"() <{level = 10 : i32, message = "bqk,bkd->bqd"}> : () -> ()
    %cst_147 = arith.constant dense<0.000000e+00> : vector<2x8x8xf32>
    %381 = tpu.matmul %379, %380, %cst_147 {dimension_numbers = #tpu.dot_dimension_numbers<[2], [1], [1], [2], [0, 0, 0, 1, 1, 2], [0], [0]>} : vector<2x8x8xf32>, vector<2x8x8xf32>, vector<2x8x8xf32> -> vector<2x8x8xf32>
    "tpu.trace_stop"() : () -> ()
    %382 = tpu.concatenate %330, %347, %364, %381 in 2 : vector<2x8x8xf32>, vector<2x8x8xf32>, vector<2x8x8xf32>, vector<2x8x8xf32> -> vector<2x8x32xf32>
    %383 = vector.shape_cast %382 : vector<2x8x32xf32> to vector<16x32xf32>
    %c1_148 = arith.constant 1 : index
    %c0_149 = arith.constant 0 : index
    %c0_150 = arith.constant 0 : index
    %384 = vector.load %arg7[%c1_148, %c0_149, %c0_150] : memref<2x32x32xf32, #tpu.memory_space<vmem>>, vector<1x32x32xf32>
    %385 = vector.shape_cast %384 : vector<1x32x32xf32> to vector<32x32xf32>
    %c1_151 = arith.constant 1 : index
    %c0_152 = arith.constant 0 : index
    %c0_153 = arith.constant 0 : index
    %386 = vector.load %arg8[%c1_151, %c0_152, %c0_153] : memref<2x1x32xf32, #tpu.memory_space<vmem>>, vector<1x1x32xf32>
    %387 = vector.shape_cast %386 : vector<1x1x32xf32> to vector<1x32xf32>
    %cst_154 = arith.constant dense<0.000000e+00> : vector<16x32xf32>
    %388 = tpu.matmul %383, %385, %cst_154 {dimension_numbers = #tpu.dot_dimension_numbers<[1], [1], [0], [0], [0, 0, 1, 0], [], []>} : vector<16x32xf32>, vector<32x32xf32>, vector<16x32xf32> -> vector<16x32xf32>
    %389 = vector.broadcast %387 : vector<1x32xf32> to vector<16x32xf32>
    %390 = arith.addf %388, %389 : vector<16x32xf32>
    %391 = arith.addf %300, %390 : vector<16x32xf32>
    %392 = vector.extract_strided_slice %302 {offsets = [0, 0], sizes = [1, 32], strides = [1, 1]} : vector<6x32xf32> to vector<1x32xf32>
    %393 = vector.extract_strided_slice %302 {offsets = [1, 0], sizes = [1, 32], strides = [1, 1]} : vector<6x32xf32> to vector<1x32xf32>
    %cst_155 = arith.constant dense<0.000000e+00> : vector<16xf32>
    %394 = vector.multi_reduction <add>, %391, %cst_155 [1] : vector<16x32xf32> to vector<16xf32>
    %395 = vector.shape_cast %394 : vector<16xf32> to vector<16x1xf32>
    %cst_156 = arith.constant 3.200000e+01 : f32
    %396 = vector.broadcast %cst_156 : f32 to vector<16x1xf32>
    %397 = arith.divf %395, %396 : vector<16x1xf32>
    %398 = vector.broadcast %397 : vector<16x1xf32> to vector<16x32xf32>
    %399 = arith.subf %391, %398 : vector<16x32xf32>
    %400 = vector.broadcast %397 : vector<16x1xf32> to vector<16x32xf32>
    %401 = arith.subf %391, %400 : vector<16x32xf32>
    %402 = arith.mulf %399, %401 : vector<16x32xf32>
    %cst_157 = arith.constant dense<0.000000e+00> : vector<16xf32>
    %403 = vector.multi_reduction <add>, %402, %cst_157 [1] : vector<16x32xf32> to vector<16xf32>
    %404 = vector.shape_cast %403 : vector<16xf32> to vector<16x1xf32>
    %cst_158 = arith.constant 3.200000e+01 : f32
    %405 = vector.broadcast %cst_158 : f32 to vector<16x1xf32>
    %406 = arith.divf %404, %405 : vector<16x1xf32>
    %407 = vector.broadcast %397 : vector<16x1xf32> to vector<16x32xf32>
    %408 = arith.subf %391, %407 : vector<16x32xf32>
    %cst_159 = arith.constant 9.99999974E-6 : f32
    %409 = vector.broadcast %cst_159 : f32 to vector<16x1xf32>
    %410 = arith.addf %406, %409 : vector<16x1xf32>
    %411 = math.rsqrt %410 : vector<16x1xf32>
    %412 = vector.broadcast %411 : vector<16x1xf32> to vector<16x32xf32>
    %413 = arith.mulf %408, %412 : vector<16x32xf32>
    %414 = vector.broadcast %392 : vector<1x32xf32> to vector<16x32xf32>
    %415 = arith.mulf %413, %414 : vector<16x32xf32>
    %416 = vector.broadcast %393 : vector<1x32xf32> to vector<16x32xf32>
    %417 = arith.addf %415, %416 : vector<16x32xf32>
    %c1_160 = arith.constant 1 : index
    %c0_161 = arith.constant 0 : index
    %c0_162 = arith.constant 0 : index
    %418 = vector.load %arg9[%c1_160, %c0_161, %c0_162] : memref<2x32x32xf32, #tpu.memory_space<vmem>>, vector<1x32x32xf32>
    %419 = vector.shape_cast %418 : vector<1x32x32xf32> to vector<32x32xf32>
    %c1_163 = arith.constant 1 : index
    %c0_164 = arith.constant 0 : index
    %c0_165 = arith.constant 0 : index
    %420 = vector.load %arg10[%c1_163, %c0_164, %c0_165] : memref<2x1x32xf32, #tpu.memory_space<vmem>>, vector<1x1x32xf32>
    %421 = vector.shape_cast %420 : vector<1x1x32xf32> to vector<1x32xf32>
    %cst_166 = arith.constant dense<0.000000e+00> : vector<16x32xf32>
    %422 = tpu.matmul %417, %419, %cst_166 {dimension_numbers = #tpu.dot_dimension_numbers<[1], [1], [0], [0], [0, 0, 1, 0], [], []>} : vector<16x32xf32>, vector<32x32xf32>, vector<16x32xf32> -> vector<16x32xf32>
    %423 = vector.broadcast %421 : vector<1x32xf32> to vector<16x32xf32>
    %424 = arith.addf %422, %423 : vector<16x32xf32>
    %425 = vector.shape_cast %424 : vector<16x32xf32> to vector<2x8x32xf32>
    %c1_167 = arith.constant 1 : index
    %c0_168 = arith.constant 0 : index
    %c0_169 = arith.constant 0 : index
    %426 = vector.load %arg11[%c1_167, %c0_168, %c0_169] : memref<2x64x32xf32, #tpu.memory_space<vmem>>, vector<1x64x32xf32>
    %427 = vector.shape_cast %426 : vector<1x64x32xf32> to vector<64x32xf32>
    %c1_170 = arith.constant 1 : index
    %c0_171 = arith.constant 0 : index
    %c0_172 = arith.constant 0 : index
    %428 = vector.load %arg12[%c1_170, %c0_171, %c0_172] : memref<2x1x64xf32, #tpu.memory_space<vmem>>, vector<1x1x64xf32>
    %429 = vector.shape_cast %428 : vector<1x1x64xf32> to vector<1x64xf32>
    %cst_173 = arith.constant dense<0.000000e+00> : vector<32x64xf32>
    %430 = tpu.matmul %8, %427, %cst_173 {dimension_numbers = #tpu.dot_dimension_numbers<[1], [1], [0], [0], [0, 0, 1, 0], [], []>} : vector<32x32xf32>, vector<64x32xf32>, vector<32x64xf32> -> vector<32x64xf32>
    %431 = vector.broadcast %429 : vector<1x64xf32> to vector<32x64xf32>
    %432 = arith.addf %430, %431 : vector<32x64xf32>
    %433 = vector.shape_cast %432 : vector<32x64xf32> to vector<2x16x64xf32>
    %434 = vector.extract_strided_slice %433 {offsets = [0, 0, 0], sizes = [2, 16, 32], strides = [1, 1, 1]} : vector<2x16x64xf32> to vector<2x16x32xf32>
    %435 = vector.extract_strided_slice %433 {offsets = [0, 0, 32], sizes = [2, 16, 32], strides = [1, 1, 1]} : vector<2x16x64xf32> to vector<2x16x32xf32>
    %436 = vector.extract_strided_slice %425 {offsets = [0, 0, 0], sizes = [2, 8, 8], strides = [1, 1, 1]} : vector<2x8x32xf32> to vector<2x8x8xf32>
    %cst_174 = arith.constant 0.353553385 : f32
    %437 = vector.broadcast %cst_174 : f32 to vector<2x8x8xf32>
    %438 = arith.mulf %436, %437 : vector<2x8x8xf32>
    %439 = vector.extract_strided_slice %434 {offsets = [0, 0, 0], sizes = [2, 16, 8], strides = [1, 1, 1]} : vector<2x16x32xf32> to vector<2x16x8xf32>
    "tpu.trace_start"() <{level = 10 : i32, message = "bqd,bkd->bqk"}> : () -> ()
    %cst_175 = arith.constant dense<0.000000e+00> : vector<2x8x16xf32>
    %440 = tpu.matmul %438, %439, %cst_175 {dimension_numbers = #tpu.dot_dimension_numbers<[2], [2], [1], [1], [0, 0, 0, 1, 1, 1], [0], [0]>} : vector<2x8x8xf32>, vector<2x16x8xf32>, vector<2x8x16xf32> -> vector<2x8x16xf32>
    "tpu.trace_stop"() : () -> ()
    %441 = arith.addf %440, %14 : vector<2x8x16xf32>
    %cst_176 = arith.constant dense<0xFF800000> : vector<2x8xf32>
    %442 = vector.multi_reduction <maximumf>, %441, %cst_176 [2] : vector<2x8x16xf32> to vector<2x8xf32>
    %443 = vector.shape_cast %442 : vector<2x8xf32> to vector<2x8x1xf32>
    %444 = vector.broadcast %443 : vector<2x8x1xf32> to vector<2x8x16xf32>
    %445 = arith.subf %441, %444 : vector<2x8x16xf32>
    %446 = math.exp %445 : vector<2x8x16xf32>
    %cst_177 = arith.constant dense<0.000000e+00> : vector<2x8xf32>
    %447 = vector.multi_reduction <add>, %446, %cst_177 [2] : vector<2x8x16xf32> to vector<2x8xf32>
    %448 = vector.shape_cast %447 : vector<2x8xf32> to vector<2x8x1xf32>
    %449 = tpu.reciprocal %448 {approx = true} : vector<2x8x1xf32> -> vector<2x8x1xf32>
    %450 = vector.broadcast %449 : vector<2x8x1xf32> to vector<2x8x16xf32>
    %451 = arith.mulf %446, %450 : vector<2x8x16xf32>
    %452 = vector.extract_strided_slice %435 {offsets = [0, 0, 0], sizes = [2, 16, 8], strides = [1, 1, 1]} : vector<2x16x32xf32> to vector<2x16x8xf32>
    "tpu.trace_start"() <{level = 10 : i32, message = "bqk,bkd->bqd"}> : () -> ()
    %cst_178 = arith.constant dense<0.000000e+00> : vector<2x8x8xf32>
    %453 = tpu.matmul %451, %452, %cst_178 {dimension_numbers = #tpu.dot_dimension_numbers<[2], [1], [1], [2], [0, 0, 0, 1, 1, 2], [0], [0]>} : vector<2x8x16xf32>, vector<2x16x8xf32>, vector<2x8x8xf32> -> vector<2x8x8xf32>
    "tpu.trace_stop"() : () -> ()
    %454 = vector.extract_strided_slice %425 {offsets = [0, 0, 8], sizes = [2, 8, 8], strides = [1, 1, 1]} : vector<2x8x32xf32> to vector<2x8x8xf32>
    %cst_179 = arith.constant 0.353553385 : f32
    %455 = vector.broadcast %cst_179 : f32 to vector<2x8x8xf32>
    %456 = arith.mulf %454, %455 : vector<2x8x8xf32>
    %457 = vector.extract_strided_slice %434 {offsets = [0, 0, 8], sizes = [2, 16, 8], strides = [1, 1, 1]} : vector<2x16x32xf32> to vector<2x16x8xf32>
    "tpu.trace_start"() <{level = 10 : i32, message = "bqd,bkd->bqk"}> : () -> ()
    %cst_180 = arith.constant dense<0.000000e+00> : vector<2x8x16xf32>
    %458 = tpu.matmul %456, %457, %cst_180 {dimension_numbers = #tpu.dot_dimension_numbers<[2], [2], [1], [1], [0, 0, 0, 1, 1, 1], [0], [0]>} : vector<2x8x8xf32>, vector<2x16x8xf32>, vector<2x8x16xf32> -> vector<2x8x16xf32>
    "tpu.trace_stop"() : () -> ()
    %459 = arith.addf %458, %14 : vector<2x8x16xf32>
    %cst_181 = arith.constant dense<0xFF800000> : vector<2x8xf32>
    %460 = vector.multi_reduction <maximumf>, %459, %cst_181 [2] : vector<2x8x16xf32> to vector<2x8xf32>
    %461 = vector.shape_cast %460 : vector<2x8xf32> to vector<2x8x1xf32>
    %462 = vector.broadcast %461 : vector<2x8x1xf32> to vector<2x8x16xf32>
    %463 = arith.subf %459, %462 : vector<2x8x16xf32>
    %464 = math.exp %463 : vector<2x8x16xf32>
    %cst_182 = arith.constant dense<0.000000e+00> : vector<2x8xf32>
    %465 = vector.multi_reduction <add>, %464, %cst_182 [2] : vector<2x8x16xf32> to vector<2x8xf32>
    %466 = vector.shape_cast %465 : vector<2x8xf32> to vector<2x8x1xf32>
    %467 = tpu.reciprocal %466 {approx = true} : vector<2x8x1xf32> -> vector<2x8x1xf32>
    %468 = vector.broadcast %467 : vector<2x8x1xf32> to vector<2x8x16xf32>
    %469 = arith.mulf %464, %468 : vector<2x8x16xf32>
    %470 = vector.extract_strided_slice %435 {offsets = [0, 0, 8], sizes = [2, 16, 8], strides = [1, 1, 1]} : vector<2x16x32xf32> to vector<2x16x8xf32>
    "tpu.trace_start"() <{level = 10 : i32, message = "bqk,bkd->bqd"}> : () -> ()
    %cst_183 = arith.constant dense<0.000000e+00> : vector<2x8x8xf32>
    %471 = tpu.matmul %469, %470, %cst_183 {dimension_numbers = #tpu.dot_dimension_numbers<[2], [1], [1], [2], [0, 0, 0, 1, 1, 2], [0], [0]>} : vector<2x8x16xf32>, vector<2x16x8xf32>, vector<2x8x8xf32> -> vector<2x8x8xf32>
    "tpu.trace_stop"() : () -> ()
    %472 = vector.extract_strided_slice %425 {offsets = [0, 0, 16], sizes = [2, 8, 8], strides = [1, 1, 1]} : vector<2x8x32xf32> to vector<2x8x8xf32>
    %cst_184 = arith.constant 0.353553385 : f32
    %473 = vector.broadcast %cst_184 : f32 to vector<2x8x8xf32>
    %474 = arith.mulf %472, %473 : vector<2x8x8xf32>
    %475 = vector.extract_strided_slice %434 {offsets = [0, 0, 16], sizes = [2, 16, 8], strides = [1, 1, 1]} : vector<2x16x32xf32> to vector<2x16x8xf32>
    "tpu.trace_start"() <{level = 10 : i32, message = "bqd,bkd->bqk"}> : () -> ()
    %cst_185 = arith.constant dense<0.000000e+00> : vector<2x8x16xf32>
    %476 = tpu.matmul %474, %475, %cst_185 {dimension_numbers = #tpu.dot_dimension_numbers<[2], [2], [1], [1], [0, 0, 0, 1, 1, 1], [0], [0]>} : vector<2x8x8xf32>, vector<2x16x8xf32>, vector<2x8x16xf32> -> vector<2x8x16xf32>
    "tpu.trace_stop"() : () -> ()
    %477 = arith.addf %476, %14 : vector<2x8x16xf32>
    %cst_186 = arith.constant dense<0xFF800000> : vector<2x8xf32>
    %478 = vector.multi_reduction <maximumf>, %477, %cst_186 [2] : vector<2x8x16xf32> to vector<2x8xf32>
    %479 = vector.shape_cast %478 : vector<2x8xf32> to vector<2x8x1xf32>
    %480 = vector.broadcast %479 : vector<2x8x1xf32> to vector<2x8x16xf32>
    %481 = arith.subf %477, %480 : vector<2x8x16xf32>
    %482 = math.exp %481 : vector<2x8x16xf32>
    %cst_187 = arith.constant dense<0.000000e+00> : vector<2x8xf32>
    %483 = vector.multi_reduction <add>, %482, %cst_187 [2] : vector<2x8x16xf32> to vector<2x8xf32>
    %484 = vector.shape_cast %483 : vector<2x8xf32> to vector<2x8x1xf32>
    %485 = tpu.reciprocal %484 {approx = true} : vector<2x8x1xf32> -> vector<2x8x1xf32>
    %486 = vector.broadcast %485 : vector<2x8x1xf32> to vector<2x8x16xf32>
    %487 = arith.mulf %482, %486 : vector<2x8x16xf32>
    %488 = vector.extract_strided_slice %435 {offsets = [0, 0, 16], sizes = [2, 16, 8], strides = [1, 1, 1]} : vector<2x16x32xf32> to vector<2x16x8xf32>
    "tpu.trace_start"() <{level = 10 : i32, message = "bqk,bkd->bqd"}> : () -> ()
    %cst_188 = arith.constant dense<0.000000e+00> : vector<2x8x8xf32>
    %489 = tpu.matmul %487, %488, %cst_188 {dimension_numbers = #tpu.dot_dimension_numbers<[2], [1], [1], [2], [0, 0, 0, 1, 1, 2], [0], [0]>} : vector<2x8x16xf32>, vector<2x16x8xf32>, vector<2x8x8xf32> -> vector<2x8x8xf32>
    "tpu.trace_stop"() : () -> ()
    %490 = vector.extract_strided_slice %425 {offsets = [0, 0, 24], sizes = [2, 8, 8], strides = [1, 1, 1]} : vector<2x8x32xf32> to vector<2x8x8xf32>
    %cst_189 = arith.constant 0.353553385 : f32
    %491 = vector.broadcast %cst_189 : f32 to vector<2x8x8xf32>
    %492 = arith.mulf %490, %491 : vector<2x8x8xf32>
    %493 = vector.extract_strided_slice %434 {offsets = [0, 0, 24], sizes = [2, 16, 8], strides = [1, 1, 1]} : vector<2x16x32xf32> to vector<2x16x8xf32>
    "tpu.trace_start"() <{level = 10 : i32, message = "bqd,bkd->bqk"}> : () -> ()
    %cst_190 = arith.constant dense<0.000000e+00> : vector<2x8x16xf32>
    %494 = tpu.matmul %492, %493, %cst_190 {dimension_numbers = #tpu.dot_dimension_numbers<[2], [2], [1], [1], [0, 0, 0, 1, 1, 1], [0], [0]>} : vector<2x8x8xf32>, vector<2x16x8xf32>, vector<2x8x16xf32> -> vector<2x8x16xf32>
    "tpu.trace_stop"() : () -> ()
    %495 = arith.addf %494, %14 : vector<2x8x16xf32>
    %cst_191 = arith.constant dense<0xFF800000> : vector<2x8xf32>
    %496 = vector.multi_reduction <maximumf>, %495, %cst_191 [2] : vector<2x8x16xf32> to vector<2x8xf32>
    %497 = vector.shape_cast %496 : vector<2x8xf32> to vector<2x8x1xf32>
    %498 = vector.broadcast %497 : vector<2x8x1xf32> to vector<2x8x16xf32>
    %499 = arith.subf %495, %498 : vector<2x8x16xf32>
    %500 = math.exp %499 : vector<2x8x16xf32>
    %cst_192 = arith.constant dense<0.000000e+00> : vector<2x8xf32>
    %501 = vector.multi_reduction <add>, %500, %cst_192 [2] : vector<2x8x16xf32> to vector<2x8xf32>
    %502 = vector.shape_cast %501 : vector<2x8xf32> to vector<2x8x1xf32>
    %503 = tpu.reciprocal %502 {approx = true} : vector<2x8x1xf32> -> vector<2x8x1xf32>
    %504 = vector.broadcast %503 : vector<2x8x1xf32> to vector<2x8x16xf32>
    %505 = arith.mulf %500, %504 : vector<2x8x16xf32>
    %506 = vector.extract_strided_slice %435 {offsets = [0, 0, 24], sizes = [2, 16, 8], strides = [1, 1, 1]} : vector<2x16x32xf32> to vector<2x16x8xf32>
    "tpu.trace_start"() <{level = 10 : i32, message = "bqk,bkd->bqd"}> : () -> ()
    %cst_193 = arith.constant dense<0.000000e+00> : vector<2x8x8xf32>
    %507 = tpu.matmul %505, %506, %cst_193 {dimension_numbers = #tpu.dot_dimension_numbers<[2], [1], [1], [2], [0, 0, 0, 1, 1, 2], [0], [0]>} : vector<2x8x16xf32>, vector<2x16x8xf32>, vector<2x8x8xf32> -> vector<2x8x8xf32>
    "tpu.trace_stop"() : () -> ()
    %508 = tpu.concatenate %453, %471, %489, %507 in 2 : vector<2x8x8xf32>, vector<2x8x8xf32>, vector<2x8x8xf32>, vector<2x8x8xf32> -> vector<2x8x32xf32>
    %509 = vector.shape_cast %508 : vector<2x8x32xf32> to vector<16x32xf32>
    %c1_194 = arith.constant 1 : index
    %c0_195 = arith.constant 0 : index
    %c0_196 = arith.constant 0 : index
    %510 = vector.load %arg13[%c1_194, %c0_195, %c0_196] : memref<2x32x32xf32, #tpu.memory_space<vmem>>, vector<1x32x32xf32>
    %511 = vector.shape_cast %510 : vector<1x32x32xf32> to vector<32x32xf32>
    %c1_197 = arith.constant 1 : index
    %c0_198 = arith.constant 0 : index
    %c0_199 = arith.constant 0 : index
    %512 = vector.load %arg14[%c1_197, %c0_198, %c0_199] : memref<2x1x32xf32, #tpu.memory_space<vmem>>, vector<1x1x32xf32>
    %513 = vector.shape_cast %512 : vector<1x1x32xf32> to vector<1x32xf32>
    %cst_200 = arith.constant dense<0.000000e+00> : vector<16x32xf32>
    %514 = tpu.matmul %509, %511, %cst_200 {dimension_numbers = #tpu.dot_dimension_numbers<[1], [1], [0], [0], [0, 0, 1, 0], [], []>} : vector<16x32xf32>, vector<32x32xf32>, vector<16x32xf32> -> vector<16x32xf32>
    %515 = vector.broadcast %513 : vector<1x32xf32> to vector<16x32xf32>
    %516 = arith.addf %514, %515 : vector<16x32xf32>
    %517 = arith.addf %417, %516 : vector<16x32xf32>
    %518 = vector.extract_strided_slice %302 {offsets = [2, 0], sizes = [1, 32], strides = [1, 1]} : vector<6x32xf32> to vector<1x32xf32>
    %519 = vector.extract_strided_slice %302 {offsets = [3, 0], sizes = [1, 32], strides = [1, 1]} : vector<6x32xf32> to vector<1x32xf32>
    %cst_201 = arith.constant dense<0.000000e+00> : vector<16xf32>
    %520 = vector.multi_reduction <add>, %517, %cst_201 [1] : vector<16x32xf32> to vector<16xf32>
    %521 = vector.shape_cast %520 : vector<16xf32> to vector<16x1xf32>
    %cst_202 = arith.constant 3.200000e+01 : f32
    %522 = vector.broadcast %cst_202 : f32 to vector<16x1xf32>
    %523 = arith.divf %521, %522 : vector<16x1xf32>
    %524 = vector.broadcast %523 : vector<16x1xf32> to vector<16x32xf32>
    %525 = arith.subf %517, %524 : vector<16x32xf32>
    %526 = vector.broadcast %523 : vector<16x1xf32> to vector<16x32xf32>
    %527 = arith.subf %517, %526 : vector<16x32xf32>
    %528 = arith.mulf %525, %527 : vector<16x32xf32>
    %cst_203 = arith.constant dense<0.000000e+00> : vector<16xf32>
    %529 = vector.multi_reduction <add>, %528, %cst_203 [1] : vector<16x32xf32> to vector<16xf32>
    %530 = vector.shape_cast %529 : vector<16xf32> to vector<16x1xf32>
    %cst_204 = arith.constant 3.200000e+01 : f32
    %531 = vector.broadcast %cst_204 : f32 to vector<16x1xf32>
    %532 = arith.divf %530, %531 : vector<16x1xf32>
    %533 = vector.broadcast %523 : vector<16x1xf32> to vector<16x32xf32>
    %534 = arith.subf %517, %533 : vector<16x32xf32>
    %cst_205 = arith.constant 9.99999974E-6 : f32
    %535 = vector.broadcast %cst_205 : f32 to vector<16x1xf32>
    %536 = arith.addf %532, %535 : vector<16x1xf32>
    %537 = math.rsqrt %536 : vector<16x1xf32>
    %538 = vector.broadcast %537 : vector<16x1xf32> to vector<16x32xf32>
    %539 = arith.mulf %534, %538 : vector<16x32xf32>
    %540 = vector.broadcast %518 : vector<1x32xf32> to vector<16x32xf32>
    %541 = arith.mulf %539, %540 : vector<16x32xf32>
    %542 = vector.broadcast %519 : vector<1x32xf32> to vector<16x32xf32>
    %543 = arith.addf %541, %542 : vector<16x32xf32>
    %c1_206 = arith.constant 1 : index
    %c0_207 = arith.constant 0 : index
    %c0_208 = arith.constant 0 : index
    %544 = vector.load %arg15[%c1_206, %c0_207, %c0_208] : memref<2x128x32xf32, #tpu.memory_space<vmem>>, vector<1x128x32xf32>
    %545 = vector.shape_cast %544 : vector<1x128x32xf32> to vector<128x32xf32>
    %c1_209 = arith.constant 1 : index
    %c0_210 = arith.constant 0 : index
    %c0_211 = arith.constant 0 : index
    %546 = vector.load %arg16[%c1_209, %c0_210, %c0_211] : memref<2x1x128xf32, #tpu.memory_space<vmem>>, vector<1x1x128xf32>
    %547 = vector.shape_cast %546 : vector<1x1x128xf32> to vector<1x128xf32>
    %cst_212 = arith.constant dense<0.000000e+00> : vector<16x128xf32>
    %548 = tpu.matmul %543, %545, %cst_212 {dimension_numbers = #tpu.dot_dimension_numbers<[1], [1], [0], [0], [0, 0, 1, 0], [], []>} : vector<16x32xf32>, vector<128x32xf32>, vector<16x128xf32> -> vector<16x128xf32>
    %549 = vector.broadcast %547 : vector<1x128xf32> to vector<16x128xf32>
    %550 = arith.addf %548, %549 : vector<16x128xf32>
    %cst_213 = arith.constant 0.000000e+00 : f32
    %551 = vector.broadcast %cst_213 : f32 to vector<16x128xf32>
    %552 = arith.maximumf %550, %551 : vector<16x128xf32>
    %c1_214 = arith.constant 1 : index
    %c0_215 = arith.constant 0 : index
    %c0_216 = arith.constant 0 : index
    %553 = vector.load %arg17[%c1_214, %c0_215, %c0_216] : memref<2x32x128xf32, #tpu.memory_space<vmem>>, vector<1x32x128xf32>
    %554 = vector.shape_cast %553 : vector<1x32x128xf32> to vector<32x128xf32>
    %c1_217 = arith.constant 1 : index
    %c0_218 = arith.constant 0 : index
    %c0_219 = arith.constant 0 : index
    %555 = vector.load %arg18[%c1_217, %c0_218, %c0_219] : memref<2x1x32xf32, #tpu.memory_space<vmem>>, vector<1x1x32xf32>
    %556 = vector.shape_cast %555 : vector<1x1x32xf32> to vector<1x32xf32>
    %cst_220 = arith.constant dense<0.000000e+00> : vector<16x32xf32>
    %557 = tpu.matmul %552, %554, %cst_220 {dimension_numbers = #tpu.dot_dimension_numbers<[1], [1], [0], [0], [0, 0, 1, 0], [], []>} : vector<16x128xf32>, vector<32x128xf32>, vector<16x32xf32> -> vector<16x32xf32>
    %558 = vector.broadcast %556 : vector<1x32xf32> to vector<16x32xf32>
    %559 = arith.addf %557, %558 : vector<16x32xf32>
    %560 = arith.addf %543, %559 : vector<16x32xf32>
    %561 = vector.extract_strided_slice %302 {offsets = [4, 0], sizes = [1, 32], strides = [1, 1]} : vector<6x32xf32> to vector<1x32xf32>
    %562 = vector.extract_strided_slice %302 {offsets = [5, 0], sizes = [1, 32], strides = [1, 1]} : vector<6x32xf32> to vector<1x32xf32>
    %cst_221 = arith.constant dense<0.000000e+00> : vector<16xf32>
    %563 = vector.multi_reduction <add>, %560, %cst_221 [1] : vector<16x32xf32> to vector<16xf32>
    %564 = vector.shape_cast %563 : vector<16xf32> to vector<16x1xf32>
    %cst_222 = arith.constant 3.200000e+01 : f32
    %565 = vector.broadcast %cst_222 : f32 to vector<16x1xf32>
    %566 = arith.divf %564, %565 : vector<16x1xf32>
    %567 = vector.broadcast %566 : vector<16x1xf32> to vector<16x32xf32>
    %568 = arith.subf %560, %567 : vector<16x32xf32>
    %569 = vector.broadcast %566 : vector<16x1xf32> to vector<16x32xf32>
    %570 = arith.subf %560, %569 : vector<16x32xf32>
    %571 = arith.mulf %568, %570 : vector<16x32xf32>
    %cst_223 = arith.constant dense<0.000000e+00> : vector<16xf32>
    %572 = vector.multi_reduction <add>, %571, %cst_223 [1] : vector<16x32xf32> to vector<16xf32>
    %573 = vector.shape_cast %572 : vector<16xf32> to vector<16x1xf32>
    %cst_224 = arith.constant 3.200000e+01 : f32
    %574 = vector.broadcast %cst_224 : f32 to vector<16x1xf32>
    %575 = arith.divf %573, %574 : vector<16x1xf32>
    %576 = vector.broadcast %566 : vector<16x1xf32> to vector<16x32xf32>
    %577 = arith.subf %560, %576 : vector<16x32xf32>
    %cst_225 = arith.constant 9.99999974E-6 : f32
    %578 = vector.broadcast %cst_225 : f32 to vector<16x1xf32>
    %579 = arith.addf %575, %578 : vector<16x1xf32>
    %580 = math.rsqrt %579 : vector<16x1xf32>
    %581 = vector.broadcast %580 : vector<16x1xf32> to vector<16x32xf32>
    %582 = arith.mulf %577, %581 : vector<16x32xf32>
    %583 = vector.broadcast %561 : vector<1x32xf32> to vector<16x32xf32>
    %584 = arith.mulf %582, %583 : vector<16x32xf32>
    %585 = vector.broadcast %562 : vector<1x32xf32> to vector<16x32xf32>
    %586 = arith.addf %584, %585 : vector<16x32xf32>
    %c0_226 = arith.constant 0 : index
    %c0_227 = arith.constant 0 : index
    %587 = vector.load %arg20[%c0_226, %c0_227] : memref<128x32xf32, #tpu.memory_space<vmem>>, vector<128x32xf32>
    %c0_228 = arith.constant 0 : index
    %c0_229 = arith.constant 0 : index
    %588 = vector.load %arg21[%c0_228, %c0_229] : memref<1x128xf32, #tpu.memory_space<vmem>>, vector<1x128xf32>
    %cst_230 = arith.constant dense<0.000000e+00> : vector<16x128xf32>
    %589 = tpu.matmul %586, %587, %cst_230 {dimension_numbers = #tpu.dot_dimension_numbers<[1], [1], [0], [0], [0, 0, 1, 0], [], []>} : vector<16x32xf32>, vector<128x32xf32>, vector<16x128xf32> -> vector<16x128xf32>
    %590 = vector.broadcast %588 : vector<1x128xf32> to vector<16x128xf32>
    %591 = arith.addf %589, %590 : vector<16x128xf32>
    %c0_231 = arith.constant 0 : index
    %c0_232 = arith.constant 0 : index
    %592 = vector.load %arg22[%c0_231, %c0_232] : memref<16x128xf32, #tpu.memory_space<vmem>>, vector<16x128xf32>
    tpu.vector_store %arg22[%c0_231, %c0_232], %591 {strides = array<i32>} : memref<16x128xf32, #tpu.memory_space<vmem>>, vector<16x128xf32>,
    return
  }
}

</mosaic_0001>

<bundles_post_ra>
// kernel: tpu_custom_call.1
= control target key start
LH: loop header
LB: loop body
LE: loop exit
PB: predicated region body
PF: predicated region fallthrough
CT: control target
= control target key end

     0   :  { %s11081_s0 = inlined_call_operand.vmem [shape: f32[16,2], index: 0, kind: input, shape index: {}]   ;;  %s11082_s1 = inlined_call_operand.vmem [shape: f32[32,32], index: 1, kind: input, shape index: {}]   ;;  %s11083_s2 = inlined_call_operand.vmem [shape: f32[16,32], index: 2, kind: input, shape index: {}]   ;;  %s11084_s3 = inlined_call_operand.vmem [shape: f32[32,2], index: 3, kind: input, shape index: {}]   ;;  %s11085_s4 = inlined_call_operand.vmem [shape: f32[1,32], index: 4, kind: input, shape index: {}]   ;;  %s11086_s5 = inlined_call_operand.vmem [shape: f32[2,96,32], index: 5, kind: input, shape index: {}]   ;;  %s11087_s6 = inlined_call_operand.vmem [shape: f32[2,1,96], index: 6, kind: input, shape index: {}]   ;;  %s11088_s7 = inlined_call_operand.vmem [shape: f32[2,32,32], index: 7, kind: input, shape index: {}]   ;;  %s11089_s8 = inlined_call_operand.vmem [shape: f32[2,1,32], index: 8, kind: input, shape index: {}]   ;;  %s11090_s9 = inlined_call_operand.vmem [shape: f32[2,32,32], index: 9, kind: input, shape index: {}]   ;;  %s11091_s10 = inlined_call_operand.vmem [shape: f32[2,1,32], index: 10, kind: input, shape index: {}]   ;;  %s11092_s11 = inlined_call_operand.vmem [shape: f32[2,64,32], index: 11, kind: input, shape index: {}]   ;;  %s11093_s12 = inlined_call_operand.vmem [shape: f32[2,1,64], index: 12, kind: input, shape index: {}]   ;;  %s11094_s13 = inlined_call_operand.vmem [shape: f32[2,32,32], index: 13, kind: input, shape index: {}]   ;;  %s11095_s14 = inlined_call_operand.vmem [shape: f32[2,1,32], index: 14, kind: input, shape index: {}]   ;;  %s11096_s15 = inlined_call_operand.vmem [shape: f32[2,128,32], index: 15, kind: input, shape index: {}]   ;;  %s11097_s16 = inlined_call_operand.vmem [shape: f32[2,1,128], index: 16, kind: input, shape index: {}]   ;;  %s11098_s17 = inlined_call_operand.vmem [shape: f32[2,32,128], index: 17, kind: input, shape index: {}]   ;;  %s11099_s18 = inlined_call_operand.vmem [shape: f32[2,1,32], index: 18, kind: input, shape index: {}]   ;;  %s11100_s19 = inlined_call_operand.vmem [shape: f32[2,6,32], index: 19, kind: input, shape index: {}]   ;;  %s11101_s20 = inlined_call_operand.vmem [shape: f32[128,32], index: 20, kind: input, shape index: {}]   ;;  %s11102_s21 = inlined_call_operand.vmem [shape: f32[1,128], index: 21, kind: input, shape index: {}]   ;;  %s11103_s22 = inlined_call_operand.hbm [shape: f32[16,128], index: 22, kind: output, shape index: {}]  }
   0x1   :  { %11138 = sst [smem:[#allocation5_spill]] %s11081_s0 }
   0x2   :  { %11139 = sst [smem:[#allocation6_spill]] %s11082_s1 }
   0x3   :  { %11140 = sst [smem:[#allocation7_spill]] %s11083_s2 }
   0x4   :  { %11141 = sst [smem:[#allocation8_spill]] %s11084_s3 }
   0x5   :  { %11142 = sst [smem:[#allocation9_spill]] %s11085_s4 }
   0x6   :  { %11143 = sst [smem:[#allocation10_spill]] %s11086_s5 }
   0x7   :  { %11144 = sst [smem:[#allocation11_spill]] %s11087_s6 }
   0x8   :  { %11145 = sst [smem:[#allocation12_spill]] %s11102_s21 }
   0x9   :  { %11146 = sst [smem:[#allocation13_spill]] %s11103_s22 }
   0xa   :  { %s11147_s29 = sld [smem:[#allocation8_spill]]  ;;  %vm85_vm0 = vcmask 15360  }
   0xb   :  { %s11148_s1 = sld [smem:[#allocation5_spill]] }
  0x10   :  { %v77_v0 = vld [vmem:[%s11147_s29 + $0x18] sm:$0xff]  ;;  %v76_v1 = vld [vmem:[%s11147_s29 + $0x10] sm:$0xff]  ;;  %v75_v3 = vld [vmem:[%s11147_s29 + $0x8] sm:$0xff] }
  0x11   :  { %8423 = vmatprep.subr.msk.mxu1 %vm85_vm0, %v77_v0  ;;  %v72_v2 = vld [vmem:[%s11148_s1] sm:$0xff] }
  0x12   :  { %8424 = vmatpush3.xpose.msk.msra.mxu1 %vm85_vm0, %v77_v0  ;;  %8431 = vmatprep.mubr.msk.f32.mxu1 %vm85_vm0, %v72_v2 }
  0x13   :  { %8425 = vmatprep.subr.msk.mxu1 %vm85_vm0, %v76_v1 }
  0x14   :  { %27 = vsyncpa [#allocation3], 0  ;;  %v74_v4 = vld [vmem:[%s11147_s29] sm:$0xff]  ;;  %s11149_s27 = sld [smem:[#allocation10_spill]]  ;;  %vm211_vm1 = vcmask 261120   ;;  %v73_v6 = vld [vmem:[%s11148_s1 + $0x8] sm:$0xff] }
  0x15   :  { %s11150_s26 = sld [smem:[#allocation9_spill]]  ;;  %v9308_v27 = vmov 0.0   ;;  %vm9309_vm2 = vmmov 0   ;;  %s11136_s1 = smov 96   ;;  %vm334_vm3 = vcmask 64512   ;;  %vm1678_vm4 = vcmask 130048  }
  0x16   :  { %8426 = vmatpush3.xpose.msk.msra.mxu1 %vm85_vm0, %v76_v1  ;;  %s11151_s28 = sld [smem:[#allocation7_spill]]  ;;  %8461 = vmatprep.subr.mxu0 %v9308_v27  ;;  %s11116_s5 = smov 64   ;;  %vm1681_vm5 = vcmask 195584  }
  0x17   :  { %8427 = vmatprep.subr.msk.mxu1 %vm85_vm0, %v75_v3  ;;  %8463 = vmatprep.mubr.msk.f32.mxu0 %vm9309_vm2, %v9308_v27  ;;  %s11152_s23 = sld [smem:[#allocation11_spill]]  ;;  %s11134_s24 = smov 88  }
  0x18   :  { %s11132_s6 = smov 120   ;;  %s11112_s25 = smov 56  }
  0x19   :  { %s11130_s2 = smov 112   ;;  %s11110_s3 = smov 48  }
  0x1a   :  { %8428 = vmatpush3.xpose.msk.msra.mxu1 %vm85_vm0, %v75_v3  ;;  %v203_v5 = vld [vmem:[%s11149_s27 + $0x58] sm:$0xff]  ;;  %v202_v7 = vld [vmem:[%s11149_s27 + $0x50] sm:$0xff]  ;;  %v201_v8 = vld [vmem:[%s11149_s27 + $0x48] sm:$0xff]  ;;  %s11126_s30 = smov 104   ;;  %s11114_s4 = smov 40  }
  0x1b   :  { %8429 = vmatprep.subr.msk.mxu1 %vm85_vm0, %v74_v4  ;;  %v200_v9 = vld [vmem:[%s11149_s27 + $0x40] sm:$0xff]  ;;  %v199_v10 = vld [vmem:[%s11149_s27 + $0x38] sm:$0xff]  ;;  %v198_v11 = vld [vmem:[%s11149_s27 + $0x30] sm:$0xff]  ;;  %s11120_s29 = smov 8   ;;  %s11118_s0 = smov 16  }
  0x1c   :  { %v197_v12 = vld [vmem:[%s11149_s27 + $0x28] sm:$0xff]  ;;  %v196_v13 = vld [vmem:[%s11149_s27 + $0x20] sm:$0xff]  ;;  %v195_v14 = vld [vmem:[%s11149_s27 + $0x18] sm:$0xff] }
  0x1d   :  { %v194_v15 = vld [vmem:[%s11149_s27 + $0x10] sm:$0xff]  ;;  %v193_v16 = vld [vmem:[%s11149_s27 + $0x8] sm:$0xff]  ;;  %v192_v17 = vld [vmem:[%s11149_s27] sm:$0xff] }
  0x1e   :  { %8430 = vmatpush3.xpose.msk.msra.mxu1 %vm85_vm0, %v74_v4  ;;  %v7767_v18 = vld [vmem:[%s11150_s26] ss:$0 sm:$0xff]  ;;  %v180_v23 = vld [vmem:[%s11151_s28 + $0x8] sm:$0xff]  ;;  %s11128_s26 = smov 80  }
  0x1f   :  { %8434 = vmatprep.subr.msk.mxu1 %vm211_vm1, %v203_v5  ;;  %v179_v22 = vld [vmem:[%s11151_s28] sm:$0xff]  ;;  %s11124_s28 = smov 72  }
  0x20   :  { %v7774_v29 = vld [vmem:[%s11152_s23] ss:$0 sm:$0xff] }
  0x21   :  { %8432 = vmatmul.mubr.msk.f32.vlgmr.msra.gmra.mxu1 %vm85_vm0, %v73_v6 }
  0x22   :  { %8435 = vmatpush3.xpose.msk.msra.mxu1 %vm211_vm1, %v203_v5 }
  0x23   :  { %8436 = vmatprep.subr.msk.mxu1 %vm211_vm1, %v202_v7 }
  0x26   :  { %8437 = vmatpush3.xpose.msk.msra.mxu1 %vm211_vm1, %v202_v7 }
  0x27   :  { %8438 = vmatprep.subr.msk.mxu1 %vm211_vm1, %v201_v8 }
  0x2a   :  { %8439 = vmatpush3.xpose.msk.msra.mxu1 %vm211_vm1, %v201_v8 }
  0x2b   :  { %8440 = vmatprep.subr.msk.mxu1 %vm211_vm1, %v200_v9 }
  0x2e   :  { %8441 = vmatpush3.xpose.msk.msra.mxu1 %vm211_vm1, %v200_v9 }
  0x2f   :  { %8442 = vmatprep.subr.msk.mxu1 %vm211_vm1, %v199_v10 }
  0x32   :  { %8443 = vmatpush3.xpose.msk.msra.mxu1 %vm211_vm1, %v199_v10 }
  0x33   :  { %8444 = vmatprep.subr.msk.mxu1 %vm211_vm1, %v198_v11 }
  0x36   :  { %8445 = vmatpush3.xpose.msk.msra.mxu1 %vm211_vm1, %v198_v11 }
  0x37   :  { %8446 = vmatprep.subr.msk.mxu1 %vm211_vm1, %v197_v12 }
  0x3a   :  { %8447 = vmatpush3.xpose.msk.msra.mxu1 %vm211_vm1, %v197_v12 }
  0x3b   :  { %8448 = vmatprep.subr.msk.mxu1 %vm211_vm1, %v196_v13 }
  0x3e   :  { %8449 = vmatpush3.xpose.msk.msra.mxu1 %vm211_vm1, %v196_v13 }
  0x3f   :  { %8450 = vmatprep.subr.msk.mxu1 %vm211_vm1, %v195_v14 }
  0x42   :  { %8451 = vmatpush3.xpose.msk.msra.mxu1 %vm211_vm1, %v195_v14 }
  0x43   :  { %8452 = vmatprep.subr.msk.mxu1 %vm211_vm1, %v194_v15 }
  0x46   :  { %8453 = vmatpush3.xpose.msk.msra.mxu1 %vm211_vm1, %v194_v15 }
  0x47   :  { %8454 = vmatprep.subr.msk.mxu1 %vm211_vm1, %v193_v16 }
  0x4a   :  { %8455 = vmatpush3.xpose.msk.msra.mxu1 %vm211_vm1, %v193_v16 }
  0x4b   :  { %8456 = vmatprep.subr.msk.mxu1 %vm211_vm1, %v192_v17 }
  0x4e   :  { %8457 = vmatpush3.xpose.msk.msra.mxu1 %vm211_vm1, %v192_v17 }
  0x4f   :  { %8506 = vmatprep.subr.mxu1 %v9308_v27 }
  0xe1   :  { %v8433_v19 = vpop.f32.mrf.mxu1 }
  0xe2   :  { %v176_v20 = vadd.f32 %v8433_v19, %v7767_v18 }
  0xe3   :  { %v170_v21 = vpop.f32.mrf.mxu1 }
  0xe4   :  { %v171_v24 = vadd.f32 %v7767_v18, %v170_v21  ;;  %v9541_v26 = vadd.f32 %v180_v23, %v176_v20 }
  0xe6   :  { %v9539_v25 = vadd.f32 %v179_v22, %v171_v24 }
  0xe8   :  { %8458 = vmatprep.mubr.msk.f32.mxu1 %vm211_vm1, %v9539_v25 }
  0xe9   :  { %8459 = vmatmul.mubr.msk.f32.vlgmr.msra.gmra.mxu1 %vm211_vm1, %v9541_v26 }
  0xea   :  { %8508 = vmatprep.mubr.msk.f32.mxu1 %vm9309_vm2, %v9308_v27 }
 0x1a9   :  { %v8460_v28 = vpop.f32.mrf.mxu1 }
 0x1aa   :  { %v9560_v32 = vadd.f32 %v8460_v28, %v7774_v29 }
 0x1ab   :  { %v320_v30 = vpop.f32.mrf.mxu1 }
 0x1ac   :  { %v9556_v31 = vadd.f32 %v7774_v29, %v320_v30  ;;  %v9575_v36 = vmul.f32 0.35355338, %v9560_v32 }
 0x1ae   :  { %332 = vrot.lane.b32.xlu0 %v9556_v31, %s11136_s1  ;;  %v9567_v34 = vmul.f32 0.35355338, %v9556_v31 }
 0x1b2   :  { %411 = vrot.lane.b32.xlu0 %v9560_v32, %s11136_s1 }
 0x220   :  { %v333_v33 = vpop.permute.xlu0 %332 }
 0x221   :  { %8462 = vmatpush3.xpose.msk.msra.mxu0 %vm334_vm3, %v333_v33 }
 0x222   :  { %8466 = vmatprep.subr.mxu0 %v9308_v27 }
 0x224   :  { %v412_v35 = vpop.permute.xlu0 %411  ;;  %8464 = vmatmul.mubr.msk.f32.vlgmr.msra.gmra.mxu0 %vm334_vm3, %v9567_v34 }
 0x225   :  { %8467 = vmatpush3.xpose.msk.msra.mxu0 %vm334_vm3, %v412_v35  ;;  %8468 = vmatprep.mubr.msk.f32.mxu0 %vm9309_vm2, %v9308_v27 }
 0x226   :  { %8471 = vmatprep.subr.mxu0 %v9308_v27 }
 0x228   :  { %8469 = vmatmul.mubr.msk.f32.vlgmr.msra.gmra.mxu0 %vm334_vm3, %v9575_v36 }
 0x229   :  { %8473 = vmatprep.mubr.msk.f32.mxu0 %vm9309_vm2, %v9308_v27 }
 0x2e4   :  { %v406_v37 = vpop.f32.mrf.mxu0 }
 0x2e5   :  { %v488_v38 = vsel %vm334_vm3, %v406_v37, -inf }
 0x2e6   :  { %489 = vmax.xlane.f32.xlu1 %v488_v38  ;;  %v8465_v39 = vpop.f32.mrf.mxu0 }
 0x2e8   :  { %v484_v40 = vpop.f32.mrf.mxu0 }
 0x2e9   :  { %v491_v41 = vsel %vm334_vm3, %v484_v40, -inf }
 0x2ea   :  { %492 = vmax.xlane.f32.xlu1 %v491_v41  ;;  %v8470_v42 = vpop.f32.mrf.mxu0 }
 0x2fb   :  { %510 = vrot.lane.b32.xlu1 %v9556_v31, %s11116_s5 }
 0x2ff   :  { %586 = vrot.lane.b32.xlu1 %v9560_v32, %s11116_s5  ;;  %s11122_s5 = smov 24  }
 0x303   :  { %664 = vrot.lane.b32.xlu1 %v9556_v31, %s11134_s24 }
 0x307   :  { %662 = vrot.lane.b32.xlu1 %v9567_v34, %s11132_s6 }
 0x36f   :  { %v490_v43 = vpop.xlane.xlu1 %489 }
 0x370   :  { %v494_v44 = vsub.f32 %v406_v37, %v490_v43 }
 0x372   :  { %v496_v45 = vmul.f32 1.442695, %v494_v44 }
 0x373   :  { %v493_v46 = vpop.xlane.xlu1 %492 }
 0x374   :  { %9128 = vpow2.f32 %v496_v45  ;;  %v495_v47 = vsub.f32 %v484_v40, %v493_v46 }
 0x376   :  { %v498_v48 = vmul.f32 1.442695, %v495_v47 }
 0x377   :  { %v511_v49 = vpop.permute.xlu1 %510 }
 0x378   :  { %9130 = vpow2.f32 %v498_v48  ;;  %8472 = vmatpush3.msra.mxu0 %v511_v49 }
 0x379   :  { %8476 = vmatprep.subr.mxu0 %v9308_v27 }
 0x37b   :  { %v587_v54 = vpop.permute.xlu1 %586 }
 0x37f   :  { %v665_v55 = vpop.permute.xlu1 %664 }
 0x381   :  { %v9129_v50 = vpop.eup %9128 }
 0x382   :  { %v500_v51 = vsel %vm334_vm3, %v9129_v50, 0.0 }
 0x383   :  { %501 = vadd.xlane.f32.xlu0 %v500_v51  ;;  %v663_v56 = vpop.permute.xlu1 %662 }
 0x385   :  { %v9131_v52 = vpop.eup %9130 }
 0x386   :  { %v503_v53 = vsel %vm334_vm3, %v9131_v52, 0.0 }
 0x387   :  { %504 = vadd.xlane.f32.xlu1 %v503_v53 }
 0x398   :  { %740 = vrot.lane.b32.xlu1 %v9575_v36, %s11132_s6 }
 0x399   :  { %742 = vrot.lane.b32.xlu0 %v9560_v32, %s11134_s24 }
 0x40c   :  { %v502_v57 = vpop.xlane.xlu0 %501 }
 0x40d   :  { %9132 = vrcp.f32 %v502_v57 }
 0x410   :  { %v505_v58 = vpop.xlane.xlu1 %504  ;;  %v743_v63 = vpop.permute.xlu0 %742 }
 0x411   :  { %9134 = vrcp.f32 %v505_v58 }
 0x414   :  { %v741_v0 = vpop.permute.xlu1 %740 }
 0x41a   :  { %v9133_v59 = vpop.eup %9132 }
 0x41b   :  { %v508_v60 = vmul.f32 %v9133_v59, %v9129_v50 }
 0x41d   :  { %8474 = vmatmul.mubr.msk.f32.vlgmr.msra.gmra.mxu0 %vm334_vm3, %v508_v60 }
 0x41e   :  { %v9135_v61 = vpop.eup %9134  ;;  %8477 = vmatpush3.msra.mxu0 %v587_v54  ;;  %8478 = vmatprep.mubr.msk.f32.mxu0 %vm9309_vm2, %v9308_v27 }
 0x41f   :  { %8481 = vmatprep.subr.mxu0 %v9308_v27  ;;  %v509_v62 = vmul.f32 %v9135_v61, %v9131_v52 }
 0x421   :  { %8479 = vmatmul.mubr.msk.f32.vlgmr.msra.gmra.mxu0 %vm334_vm3, %v509_v62 }
 0x422   :  { %8482 = vmatpush3.xpose.msk.msra.mxu0 %vm334_vm3, %v665_v55  ;;  %8483 = vmatprep.mubr.msk.f32.mxu0 %vm9309_vm2, %v9308_v27 }
 0x423   :  { %8486 = vmatprep.subr.mxu0 %v9308_v27 }
 0x425   :  { %8484 = vmatmul.mubr.msk.f32.vlgmr.msra.gmra.mxu0 %vm334_vm3, %v663_v56 }
 0x426   :  { %8487 = vmatpush3.xpose.msk.msra.mxu0 %vm334_vm3, %v743_v63  ;;  %8488 = vmatprep.mubr.msk.f32.mxu0 %vm9309_vm2, %v9308_v27 }
 0x427   :  { %8491 = vmatprep.subr.mxu0 %v9308_v27 }
 0x429   :  { %8489 = vmatmul.mubr.msk.f32.vlgmr.msra.gmra.mxu0 %vm334_vm3, %v741_v0 }
 0x42a   :  { %8493 = vmatprep.mubr.msk.f32.mxu0 %vm9309_vm2, %v9308_v27 }
 0x4dd   :  { %v9616_v1 = vpop.f32.mrf.mxu0 }
 0x4df   :  { %v8475_v2 = vpop.f32.mrf.mxu0 }
 0x4e1   :  { %v9618_v3 = vpop.f32.mrf.mxu0 }
 0x4e3   :  { %v8480_v4 = vpop.f32.mrf.mxu0 }
 0x4e5   :  { %v736_v5 = vpop.f32.mrf.mxu0 }
 0x4e6   :  { %v818_v6 = vsel %vm334_vm3, %v736_v5, -inf }
 0x4e7   :  { %819 = vmax.xlane.f32.xlu1 %v818_v6  ;;  %v8485_v7 = vpop.f32.mrf.mxu0 }
 0x4e9   :  { %v814_v8 = vpop.f32.mrf.mxu0 }
 0x4ea   :  { %v821_v9 = vsel %vm334_vm3, %v814_v8, -inf }
 0x4eb   :  { %822 = vmax.xlane.f32.xlu0 %v821_v9  ;;  %v8490_v10 = vpop.f32.mrf.mxu0 }
 0x4f8   :  { %840 = vrot.lane.b32.xlu1 %v9556_v31, %s11112_s25 }
 0x4fc   :  { %994 = vrot.lane.b32.xlu1 %v9556_v31, %s11128_s26 }
 0x500   :  { %1072 = vrot.lane.b32.xlu1 %v9560_v32, %s11128_s26  ;;  %s11158_s26 = smov 8  }
 0x501   :  { %916 = vrot.lane.b32.xlu0 %v9560_v32, %s11112_s25  ;;  %s11166_s25 = smov 48  }
 0x505   :  { %992 = vrot.lane.b32.xlu0 %v9567_v34, %s11130_s2 }
 0x570   :  { %v820_v11 = vpop.xlane.xlu1 %819 }
 0x571   :  { %v824_v12 = vsub.f32 %v736_v5, %v820_v11 }
 0x573   :  { %v826_v13 = vmul.f32 1.442695, %v824_v12 }
 0x574   :  { %v841_v14 = vpop.permute.xlu1 %840  ;;  %v823_v15 = vpop.xlane.xlu0 %822 }
 0x575   :  { %9136 = vpow2.f32 %v826_v13  ;;  %v825_v16 = vsub.f32 %v814_v8, %v823_v15  ;;  %8492 = vmatpush3.msra.mxu0 %v841_v14 }
 0x576   :  { %8496 = vmatprep.subr.mxu0 %v9308_v27 }
 0x577   :  { %v828_v17 = vmul.f32 1.442695, %v825_v16 }
 0x578   :  { %v995_v18 = vpop.permute.xlu1 %994  ;;  %v917_v35 = vpop.permute.xlu0 %916 }
 0x579   :  { %9138 = vpow2.f32 %v828_v17 }
 0x57c   :  { %v1073_v19 = vpop.permute.xlu1 %1072  ;;  %v993_v39 = vpop.permute.xlu0 %992 }
 0x57d   :  { %8507 = vmatpush3.xpose.msk.msra.mxu1 %vm334_vm3, %v1073_v19 }
 0x57e   :  { %8516 = vmatprep.subr.mxu1 %v9308_v27 }
 0x582   :  { %v9137_v20 = vpop.eup %9136 }
 0x583   :  { %v830_v21 = vsel %vm334_vm3, %v9137_v20, 0.0 }
 0x584   :  { %831 = vadd.xlane.f32.xlu1 %v830_v21 }
 0x586   :  { %v9139_v22 = vpop.eup %9138 }
 0x587   :  { %v833_v23 = vsel %vm334_vm3, %v9139_v22, 0.0 }
 0x588   :  { %834 = vadd.xlane.f32.xlu1 %v833_v23 }
 0x599   :  { %1070 = vrot.lane.b32.xlu1 %v9575_v36, %s11130_s2  ;;  %s11159_s2 = smov 16  }
 0x60d   :  { %v832_v24 = vpop.xlane.xlu1 %831 }
 0x60e   :  { %9140 = vrcp.f32 %v832_v24 }
 0x611   :  { %v835_v28 = vpop.xlane.xlu1 %834 }
 0x612   :  { %9142 = vrcp.f32 %v835_v28 }
 0x615   :  { %v1071_v29 = vpop.permute.xlu1 %1070 }
 0x616   :  { %8509 = vmatmul.mubr.msk.f32.vlgmr.msra.gmra.mxu1 %vm334_vm3, %v1071_v29 }
 0x617   :  { %8518 = vmatprep.mubr.msk.f32.mxu1 %vm9309_vm2, %v9308_v27 }
 0x61b   :  { %v9141_v30 = vpop.eup %9140 }
 0x61c   :  { %v838_v33 = vmul.f32 %v9141_v30, %v9137_v20 }
 0x61e   :  { %8494 = vmatmul.mubr.msk.f32.vlgmr.msra.gmra.mxu0 %vm334_vm3, %v838_v33 }
 0x61f   :  { %v9143_v37 = vpop.eup %9142  ;;  %8497 = vmatpush3.msra.mxu0 %v917_v35  ;;  %8498 = vmatprep.mubr.msk.f32.mxu0 %vm9309_vm2, %v9308_v27 }
 0x620   :  { %8501 = vmatprep.subr.mxu0 %v9308_v27  ;;  %v839_v38 = vmul.f32 %v9143_v37, %v9139_v22 }
 0x622   :  { %8499 = vmatmul.mubr.msk.f32.vlgmr.msra.gmra.mxu0 %vm334_vm3, %v839_v38 }
 0x623   :  { %8502 = vmatpush3.xpose.msk.msra.mxu0 %vm334_vm3, %v995_v18  ;;  %8503 = vmatprep.mubr.msk.f32.mxu0 %vm9309_vm2, %v9308_v27 }
 0x624   :  { %8511 = vmatprep.subr.mxu0 %v9308_v27 }
 0x626   :  { %8504 = vmatmul.mubr.msk.f32.vlgmr.msra.gmra.mxu0 %vm334_vm3, %v993_v39 }
 0x627   :  { %8513 = vmatprep.mubr.msk.f32.mxu0 %vm9309_vm2, %v9308_v27 }
 0x6d6   :  { %v1144_v40 = vpop.f32.mrf.mxu1 }
 0x6d7   :  { %v1151_v41 = vsel %vm334_vm3, %v1144_v40, -inf }
 0x6d8   :  { %1152 = vmax.xlane.f32.xlu1 %v1151_v41  ;;  %v8510_v42 = vpop.f32.mrf.mxu1 }
 0x6d9   :  { %v1686_v42 = vld [vmem:[%s11088_s7 + $0x10] sm:$0xff] }
 0x6de   :  { %v9655_v43 = vpop.f32.mrf.mxu0 }
 0x6e0   :  { %v8495_v44 = vpop.f32.mrf.mxu0 }
 0x6e1   :  { %v1684_v44 = vld [vmem:[%s11088_s7] sm:$0xff] }
 0x6e2   :  { %v9657_v45 = vpop.f32.mrf.mxu0 }
 0x6e4   :  { %v8500_v46 = vpop.f32.mrf.mxu0 }
 0x6e6   :  { %v1066_v47 = vpop.f32.mrf.mxu0 }
 0x6e7   :  { %v1148_v48 = vsel %vm334_vm3, %v1066_v47, -inf }
 0x6e8   :  { %1149 = vmax.xlane.f32.xlu0 %v1148_v48  ;;  %v8505_v49 = vpop.f32.mrf.mxu0 }
 0x6e9   :  { %1170 = vrot.lane.b32.xlu1 %v9556_v31, %s11110_s3 }
 0x6ed   :  { %1324 = vrot.lane.b32.xlu1 %v9556_v31, %s11124_s28 }
 0x6f1   :  { %1402 = vrot.lane.b32.xlu1 %v9560_v32, %s11124_s28  ;;  %s11154_s28 = smov 112  }
 0x6f5   :  { %1400 = vrot.lane.b32.xlu1 %v9575_v36, %s11126_s30 }
 0x761   :  { %v1153_v50 = vpop.xlane.xlu1 %1152 }
 0x762   :  { %v1155_v51 = vsub.f32 %v1144_v40, %v1153_v50 }
 0x764   :  { %v1158_v52 = vmul.f32 1.442695, %v1155_v51 }
 0x765   :  { %v1171_v53 = vpop.permute.xlu1 %1170 }
 0x766   :  { %9144 = vpow2.f32 %v1158_v52  ;;  %8512 = vmatpush3.msra.mxu0 %v1171_v53 }
 0x767   :  { %8521 = vmatprep.subr.mxu0 %v9308_v27 }
 0x769   :  { %v1325_v61 = vpop.permute.xlu1 %1324 }
 0x76d   :  { %v1403_v0 = vpop.permute.xlu1 %1402 }
 0x771   :  { %v1150_v54 = vpop.xlane.xlu0 %1149 }
 0x772   :  { %v1154_v55 = vsub.f32 %v1066_v47, %v1150_v54 }
 0x773   :  { %v9145_v56 = vpop.eup %9144 }
 0x774   :  { %v1156_v57 = vmul.f32 1.442695, %v1154_v55  ;;  %v1163_v58 = vsel %vm334_vm3, %v9145_v56, 0.0 }
 0x775   :  { %1164 = vadd.xlane.f32.xlu0 %v1163_v58 }
 0x776   :  { %9146 = vpow2.f32 %v1156_v57 }
 0x783   :  { %v9147_v59 = vpop.eup %9146 }
 0x784   :  { %v1160_v60 = vsel %vm334_vm3, %v9147_v59, 0.0 }
 0x785   :  { %1161 = vadd.xlane.f32.xlu0 %v1160_v60 }
 0x79b   :  { %1246 = vrot.lane.b32.xlu0 %v9560_v32, %s11110_s3  ;;  %s11163_s3 = smov 88  }
 0x79f   :  { %1322 = vrot.lane.b32.xlu0 %v9567_v34, %s11126_s30  ;;  %v1401_v34 = vpop.permute.xlu1 %1400  ;;  %s11155_s30 = smov 80  }
 0x7fe   :  { %v1165_v36 = vpop.xlane.xlu0 %1164 }
 0x7ff   :  { %9148 = vrcp.f32 %v1165_v36 }
 0x80c   :  { %v9149_v63 = vpop.eup %9148 }
 0x80d   :  { %v1169_v4 = vmul.f32 %v9149_v63, %v9145_v56 }
 0x80e   :  { %v1162_v62 = vpop.xlane.xlu0 %1161 }
 0x80f   :  { %9150 = vrcp.f32 %v1162_v62 }
 0x812   :  { %v1247_v2 = vpop.permute.xlu0 %1246 }
 0x813   :  { %8517 = vmatpush3.msra.mxu1 %v1247_v2 }
 0x814   :  { %8519 = vmatmul.mubr.msk.f32.vlgmr.msra.gmra.mxu1 %vm334_vm3, %v1169_v4  ;;  %8526 = vmatprep.subr.mxu1 %v9308_v27 }
 0x815   :  { %8527 = vmatpush3.xpose.msk.msra.mxu1 %vm334_vm3, %v1403_v0  ;;  %8528 = vmatprep.mubr.msk.f32.mxu1 %vm9309_vm2, %v9308_v27 }
 0x816   :  { %8536 = vmatprep.subr.mxu1 %v9308_v27  ;;  %v1323_v7 = vpop.permute.xlu0 %1322 }
 0x818   :  { %8529 = vmatmul.mubr.msk.f32.vlgmr.msra.gmra.mxu1 %vm334_vm3, %v1401_v34  ;;  %v1940_v34 = vld [vmem:[%s11092_s11 + $0x38] sm:$0xff] }
 0x819   :  { %8538 = vmatprep.mubr.msk.f32.mxu1 %vm9309_vm2, %v9308_v27 }
 0x81c   :  { %v9151_v5 = vpop.eup %9150 }
 0x81d   :  { %v1168_v6 = vmul.f32 %v9151_v5, %v9147_v59  ;;  %v1939_v5 = vld [vmem:[%s11092_s11 + $0x30] sm:$0xff] }
 0x81f   :  { %8514 = vmatmul.mubr.msk.f32.vlgmr.msra.gmra.mxu0 %vm334_vm3, %v1168_v6 }
 0x820   :  { %8522 = vmatpush3.xpose.msk.msra.mxu0 %vm334_vm3, %v1325_v61  ;;  %8523 = vmatprep.mubr.msk.f32.mxu0 %vm9309_vm2, %v9308_v27 }
 0x821   :  { %8531 = vmatprep.subr.mxu0 %v9308_v27 }
 0x823   :  { %8524 = vmatmul.mubr.msk.f32.vlgmr.msra.gmra.mxu0 %vm334_vm3, %v1323_v7 }
 0x824   :  { %8533 = vmatprep.mubr.msk.f32.mxu0 %vm9309_vm2, %v9308_v27 }
 0x8d4   :  { %v1318_v8 = vpop.f32.mrf.mxu1 }
 0x8d6   :  { %v8520_v9 = vpop.f32.mrf.mxu1 }
 0x8d8   :  { %v1474_v10 = vpop.f32.mrf.mxu1 }
 0x8d9   :  { %v1481_v11 = vsel %vm334_vm3, %v1474_v10, -inf }
 0x8da   :  { %1482 = vmax.xlane.f32.xlu1 %v1481_v11  ;;  %v8530_v12 = vpop.f32.mrf.mxu1 }
 0x8df   :  { %v1242_v13 = vpop.f32.mrf.mxu0 }
 0x8e1   :  { %v8515_v14 = vpop.f32.mrf.mxu0 }
 0x8e3   :  { %v1396_v15 = vpop.f32.mrf.mxu0 }
 0x8e4   :  { %v1478_v16 = vsel %vm334_vm3, %v1396_v15, -inf }
 0x8e5   :  { %1479 = vmax.xlane.f32.xlu0 %v1478_v16  ;;  %v8525_v17 = vpop.f32.mrf.mxu0  ;;  %v1936_v16 = vld [vmem:[%s11092_s11 + $0x18] sm:$0xff] }
 0x8e6   :  { %v1935_v17 = vld [vmem:[%s11092_s11 + $0x10] sm:$0xff] }
 0x8eb   :  { %1500 = vrot.lane.b32.xlu1 %v9556_v31, %s11114_s4 }
 0x8ef   :  { %1654 = vrot.lane.b32.xlu1 %v9655_v43, %s11120_s29  ;;  %v1685_v43 = vld [vmem:[%s11088_s7 + $0x8] sm:$0xff] }
 0x8f3   :  { %1656 = vrot.lane.b32.xlu1 %v9657_v45, %s11120_s29  ;;  %s11156_s29 = smov 104  }
 0x8f7   :  { %1664 = vrot.lane.b32.xlu1 %v1318_v8, %s11118_s0 }
 0x963   :  { %v1483_v18 = vpop.xlane.xlu1 %1482 }
 0x964   :  { %v1485_v19 = vsub.f32 %v1474_v10, %v1483_v18  ;;  %v1832_v18 = vld [vmem:[%s11090_s9 + $0x18] sm:$0xff] }
 0x966   :  { %v1488_v20 = vmul.f32 1.442695, %v1485_v19  ;;  %v1934_v19 = vld [vmem:[%s11092_s11 + $0x8] sm:$0xff] }
 0x967   :  { %v1501_v21 = vpop.permute.xlu1 %1500 }
 0x968   :  { %9152 = vpow2.f32 %v1488_v20  ;;  %8532 = vmatpush3.msra.mxu0 %v1501_v21  ;;  %v1831_v20 = vld [vmem:[%s11090_s9 + $0x10] sm:$0xff] }
 0x96b   :  { %v1655_v49 = vpop.permute.xlu1 %1654 }
 0x96c   :  { %v1676_v53 = vsel %vm334_vm3, %v9616_v1, %v1655_v49  ;;  %v7813_v1 = vld [vmem:[%s11089_s8] ss:$0 sm:$0xff] }
 0x96e   :  { %v1480_v22 = vpop.xlane.xlu0 %1479 }
 0x96f   :  { %v1484_v23 = vsub.f32 %v1396_v15, %v1480_v22  ;;  %v1657_v50 = vpop.permute.xlu1 %1656  ;;  %v1937_v15 = vld [vmem:[%s11092_s11 + $0x20] sm:$0xff] }
 0x970   :  { %v1677_v55 = vsel %vm334_vm3, %v9618_v3, %v1657_v50  ;;  %v1933_v22 = vld [vmem:[%s11092_s11] sm:$0xff] }
 0x971   :  { %v1486_v24 = vmul.f32 1.442695, %v1484_v23  ;;  %v1830_v23 = vld [vmem:[%s11090_s9 + $0x8] sm:$0xff] }
 0x973   :  { %9154 = vpow2.f32 %v1486_v24  ;;  %v1665_v51 = vpop.permute.xlu1 %1664  ;;  %v1829_v24 = vld [vmem:[%s11090_s9] sm:$0xff] }
 0x974   :  { %v1680_v58 = vsel %vm1678_vm4, %v1677_v55, %v1665_v51 }
 0x975   :  { %v9153_v31 = vpop.eup %9152 }
 0x976   :  { %v1493_v28 = vsel %vm334_vm3, %v9153_v31, 0.0 }
 0x977   :  { %1494 = vadd.xlane.f32.xlu0 %v1493_v28 }
 0x980   :  { %v9155_v29 = vpop.eup %9154 }
 0x981   :  { %v1490_v30 = vsel %vm334_vm3, %v9155_v29, 0.0 }
 0x982   :  { %1491 = vadd.xlane.f32.xlu0 %v1490_v30 }
 0x998   :  { %1576 = vrot.lane.b32.xlu0 %v9560_v32, %s11114_s4  ;;  %v1687_v32 = vld [vmem:[%s11088_s7 + $0x18] sm:$0xff]  ;;  %s11153_s4 = sld [smem:[#allocation6_spill]] }
 0x999   :  { %8541 = vmatprep.subr.msk.mxu0 %vm211_vm1, %v1687_v32 }
 0x99c   :  { %1662 = vrot.lane.b32.xlu0 %v1242_v13, %s11118_s0  ;;  %s11164_s0 = smov 120  }
 0x99e   :  { %v183_v21 = vld [vmem:[%s11153_s4] sm:$0xff]  ;;  %v185_v28 = vld [vmem:[%s11153_s4 + $0x10] sm:$0xff] }
 0xa00   :  { %v1495_v33 = vpop.xlane.xlu0 %1494 }
 0xa01   :  { %9156 = vrcp.f32 %v1495_v33 }
 0xa0b   :  { %v1492_v35 = vpop.xlane.xlu0 %1491 }
 0xa0c   :  { %9158 = vrcp.f32 %v1492_v35 }
 0xa0e   :  { %v9157_v37 = vpop.eup %9156 }
 0xa0f   :  { %v1577_v38 = vpop.permute.xlu0 %1576  ;;  %v1499_v39 = vmul.f32 %v9157_v37, %v9153_v31  ;;  %v184_v31 = vld [vmem:[%s11153_s4 + $0x8] sm:$0xff] }
 0xa10   :  { %8537 = vmatpush3.msra.mxu1 %v1577_v38 }
 0xa11   :  { %8539 = vmatmul.mubr.msk.f32.vlgmr.msra.gmra.mxu1 %vm334_vm3, %v1499_v39  ;;  %8552 = vmatprep.subr.msk.mxu1 %vm211_vm1, %v1832_v18  ;;  %v187_v39 = vlaneseq }
 0xa12   :  { %8553 = vmatpush3.xpose.msk.msra.mxu1 %vm211_vm1, %v1832_v18 }
 0xa13   :  { %v1663_v52 = vpop.permute.xlu0 %1662  ;;  %8554 = vmatprep.subr.msk.mxu1 %vm211_vm1, %v1831_v20 }
 0xa14   :  { %v1679_v56 = vsel %vm1678_vm4, %v1676_v53, %v1663_v52 }
 0xa16   :  { %8555 = vmatpush3.xpose.msk.msra.mxu1 %vm211_vm1, %v1831_v20 }
 0xa17   :  { %8556 = vmatprep.subr.msk.mxu1 %vm211_vm1, %v1830_v23 }
 0xa19   :  { %v9159_v40 = vpop.eup %9158 }
 0xa1a   :  { %v1498_v41 = vmul.f32 %v9159_v40, %v9155_v29  ;;  %8557 = vmatpush3.xpose.msk.msra.mxu1 %vm211_vm1, %v1830_v23  ;;  %v186_v29 = vld [vmem:[%s11153_s4 + $0x18] sm:$0xff] }
 0xa1b   :  { %8558 = vmatprep.subr.msk.mxu1 %vm211_vm1, %v1829_v24 }
 0xa1c   :  { %8534 = vmatmul.mubr.msk.f32.vlgmr.msra.gmra.mxu0 %vm334_vm3, %v1498_v41  ;;  %v9833_v41 = vshrl.u32 %v187_v39, 7 }
 0xa1d   :  { %8542 = vmatpush3.xpose.msk.msra.mxu0 %vm211_vm1, %v1687_v32 }
 0xa1e   :  { %8543 = vmatprep.subr.msk.mxu0 %vm211_vm1, %v1686_v42  ;;  %8559 = vmatpush3.xpose.msk.msra.mxu1 %vm211_vm1, %v1829_v24  ;;  %v1819_v32 = vsub.s32 0, %v9833_v41 }
 0xa1f   :  { %8585 = vmatprep.subr.mxu1 %v9308_v27 }
 0xa21   :  { %8544 = vmatpush3.xpose.msk.msra.mxu0 %vm211_vm1, %v1686_v42  ;;  %v9839_v42 = vld [vmem:[%s11100_s19] sm:$0x3f] }
 0xa22   :  { %8545 = vmatprep.subr.msk.mxu0 %vm211_vm1, %v1685_v43 }
 0xa25   :  { %8546 = vmatpush3.xpose.msk.msra.mxu0 %vm211_vm1, %v1685_v43  ;;  %v1825_v43 = vsub.s32 1, %v9833_v41 }
 0xa26   :  { %8547 = vmatprep.subr.msk.mxu0 %vm211_vm1, %v1684_v44 }
 0xa29   :  { %8548 = vmatpush3.xpose.msk.msra.mxu0 %vm211_vm1, %v1684_v44  ;;  %v1820_v44 = vrot.slane %v9839_v42, %v1819_v32 }
 0xa2a   :  { %8563 = vmatprep.subr.msk.mxu0 %vm211_vm1, %v1940_v34 }
 0xad1   :  { %v1648_v45 = vpop.f32.mrf.mxu1 }
 0xad2   :  { %1672 = vrot.lane.b32.xlu1 %v1648_v45, %s11122_s5 }
 0xad3   :  { %v8540_v46 = vpop.f32.mrf.mxu1 }
 0xadc   :  { %v1572_v47 = vpop.f32.mrf.mxu0 }
 0xadd   :  { %1670 = vrot.lane.b32.xlu0 %v1572_v47, %s11122_s5  ;;  %v1826_v47 = vrot.slane %v9839_v42, %v1825_v43  ;;  %s11157_s5 = smov 72  }
 0xade   :  { %v8535_v48 = vpop.f32.mrf.mxu0 }
 0xb44   :  { %v1673_v54 = vpop.permute.xlu1 %1672 }
 0xb45   :  { %v1683_v60 = vsel %vm1681_vm5, %v1680_v58, %v1673_v54  ;;  %v7827_v54 = vld [vmem:[%s11093_s12] ss:$0 sm:$0xff] }
 0xb4f   :  { %v1671_v57 = vpop.permute.xlu0 %1670 }
 0xb50   :  { %v1682_v59 = vsel %vm1681_vm5, %v1679_v56, %v1671_v57 }
 0xb51   :  { %8549 = vmatprep.mubr.msk.f32.mxu0 %vm211_vm1, %v1682_v59 }
 0xb52   :  { %8550 = vmatmul.mubr.msk.f32.vlgmr.msra.gmra.mxu0 %vm211_vm1, %v1683_v60  ;;  %v7820_v60 = vld [vmem:[%s11091_s10] ss:$0 sm:$0xff] }
 0xb53   :  { %8564 = vmatpush3.xpose.msk.msra.mxu0 %vm211_vm1, %v1940_v34  ;;  %8579 = vmatprep.mubr.msk.f32.mxu0 %vm211_vm1, %v183_v21  ;;  %v188_v34 = vand.u32 127, %v187_v39 }
 0xb54   :  { %8565 = vmatprep.subr.msk.mxu0 %vm211_vm1, %v1939_v5 }
 0xb55   :  { %vm189_vm6 = vcmp.lt.s32.totalorder %v188_v34, 10 }
 0xb57   :  { %8566 = vmatpush3.xpose.msk.msra.mxu0 %vm211_vm1, %v1939_v5  ;;  %v9324_v5 = vmov -1e+30  }
 0xc12   :  { %v8551_v36 = vpop.f32.mrf.mxu0 }
 0xc13   :  { %v1785_v61 = vadd.f32 %v8551_v36, %v7813_v1 }
 0xc14   :  { %v1779_v3 = vpop.f32.mrf.mxu0 }
 0xc15   :  { %v1780_v62 = vadd.f32 %v7813_v1, %v1779_v3  ;;  %v1789_v63 = vadd.f32 %v1785_v61, %v9541_v26 }
 0xc17   :  { %v1793_v0 = vsel %vm211_vm1, %v1789_v63, 0.0  ;;  %v1788_v2 = vadd.f32 %v1780_v62, %v9539_v25  ;;  %v1938_v25 = vld [vmem:[%s11092_s11 + $0x28] sm:$0xff] }
 0xc18   :  { %1794 = vadd.xlane.f32.xlu1 %v1793_v0  ;;  %8567 = vmatprep.subr.msk.mxu0 %vm211_vm1, %v1938_v25 }
 0xc19   :  { %v1790_v4 = vsel %vm211_vm1, %v1788_v2, 0.0  ;;  %8568 = vmatpush3.xpose.msk.msra.mxu0 %vm211_vm1, %v1938_v25  ;;  %v9897_v25 = vsel %vm189_vm6, 0.0, %v9324_v5 }
 0xc1a   :  { %1791 = vadd.xlane.f32.xlu0 %v1790_v4  ;;  %8569 = vmatprep.subr.msk.mxu0 %vm211_vm1, %v1937_v15 }
 0xc1d   :  { %8570 = vmatpush3.xpose.msk.msra.mxu0 %vm211_vm1, %v1937_v15 }
 0xc1e   :  { %8571 = vmatprep.subr.msk.mxu0 %vm211_vm1, %v1936_v16 }
 0xc21   :  { %8572 = vmatpush3.xpose.msk.msra.mxu0 %vm211_vm1, %v1936_v16 }
 0xc22   :  { %8573 = vmatprep.subr.msk.mxu0 %vm211_vm1, %v1935_v17 }
 0xc25   :  { %8574 = vmatpush3.xpose.msk.msra.mxu0 %vm211_vm1, %v1935_v17 }
 0xc26   :  { %8575 = vmatprep.subr.msk.mxu0 %vm211_vm1, %v1934_v19 }
 0xc29   :  { %8576 = vmatpush3.xpose.msk.msra.mxu0 %vm211_vm1, %v1934_v19 }
 0xc2a   :  { %8577 = vmatprep.subr.msk.mxu0 %vm211_vm1, %v1933_v22 }
 0xc2d   :  { %8578 = vmatpush3.xpose.msk.msra.mxu0 %vm211_vm1, %v1933_v22 }
 0xc2e   :  { %8620 = vmatprep.subr.mxu0 %v9308_v27 }
 0xc30   :  { %8580 = vmatmul.mubr.msk.f32.vlgmr.msra.gmra.mxu0 %vm211_vm1, %v184_v31 }
 0xc31   :  { %8582 = vmatprep.mubr.msk.f32.mxu0 %vm211_vm1, %v185_v28 }
 0xc34   :  { %8583 = vmatmul.mubr.msk.f32.gmra.mxu0 %vm211_vm1, %v186_v29 }
 0xc35   :  { %8624 = vmatprep.mubr.msk.f32.mxu0 %vm9309_vm2, %v9308_v27 }
 0xca1   :  { %v1795_v26 = vpop.xlane.xlu1 %1794 }
 0xca2   :  { %v1798_v6 = vmul.f32 0.03125, %v1795_v26 }
 0xca3   :  { %v1792_v7 = vpop.xlane.xlu0 %1791 }
 0xca4   :  { %v1797_v8 = vmul.f32 0.03125, %v1792_v7  ;;  %v9762_v9 = vsub.f32 %v1789_v63, %v1798_v6 }
 0xca6   :  { %v1799_v10 = vsub.f32 %v1788_v2, %v1797_v8  ;;  %v1802_v13 = vmul.f32 %v9762_v9, %v9762_v9 }
 0xca8   :  { %v1801_v11 = vmul.f32 %v1799_v10, %v1799_v10  ;;  %v1806_v14 = vsel %vm211_vm1, %v1802_v13, 0.0 }
 0xcaa   :  { %v1803_v12 = vsel %vm211_vm1, %v1801_v11, 0.0 }
 0xcab   :  { %1804 = vadd.xlane.f32.xlu0 %v1803_v12 }
 0xcaf   :  { %1807 = vadd.xlane.f32.xlu0 %v1806_v14 }
 0xcf0   :  { %v8581_v55 = vpop.f32.mrf.mxu0 }
 0xcf1   :  { %v9862_v56 = vadd.f32 %v8581_v55, %v7827_v54 }
 0xcf2   :  { %v2050_v57 = vpop.f32.mrf.mxu0 }
 0xcf3   :  { %v9866_v58 = vadd.f32 %v7827_v54, %v2050_v57 }
 0xcf4   :  { %v8584_v61 = vpop.f32.mrf.mxu0 }
 0xcf5   :  { %v9875_v3 = vadd.f32 %v8584_v61, %v7827_v54 }
 0xcf6   :  { %v2060_v63 = vpop.f32.mrf.mxu0 }
 0xcf7   :  { %v9886_v2 = vadd.f32 %v7827_v54, %v2060_v63 }
 0xd34   :  { %v1805_v30 = vpop.xlane.xlu0 %1804 }
 0xd35   :  { %v1809_v33 = vmul.f32 0.03125, %v1805_v30 }
 0xd37   :  { %v1811_v35 = vadd.f32 1e-05, %v1809_v33 }
 0xd38   :  { %v1808_v37 = vpop.xlane.xlu0 %1807 }
 0xd39   :  { %9160 = vrsqrt.f32 %v1811_v35  ;;  %v1810_v38 = vmul.f32 0.03125, %v1808_v37 }
 0xd3b   :  { %v1812_v40 = vadd.f32 1e-05, %v1810_v38 }
 0xd3d   :  { %9162 = vrsqrt.f32 %v1812_v40 }
 0xd46   :  { %v9161_v45 = vpop.eup %9160 }
 0xd47   :  { %v1815_v46 = vmul.f32 %v9161_v45, %v1799_v10 }
 0xd49   :  { %v1821_v48 = vmul.f32 %v1820_v44, %v1815_v46 }
 0xd4a   :  { %v9163_v49 = vpop.eup %9162 }
 0xd4b   :  { %v1816_v50 = vmul.f32 %v9163_v49, %v9762_v9  ;;  %v9849_v51 = vadd.f32 %v1826_v47, %v1821_v48 }
 0xd4d   :  { %v1822_v52 = vmul.f32 %v1820_v44, %v1816_v50  ;;  %8560 = vmatprep.mubr.msk.f32.mxu1 %vm211_vm1, %v9849_v51 }
 0xd4f   :  { %v9853_v53 = vadd.f32 %v1826_v47, %v1822_v52 }
 0xd51   :  { %8561 = vmatmul.mubr.msk.f32.vlgmr.msra.gmra.mxu1 %vm211_vm1, %v9853_v53 }
 0xd52   :  { %8589 = vmatprep.mubr.msk.f32.mxu1 %vm9309_vm2, %v9308_v27  ;;  %8586 = vmatpush3.xpose.msk.msra.mxu1 %vm334_vm3, %v9862_v56 }
 0xd53   :  { %8587 = vmatprep.subr.mxu1 %v9308_v27 }
 0xd56   :  { %8588 = vmatpush3.xpose.msk.msra.mxu1 %vm334_vm3, %v9866_v58 }
 0xd57   :  { %8592 = vmatprep.subr.mxu1 %v9308_v27 }
 0xe11   :  { %v8562_v59 = vpop.f32.mrf.mxu1 }
 0xe12   :  { %v1930_v0 = vadd.f32 %v8562_v59, %v7820_v60 }
 0xe13   :  { %v1924_v1 = vpop.f32.mrf.mxu1 }
 0xe14   :  { %v1925_v36 = vadd.f32 %v7820_v60, %v1924_v1  ;;  %v9890_v4 = vmul.f32 0.35355338, %v1930_v0 }
 0xe16   :  { %v9877_v62 = vmul.f32 0.35355338, %v1925_v36 }
 0xe18   :  { %8590 = vmatmul.mubr.msk.f32.vlgmr.msra.gmra.mxu1 %vm334_vm3, %v9877_v62 }
 0xe19   :  { %8593 = vmatpush3.xpose.msk.msra.mxu1 %vm334_vm3, %v9875_v3  ;;  %8596 = vmatprep.mubr.msk.f32.mxu1 %vm9309_vm2, %v9308_v27 }
 0xe1a   :  { %8594 = vmatprep.subr.mxu1 %v9308_v27 }
 0xe1d   :  { %8595 = vmatpush3.xpose.msk.msra.mxu1 %vm334_vm3, %v9886_v2 }
 0xe1e   :  { %8599 = vmatprep.subr.mxu1 %v9308_v27 }
 0xe20   :  { %8597 = vmatmul.mubr.msk.f32.vlgmr.msra.gmra.mxu1 %vm334_vm3, %v9890_v4 }
 0xe21   :  { %8603 = vmatprep.mubr.msk.f32.mxu1 %vm9309_vm2, %v9308_v27 }
 0xed8   :  { %v2146_v26 = vpop.f32.mrf.mxu1 }
 0xed9   :  { %v2147_v6 = vadd.f32 %v2146_v26, %v9897_v25 }
 0xeda   :  { %v8591_v7 = vpop.f32.mrf.mxu1 }
 0xedb   :  { %v2229_v8 = vsel %vm1678_vm4, %v2147_v6, -inf }
 0xedc   :  { %2230 = vmax.xlane.f32.xlu1 %v2229_v8 }
 0xee0   :  { %v2225_v9 = vpop.f32.mrf.mxu1 }
 0xee1   :  { %v2226_v10 = vadd.f32 %v2225_v9, %v9897_v25 }
 0xee2   :  { %v8598_v11 = vpop.f32.mrf.mxu1 }
 0xee3   :  { %v2232_v12 = vsel %vm1678_vm4, %v2226_v10, -inf }
 0xee4   :  { %2233 = vmax.xlane.f32.xlu0 %v2232_v12 }
 0xeed   :  { %2253 = vrot.lane.b32.xlu1 %v9862_v56, %s11136_s1 }
 0xef1   :  { %2332 = vrot.lane.b32.xlu1 %v9875_v3, %s11136_s1 }
 0xef5   :  { %2330 = vrot.lane.b32.xlu1 %v9886_v2, %s11136_s1 }
 0xefa   :  { %2251 = vrot.lane.b32.xlu0 %v9866_v58, %s11136_s1  ;;  %s11167_s1 = smov 40  }
 0xf65   :  { %v2231_v13 = vpop.xlane.xlu1 %2230 }
 0xf66   :  { %v2235_v14 = vsub.f32 %v2147_v6, %v2231_v13 }
 0xf68   :  { %v2237_v15 = vmul.f32 1.442695, %v2235_v14 }
 0xf69   :  { %v2254_v16 = vpop.permute.xlu1 %2253 }
 0xf6a   :  { %9164 = vpow2.f32 %v2237_v15  ;;  %8600 = vmatpush3.msra.mxu1 %v2254_v16 }
 0xf6b   :  { %8601 = vmatprep.subr.mxu1 %v9308_v27 }
 0xf6d   :  { %v2234_v17 = vpop.xlane.xlu0 %2233  ;;  %v2333_v31 = vpop.permute.xlu1 %2332 }
 0xf6e   :  { %v2236_v18 = vsub.f32 %v2226_v10, %v2234_v17 }
 0xf70   :  { %v2239_v19 = vmul.f32 1.442695, %v2236_v18 }
 0xf71   :  { %v2252_v20 = vpop.permute.xlu0 %2251  ;;  %v2331_v28 = vpop.permute.xlu1 %2330 }
 0xf72   :  { %9166 = vpow2.f32 %v2239_v19  ;;  %8602 = vmatpush3.msra.mxu1 %v2252_v20 }
 0xf73   :  { %8606 = vmatprep.subr.mxu1 %v9308_v27 }
 0xf77   :  { %v9165_v21 = vpop.eup %9164 }
 0xf78   :  { %v2241_v22 = vsel %vm1678_vm4, %v9165_v21, 0.0 }
 0xf79   :  { %2242 = vadd.xlane.f32.xlu1 %v2241_v22 }
 0xf7f   :  { %v9167_v23 = vpop.eup %9166 }
 0xf80   :  { %v2244_v24 = vsel %vm1678_vm4, %v9167_v23, 0.0 }
 0xf81   :  { %2245 = vadd.xlane.f32.xlu0 %v2244_v24 }
 0xf8a   :  { %2411 = vrot.lane.b32.xlu1 %v9866_v58, %s11132_s6 }
 0xf8e   :  { %2409 = vrot.lane.b32.xlu1 %v9877_v62, %s11132_s6 }
 0xf92   :  { %2491 = vrot.lane.b32.xlu1 %v9890_v4, %s11132_s6 }
 0xf97   :  { %2413 = vrot.lane.b32.xlu0 %v9862_v56, %s11132_s6 }
 0xf9b   :  { %2495 = vrot.lane.b32.xlu0 %v9875_v3, %s11132_s6 }
 0xf9f   :  { %2493 = vrot.lane.b32.xlu0 %v9886_v2, %s11132_s6  ;;  %s11160_s6 = smov 24  }
0x1002   :  { %v2243_v29 = vpop.xlane.xlu1 %2242 }
0x1003   :  { %9168 = vrcp.f32 %v2243_v29 }
0x1006   :  { %v2412_v33 = vpop.permute.xlu1 %2411 }
0x100a   :  { %v2246_v30 = vpop.xlane.xlu0 %2245  ;;  %v2410_v40 = vpop.permute.xlu1 %2409 }
0x100b   :  { %9170 = vrcp.f32 %v2246_v30 }
0x100e   :  { %v2414_v35 = vpop.permute.xlu0 %2413  ;;  %v2492_v46 = vpop.permute.xlu1 %2491 }
0x1010   :  { %v9169_v37 = vpop.eup %9168 }
0x1011   :  { %v2249_v38 = vmul.f32 %v9169_v37, %v9165_v21 }
0x1012   :  { %v2496_v39 = vpop.permute.xlu0 %2495 }
0x1013   :  { %8621 = vmatpush3.xpose.msk.msra.mxu0 %vm334_vm3, %v2496_v39  ;;  %8604 = vmatmul.mubr.msk.f32.vlgmr.msra.gmra.mxu1 %vm1678_vm4, %v2249_v38 }
0x1014   :  { %8607 = vmatpush3.msra.mxu1 %v2333_v31  ;;  %8622 = vmatprep.subr.mxu0 %v9308_v27 }
0x1015   :  { %8608 = vmatprep.subr.mxu1 %v9308_v27  ;;  %8610 = vmatprep.mubr.msk.f32.mxu1 %vm9309_vm2, %v9308_v27 }
0x1016   :  { %8609 = vmatpush3.msra.mxu1 %v2331_v28  ;;  %v2494_v44 = vpop.permute.xlu0 %2493 }
0x1017   :  { %8623 = vmatpush3.xpose.msk.msra.mxu0 %vm334_vm3, %v2494_v44  ;;  %8613 = vmatprep.subr.mxu1 %v9308_v27 }
0x1018   :  { %v9171_v45 = vpop.eup %9170  ;;  %8641 = vmatprep.subr.mxu0 %v9308_v27 }
0x1019   :  { %v2250_v47 = vmul.f32 %v9171_v45, %v9167_v23 }
0x101a   :  { %8625 = vmatmul.mubr.msk.f32.vlgmr.msra.gmra.mxu0 %vm334_vm3, %v2492_v46 }
0x101b   :  { %8611 = vmatmul.mubr.msk.f32.vlgmr.msra.gmra.mxu1 %vm1678_vm4, %v2250_v47  ;;  %8645 = vmatprep.mubr.msk.f32.mxu0 %vm9309_vm2, %v9308_v27 }
0x101c   :  { %8614 = vmatpush3.xpose.msk.msra.mxu1 %vm334_vm3, %v2414_v35  ;;  %8617 = vmatprep.mubr.msk.f32.mxu1 %vm9309_vm2, %v9308_v27 }
0x101d   :  { %8615 = vmatprep.subr.mxu1 %v9308_v27 }
0x1020   :  { %8616 = vmatpush3.xpose.msk.msra.mxu1 %vm334_vm3, %v2412_v33 }
0x1021   :  { %8627 = vmatprep.subr.mxu1 %v9308_v27 }
0x1023   :  { %8618 = vmatmul.mubr.msk.f32.vlgmr.msra.gmra.mxu1 %vm334_vm3, %v2410_v40 }
0x1024   :  { %8631 = vmatprep.mubr.msk.f32.mxu1 %vm9309_vm2, %v9308_v27 }
0x10d3   :  { %v9949_v48 = vpop.f32.mrf.mxu1 }
0x10d5   :  { %v8605_v49 = vpop.f32.mrf.mxu1 }
0x10da   :  { %v2569_v50 = vpop.f32.mrf.mxu0 }
0x10db   :  { %v2570_v52 = vadd.f32 %v2569_v50, %v9897_v25  ;;  %v9952_v54 = vpop.f32.mrf.mxu1 }
0x10dc   :  { %v8626_v55 = vpop.f32.mrf.mxu0 }
0x10dd   :  { %v8612_v57 = vpop.f32.mrf.mxu1  ;;  %v2576_v59 = vsel %vm1678_vm4, %v2570_v52, -inf }
0x10de   :  { %2577 = vmax.xlane.f32.xlu1 %v2576_v59 }
0x10e3   :  { %v2487_v60 = vpop.f32.mrf.mxu1 }
0x10e4   :  { %v2488_v1 = vadd.f32 %v2487_v60, %v9897_v25 }
0x10e5   :  { %v8619_v36 = vpop.f32.mrf.mxu1 }
0x10e6   :  { %v2573_v61 = vsel %vm1678_vm4, %v2488_v1, -inf }
0x10e7   :  { %2574 = vmax.xlane.f32.xlu0 %v2573_v61 }
0x10ef   :  { %2597 = vrot.lane.b32.xlu1 %v9862_v56, %s11134_s24 }
0x10f3   :  { %2676 = vrot.lane.b32.xlu1 %v9875_v3, %s11134_s24 }
0x10f7   :  { %2674 = vrot.lane.b32.xlu1 %v9886_v2, %s11134_s24 }
0x10fb   :  { %2839 = vrot.lane.b32.xlu1 %v9875_v3, %s11154_s28 }
0x10ff   :  { %2837 = vrot.lane.b32.xlu1 %v9886_v2, %s11154_s28 }
0x1103   :  { %2835 = vrot.lane.b32.xlu1 %v9890_v4, %s11154_s28 }
0x1167   :  { %v2578_v63 = vpop.xlane.xlu1 %2577 }
0x1168   :  { %v2580_v0 = vsub.f32 %v2570_v52, %v2578_v63 }
0x116a   :  { %v2583_v34 = vmul.f32 1.442695, %v2580_v0 }
0x116b   :  { %v2598_v5 = vpop.permute.xlu1 %2597 }
0x116c   :  { %9172 = vpow2.f32 %v2583_v34  ;;  %8628 = vmatpush3.msra.mxu1 %v2598_v5 }
0x116d   :  { %8629 = vmatprep.subr.mxu1 %v9308_v27 }
0x116f   :  { %v2677_v15 = vpop.permute.xlu1 %2676 }
0x1170   :  { %v2575_v7 = vpop.xlane.xlu0 %2574 }
0x1171   :  { %v2579_v8 = vsub.f32 %v2488_v1, %v2575_v7 }
0x1173   :  { %v2581_v9 = vmul.f32 1.442695, %v2579_v8  ;;  %v2675_v18 = vpop.permute.xlu1 %2674 }
0x1175   :  { %9174 = vpow2.f32 %v2581_v9 }
0x1177   :  { %v2840_v23 = vpop.permute.xlu1 %2839 }
0x1179   :  { %v9173_v26 = vpop.eup %9172 }
0x117a   :  { %v2588_v6 = vsel %vm1678_vm4, %v9173_v26, 0.0 }
0x117b   :  { %2589 = vadd.xlane.f32.xlu0 %v2588_v6  ;;  %v2838_v31 = vpop.permute.xlu1 %2837 }
0x117f   :  { %v2836_v28 = vpop.permute.xlu1 %2835 }
0x1182   :  { %v9175_v10 = vpop.eup %9174 }
0x1183   :  { %v2585_v11 = vsel %vm1678_vm4, %v9175_v10, 0.0 }
0x1191   :  { %2595 = vrot.lane.b32.xlu0 %v9866_v58, %s11134_s24  ;;  %s11161_s24 = smov 96  }
0x11b0   :  { %2586 = vadd.xlane.f32.xlu0 %v2585_v11 }
0x11c6   :  { %2757 = vrot.lane.b32.xlu0 %v9862_v56, %s11154_s28 }
0x11ca   :  { %2755 = vrot.lane.b32.xlu0 %v9866_v58, %s11154_s28 }
0x11ce   :  { %2753 = vrot.lane.b32.xlu0 %v9877_v62, %s11154_s28 }
0x1204   :  { %v2590_v12 = vpop.xlane.xlu0 %2589 }
0x1208   :  { %v2596_v13 = vpop.permute.xlu0 %2595 }
0x1209   :  { %8630 = vmatpush3.msra.mxu1 %v2596_v13 }
0x120a   :  { %8634 = vmatprep.subr.mxu1 %v9308_v27 }
0x1239   :  { %v2587_v14 = vpop.xlane.xlu0 %2586 }
0x123a   :  { %9176 = vrcp.f32 %v2587_v14 }
0x123b   :  { %9178 = vrcp.f32 %v2590_v12 }
0x123d   :  { %v2758_v16 = vpop.permute.xlu0 %2757 }
0x123e   :  { %8642 = vmatpush3.xpose.msk.msra.mxu0 %vm334_vm3, %v2758_v16 }
0x123f   :  { %8643 = vmatprep.subr.mxu0 %v9308_v27 }
0x1241   :  { %v2756_v17 = vpop.permute.xlu0 %2755 }
0x1242   :  { %8644 = vmatpush3.xpose.msk.msra.mxu0 %vm334_vm3, %v2756_v17 }
0x1243   :  { %8655 = vmatprep.subr.mxu0 %v9308_v27 }
0x1245   :  { %v2754_v19 = vpop.permute.xlu0 %2753 }
0x1246   :  { %8646 = vmatmul.mubr.msk.f32.vlgmr.msra.gmra.mxu0 %vm334_vm3, %v2754_v19 }
0x1247   :  { %v9177_v20 = vpop.eup %9176  ;;  %8659 = vmatprep.mubr.msk.f32.mxu0 %vm9309_vm2, %v9308_v27 }
0x1248   :  { %v2593_v21 = vmul.f32 %v9177_v20, %v9175_v10  ;;  %v9179_v22 = vpop.eup %9178 }
0x1249   :  { %v2594_v24 = vmul.f32 %v9179_v22, %v9173_v26 }
0x124a   :  { %8632 = vmatmul.mubr.msk.f32.vlgmr.msra.gmra.mxu1 %vm1678_vm4, %v2593_v21 }
0x124b   :  { %8635 = vmatpush3.msra.mxu1 %v2677_v15  ;;  %8638 = vmatprep.mubr.msk.f32.mxu1 %vm9309_vm2, %v9308_v27 }
0x124c   :  { %8636 = vmatprep.subr.mxu1 %v9308_v27 }
0x124d   :  { %8637 = vmatpush3.msra.mxu1 %v2675_v18 }
0x124e   :  { %8648 = vmatprep.subr.mxu1 %v9308_v27  ;;  %8639 = vmatmul.mubr.msk.f32.vlgmr.msra.gmra.mxu1 %vm1678_vm4, %v2594_v24 }
0x124f   :  { %8649 = vmatpush3.xpose.msk.msra.mxu1 %vm334_vm3, %v2840_v23  ;;  %8652 = vmatprep.mubr.msk.f32.mxu1 %vm9309_vm2, %v9308_v27 }
0x1250   :  { %8650 = vmatprep.subr.mxu1 %v9308_v27 }
0x1253   :  { %8651 = vmatpush3.xpose.msk.msra.mxu1 %vm334_vm3, %v2838_v31 }
0x1254   :  { %8662 = vmatprep.subr.mxu1 %v9308_v27 }
0x1256   :  { %8653 = vmatmul.mubr.msk.f32.vlgmr.msra.gmra.mxu1 %vm334_vm3, %v2836_v28 }
0x1257   :  { %8666 = vmatprep.mubr.msk.f32.mxu1 %vm9309_vm2, %v9308_v27 }
0x1306   :  { %v2831_v29 = vpop.f32.mrf.mxu0 }
0x1307   :  { %v2832_v30 = vadd.f32 %v2831_v29, %v9897_v25 }
0x1308   :  { %v8647_v33 = vpop.f32.mrf.mxu0 }
0x1309   :  { %v2917_v35 = vsel %vm1678_vm4, %v2832_v30, -inf }
0x130a   :  { %2918 = vmax.xlane.f32.xlu0 %v2917_v35  ;;  %v10005_v37 = vpop.f32.mrf.mxu1 }
0x130c   :  { %v8633_v38 = vpop.f32.mrf.mxu1 }
0x130e   :  { %v10007_v39 = vpop.f32.mrf.mxu1 }
0x1310   :  { %v8640_v40 = vpop.f32.mrf.mxu1 }
0x1316   :  { %v2913_v44 = vpop.f32.mrf.mxu1 }
0x1317   :  { %v2914_v45 = vadd.f32 %v2913_v44, %v9897_v25 }
0x1318   :  { %v8654_v46 = vpop.f32.mrf.mxu1 }
0x1319   :  { %v2920_v47 = vsel %vm1678_vm4, %v2914_v45, -inf }
0x131a   :  { %2921 = vmax.xlane.f32.xlu1 %v2920_v47 }
0x132b   :  { %2941 = vrot.lane.b32.xlu1 %v9862_v56, %s11155_s30 }
0x132f   :  { %2939 = vrot.lane.b32.xlu1 %v9866_v58, %s11155_s30 }
0x1333   :  { %3018 = vrot.lane.b32.xlu1 %v9886_v2, %s11155_s30 }
0x1337   :  { %3183 = vrot.lane.b32.xlu1 %v9875_v3, %s11156_s29 }
0x133b   :  { %3181 = vrot.lane.b32.xlu1 %v9886_v2, %s11156_s29 }
0x133f   :  { %3179 = vrot.lane.b32.xlu1 %v9890_v4, %s11156_s29 }
0x1393   :  { %v2919_v49 = vpop.xlane.xlu0 %2918 }
0x1394   :  { %v2923_v50 = vsub.f32 %v2832_v30, %v2919_v49 }
0x1396   :  { %v2925_v52 = vmul.f32 1.442695, %v2923_v50 }
0x1398   :  { %9180 = vpow2.f32 %v2925_v52 }
0x13a3   :  { %v2922_v55 = vpop.xlane.xlu1 %2921 }
0x13a4   :  { %v2924_v4 = vsub.f32 %v2914_v45, %v2922_v55 }
0x13a5   :  { %v9181_v57 = vpop.eup %9180 }
0x13a6   :  { %v2929_v59 = vsel %vm1678_vm4, %v9181_v57, 0.0  ;;  %v2927_v36 = vmul.f32 1.442695, %v2924_v4 }
0x13a7   :  { %v2942_v60 = vpop.permute.xlu1 %2941  ;;  %2930 = vadd.xlane.f32.xlu0 %v2929_v59  ;;  %v3473_v59 = vld [vmem:[%s11094_s13 + $0x10] sm:$0xff] }
0x13a8   :  { %8656 = vmatpush3.msra.mxu0 %v2942_v60  ;;  %9182 = vpow2.f32 %v2927_v36  ;;  %v3472_v60 = vld [vmem:[%s11094_s13 + $0x8] sm:$0xff] }
0x13a9   :  { %8657 = vmatprep.subr.mxu0 %v9308_v27 }
0x13ab   :  { %v2940_v1 = vpop.permute.xlu1 %2939 }
0x13ac   :  { %8658 = vmatpush3.msra.mxu0 %v2940_v1  ;;  %v3471_v1 = vld [vmem:[%s11094_s13] sm:$0xff] }
0x13ad   :  { %8669 = vmatprep.subr.mxu0 %v9308_v27 }
0x13af   :  { %v3019_v5 = vpop.permute.xlu1 %3018 }
0x13b3   :  { %v3184_v10 = vpop.permute.xlu1 %3183 }
0x13b5   :  { %v9183_v61 = vpop.eup %9182 }
0x13b6   :  { %v2932_v63 = vsel %vm1678_vm4, %v9183_v61, 0.0 }
0x13b7   :  { %v3182_v13 = vpop.permute.xlu1 %3181 }
0x13bb   :  { %v3180_v14 = vpop.permute.xlu1 %3179 }
0x13bd   :  { %3020 = vrot.lane.b32.xlu0 %v9875_v3, %s11155_s30 }
0x13c1   :  { %3101 = vrot.lane.b32.xlu0 %v9862_v56, %s11156_s29 }
0x13e0   :  { %2933 = vadd.xlane.f32.xlu0 %v2932_v63 }
0x13f6   :  { %3099 = vrot.lane.b32.xlu0 %v9866_v58, %s11156_s29 }
0x13fa   :  { %3097 = vrot.lane.b32.xlu0 %v9877_v62, %s11156_s29 }
0x1430   :  { %v2931_v0 = vpop.xlane.xlu0 %2930 }
0x1431   :  { %9184 = vrcp.f32 %v2931_v0 }
0x1434   :  { %v3021_v34 = vpop.permute.xlu0 %3020 }
0x1435   :  { %8663 = vmatpush3.msra.mxu1 %v3021_v34 }
0x1436   :  { %8664 = vmatprep.subr.mxu1 %v9308_v27 }
0x1437   :  { %8665 = vmatpush3.msra.mxu1 %v3019_v5 }
0x1438   :  { %8676 = vmatprep.subr.mxu1 %v9308_v27  ;;  %v3102_v7 = vpop.permute.xlu0 %3101 }
0x143e   :  { %v9185_v26 = vpop.eup %9184 }
0x143f   :  { %v2937_v6 = vmul.f32 %v9185_v26, %v9181_v57 }
0x1441   :  { %8660 = vmatmul.mubr.msk.f32.vlgmr.msra.gmra.mxu0 %vm1678_vm4, %v2937_v6 }
0x1442   :  { %8670 = vmatpush3.xpose.msk.msra.mxu0 %vm334_vm3, %v3102_v7  ;;  %8673 = vmatprep.mubr.msk.f32.mxu0 %vm9309_vm2, %v9308_v27 }
0x1443   :  { %8671 = vmatprep.subr.mxu0 %v9308_v27 }
0x1469   :  { %v2934_v62 = vpop.xlane.xlu0 %2933 }
0x146a   :  { %9186 = vrcp.f32 %v2934_v62 }
0x146d   :  { %v3100_v8 = vpop.permute.xlu0 %3099 }
0x146e   :  { %8672 = vmatpush3.xpose.msk.msra.mxu0 %vm334_vm3, %v3100_v8 }
0x146f   :  { %8683 = vmatprep.subr.mxu0 %v9308_v27 }
0x1471   :  { %v3098_v9 = vpop.permute.xlu0 %3097 }
0x1472   :  { %8674 = vmatmul.mubr.msk.f32.vlgmr.msra.gmra.mxu0 %vm334_vm3, %v3098_v9 }
0x1473   :  { %8687 = vmatprep.mubr.msk.f32.mxu0 %vm9309_vm2, %v9308_v27 }
0x1477   :  { %v9187_v11 = vpop.eup %9186 }
0x1478   :  { %v2938_v12 = vmul.f32 %v9187_v11, %v9183_v61 }
0x147a   :  { %8667 = vmatmul.mubr.msk.f32.vlgmr.msra.gmra.mxu1 %vm1678_vm4, %v2938_v12 }
0x147b   :  { %8677 = vmatpush3.xpose.msk.msra.mxu1 %vm334_vm3, %v3184_v10  ;;  %8680 = vmatprep.mubr.msk.f32.mxu1 %vm9309_vm2, %v9308_v27 }
0x147c   :  { %8678 = vmatprep.subr.mxu1 %v9308_v27 }
0x147f   :  { %8679 = vmatpush3.xpose.msk.msra.mxu1 %vm334_vm3, %v3182_v13 }
0x1480   :  { %8690 = vmatprep.subr.mxu1 %v9308_v27 }
0x1482   :  { %8681 = vmatmul.mubr.msk.f32.vlgmr.msra.gmra.mxu1 %vm334_vm3, %v3180_v14 }
0x1483   :  { %8694 = vmatprep.mubr.msk.f32.mxu1 %vm9309_vm2, %v9308_v27 }
0x1501   :  { %v3014_v15 = vpop.f32.mrf.mxu0 }
0x1503   :  { %v8661_v16 = vpop.f32.mrf.mxu0 }
0x1532   :  { %v3175_v17 = vpop.f32.mrf.mxu0 }
0x1533   :  { %v3176_v18 = vadd.f32 %v3175_v17, %v9897_v25 }
0x1534   :  { %v8675_v19 = vpop.f32.mrf.mxu0 }
0x1535   :  { %v3261_v20 = vsel %vm1678_vm4, %v3176_v18, -inf }
0x1536   :  { %3262 = vmax.xlane.f32.xlu0 %v3261_v20  ;;  %v3630_v20 = vld [vmem:[%s11096_s15 + $0x78] sm:$0xff] }
0x153a   :  { %v3093_v21 = vpop.f32.mrf.mxu1 }
0x153c   :  { %v8668_v22 = vpop.f32.mrf.mxu1 }
0x153d   :  { %v3626_v22 = vld [vmem:[%s11096_s15 + $0x58] sm:$0xff] }
0x1542   :  { %v3257_v23 = vpop.f32.mrf.mxu1 }
0x1543   :  { %v3258_v24 = vadd.f32 %v3257_v23, %v9897_v25  ;;  %v3625_v23 = vld [vmem:[%s11096_s15 + $0x50] sm:$0xff] }
0x1544   :  { %v8682_v31 = vpop.f32.mrf.mxu1 }
0x1545   :  { %v3264_v28 = vsel %vm1678_vm4, %v3258_v24, -inf  ;;  %v3623_v31 = vld [vmem:[%s11096_s15 + $0x40] sm:$0xff] }
0x1546   :  { %3265 = vmax.xlane.f32.xlu1 %v3264_v28  ;;  %v3622_v28 = vld [vmem:[%s11096_s15 + $0x38] sm:$0xff] }
0x1557   :  { %3285 = vrot.lane.b32.xlu1 %v9862_v56, %s11157_s5 }
0x155b   :  { %3283 = vrot.lane.b32.xlu1 %v9866_v58, %s11157_s5 }
0x155f   :  { %3362 = vrot.lane.b32.xlu1 %v9886_v2, %s11157_s5 }
0x1563   :  { %3445 = vrot.lane.b32.xlu1 %v10007_v39, %s11158_s26 }
0x1567   :  { %3453 = vrot.lane.b32.xlu1 %v3093_v21, %s11159_s2  ;;  %v3629_v21 = vld [vmem:[%s11096_s15 + $0x70] sm:$0xff] }
0x15bf   :  { %v3263_v29 = vpop.xlane.xlu0 %3262 }
0x15c0   :  { %v3267_v30 = vsub.f32 %v3176_v18, %v3263_v29 }
0x15c2   :  { %v3269_v33 = vmul.f32 1.442695, %v3267_v30 }
0x15c4   :  { %9188 = vpow2.f32 %v3269_v33 }
0x15cf   :  { %v3266_v35 = vpop.xlane.xlu1 %3265 }
0x15d0   :  { %v3268_v38 = vsub.f32 %v3258_v24, %v3266_v35  ;;  %v3624_v24 = vld [vmem:[%s11096_s15 + $0x48] sm:$0xff] }
0x15d1   :  { %v9189_v40 = vpop.eup %9188 }
0x15d2   :  { %v3271_v44 = vmul.f32 1.442695, %v3268_v38  ;;  %v3273_v56 = vsel %vm1678_vm4, %v9189_v40, 0.0 }
0x15d3   :  { %v3286_v45 = vpop.permute.xlu1 %3285  ;;  %3274 = vadd.xlane.f32.xlu0 %v3273_v56 }
0x15d4   :  { %9190 = vpow2.f32 %v3271_v44  ;;  %8684 = vmatpush3.msra.mxu0 %v3286_v45 }
0x15d5   :  { %8685 = vmatprep.subr.mxu0 %v9308_v27 }
0x15d7   :  { %v3284_v58 = vpop.permute.xlu1 %3283 }
0x15d8   :  { %8686 = vmatpush3.msra.mxu0 %v3284_v58 }
0x15db   :  { %v3363_v55 = vpop.permute.xlu1 %3362 }
0x15df   :  { %v3446_v62 = vpop.permute.xlu1 %3445 }
0x15e0   :  { %v3466_v9 = vsel %vm334_vm3, %v9952_v54, %v3446_v62 }
0x15e1   :  { %v9191_v2 = vpop.eup %9190 }
0x15e2   :  { %v3276_v39 = vsel %vm1678_vm4, %v9191_v2, 0.0 }
0x15e3   :  { %3277 = vadd.xlane.f32.xlu0 %v3276_v39  ;;  %v3454_v8 = vpop.permute.xlu1 %3453  ;;  %v3620_v39 = vld [vmem:[%s11096_s15 + $0x28] sm:$0xff] }
0x15e4   :  { %v3468_v10 = vsel %vm1678_vm4, %v3466_v9, %v3454_v8 }
0x15f9   :  { %3364 = vrot.lane.b32.xlu0 %v9875_v3, %s11157_s5 }
0x15fd   :  { %3443 = vrot.lane.b32.xlu0 %v10005_v37, %s11158_s26  ;;  %v3474_v37 = vld [vmem:[%s11094_s13 + $0x18] sm:$0xff] }
0x15fe   :  { %8697 = vmatprep.subr.msk.mxu0 %vm211_vm1, %v3474_v37 }
0x1601   :  { %3451 = vrot.lane.b32.xlu0 %v3014_v15, %s11159_s2 }
0x165c   :  { %v3275_v46 = vpop.xlane.xlu0 %3274 }
0x165d   :  { %9192 = vrcp.f32 %v3275_v46  ;;  %v3619_v46 = vld [vmem:[%s11096_s15 + $0x20] sm:$0xff] }
0x166a   :  { %v9193_v47 = vpop.eup %9192 }
0x166b   :  { %v3281_v49 = vmul.f32 %v9193_v47, %v9189_v40  ;;  %v3618_v47 = vld [vmem:[%s11096_s15 + $0x18] sm:$0xff] }
0x166c   :  { %v3278_v50 = vpop.xlane.xlu0 %3277 }
0x166d   :  { %9194 = vrcp.f32 %v3278_v50  ;;  %8688 = vmatmul.mubr.msk.f32.vlgmr.msra.gmra.mxu0 %vm1678_vm4, %v3281_v49  ;;  %v3617_v49 = vld [vmem:[%s11096_s15 + $0x10] sm:$0xff]  ;;  %v3616_v50 = vld [vmem:[%s11096_s15 + $0x8] sm:$0xff] }
0x166e   :  { %8698 = vmatpush3.xpose.msk.msra.mxu0 %vm211_vm1, %v3474_v37 }
0x166f   :  { %8699 = vmatprep.subr.msk.mxu0 %vm211_vm1, %v3473_v59 }
0x1670   :  { %v3365_v52 = vpop.permute.xlu0 %3364 }
0x1671   :  { %8691 = vmatpush3.msra.mxu1 %v3365_v52  ;;  %v3615_v52 = vld [vmem:[%s11096_s15] sm:$0xff] }
0x1672   :  { %8692 = vmatprep.subr.mxu1 %v9308_v27  ;;  %8700 = vmatpush3.xpose.msk.msra.mxu0 %vm211_vm1, %v3473_v59 }
0x1673   :  { %8693 = vmatpush3.msra.mxu1 %v3363_v55  ;;  %8701 = vmatprep.subr.msk.mxu0 %vm211_vm1, %v3472_v60  ;;  %v3772_v55 = vld [vmem:[%s11098_s17 + $0x18] sm:$0xff] }
0x1674   :  { %v3444_v0 = vpop.permute.xlu0 %3443  ;;  %8708 = vmatprep.subr.msk.mxu1 %vm211_vm1, %v3630_v20 }
0x1675   :  { %v3465_v5 = vsel %vm334_vm3, %v9949_v48, %v3444_v0  ;;  %v7872_v48 = vld [vmem:[%s11095_s14] ss:$0 sm:$0xff] }
0x1676   :  { %8702 = vmatpush3.xpose.msk.msra.mxu0 %vm211_vm1, %v3472_v60 }
0x1677   :  { %8703 = vmatprep.subr.msk.mxu0 %vm211_vm1, %v3471_v1 }
0x1678   :  { %v3452_v34 = vpop.permute.xlu0 %3451 }
0x1679   :  { %v3467_v26 = vsel %vm1678_vm4, %v3465_v5, %v3452_v34 }
0x167a   :  { %v9195_v3 = vpop.eup %9194  ;;  %8704 = vmatpush3.xpose.msk.msra.mxu0 %vm211_vm1, %v3471_v1 }
0x167b   :  { %v3282_v57 = vmul.f32 %v9195_v3, %v9191_v2  ;;  %v3621_v2 = vld [vmem:[%s11096_s15 + $0x30] sm:$0xff]  ;;  %8743 = vmatprep.subr.mxu0 %v3772_v55 }
0x167c   :  { %v3771_v3 = vld [vmem:[%s11098_s17 + $0x10] sm:$0xff] }
0x167d   :  { %8695 = vmatmul.mubr.msk.f32.vlgmr.msra.gmra.mxu1 %vm1678_vm4, %v3282_v57 }
0x167e   :  { %8709 = vmatpush3.xpose.msk.msra.mxu1 %vm211_vm1, %v3630_v20 }
0x167f   :  { %8710 = vmatprep.subr.msk.mxu1 %vm211_vm1, %v3629_v21 }
0x1682   :  { %8711 = vmatpush3.xpose.msk.msra.mxu1 %vm211_vm1, %v3629_v21 }
0x172d   :  { %v3358_v4 = vpop.f32.mrf.mxu0 }
0x172e   :  { %3459 = vrot.lane.b32.xlu0 %v3358_v4, %s11160_s6 }
0x172f   :  { %v8689_v36 = vpop.f32.mrf.mxu0 }
0x1730   :  { %v3605_v36 = vsub.s32 2, %v9833_v41 }
0x173d   :  { %v3437_v61 = vpop.f32.mrf.mxu1 }
0x173e   :  { %3461 = vrot.lane.b32.xlu1 %v3437_v61, %s11160_s6  ;;  %v3611_v61 = vsub.s32 3, %v9833_v41 }
0x173f   :  { %v8696_v63 = vpop.f32.mrf.mxu1 }
0x1740   :  { %v3606_v63 = vrot.slane %v9839_v42, %v3605_v36  ;;  %v3612_v5 = vrot.slane %v9839_v42, %v3611_v61  ;;  %v3769_v42 = vld [vmem:[%s11098_s17] sm:$0xff] }
0x17a0   :  { %v3460_v6 = vpop.permute.xlu0 %3459 }
0x17a1   :  { %v3469_v7 = vsel %vm1681_vm5, %v3467_v26, %v3460_v6 }
0x17a2   :  { %8705 = vmatprep.mubr.msk.f32.mxu0 %vm211_vm1, %v3469_v7 }
0x17b0   :  { %v3462_v11 = vpop.permute.xlu1 %3461 }
0x17b1   :  { %v3470_v12 = vsel %vm1681_vm5, %v3468_v10, %v3462_v11  ;;  %v3770_v10 = vld [vmem:[%s11098_s17 + $0x8] sm:$0xff]  ;;  %v7879_v11 = vld [vmem:[%s11097_s16] ss:$0 sm:$0xff] }
0x17b2   :  { %8706 = vmatmul.mubr.msk.f32.vlgmr.msra.gmra.mxu0 %vm211_vm1, %v3470_v12 }
0x17b3   :  { %8744 = vmatpush3.xpose.msra.mxu0 %v3772_v55  ;;  %v7900_v55 = vld [vmem:[%s11149_s27 + $0x60] sm:$0xff] }
0x17b4   :  { %8745 = vmatprep.subr.mxu0 %v3771_v3 }
0x17b7   :  { %8746 = vmatpush3.xpose.msra.mxu0 %v3771_v3 }
0x17b8   :  { %8747 = vmatprep.subr.mxu0 %v3770_v10 }
0x17bb   :  { %8748 = vmatpush3.xpose.msra.mxu0 %v3770_v10 }
0x17bc   :  { %8749 = vmatprep.subr.mxu0 %v3769_v42 }
0x17bf   :  { %8750 = vmatpush3.xpose.msra.mxu0 %v3769_v42 }
0x1872   :  { %v8707_v13 = vpop.f32.mrf.mxu0 }
0x1873   :  { %v3572_v14 = vadd.f32 %v8707_v13, %v7872_v48 }
0x1874   :  { %v3566_v15 = vpop.f32.mrf.mxu0 }
0x1875   :  { %v3576_v16 = vadd.f32 %v3572_v14, %v9853_v53  ;;  %v3567_v17 = vadd.f32 %v7872_v48, %v3566_v15  ;;  %v3627_v53 = vld [vmem:[%s11096_s15 + $0x60] sm:$0xff] }
0x1877   :  { %v3580_v18 = vsel %vm211_vm1, %v3576_v16, 0.0  ;;  %v3575_v54 = vadd.f32 %v3567_v17, %v9849_v51  ;;  %v3628_v51 = vld [vmem:[%s11096_s15 + $0x68] sm:$0xff]  ;;  %v7898_v17 = vld [vmem:[%s11099_s18] ss:$0 sm:$0xff] }
0x1878   :  { %3581 = vadd.xlane.f32.xlu1 %v3580_v18  ;;  %8712 = vmatprep.subr.msk.mxu1 %vm211_vm1, %v3628_v51 }
0x1879   :  { %v3577_v19 = vsel %vm211_vm1, %v3575_v54, 0.0  ;;  %8713 = vmatpush3.xpose.msk.msra.mxu1 %vm211_vm1, %v3628_v51 }
0x187a   :  { %3578 = vadd.xlane.f32.xlu0 %v3577_v19  ;;  %8714 = vmatprep.subr.msk.mxu1 %vm211_vm1, %v3627_v53 }
0x187d   :  { %8715 = vmatpush3.xpose.msk.msra.mxu1 %vm211_vm1, %v3627_v53 }
0x187e   :  { %8716 = vmatprep.subr.msk.mxu1 %vm211_vm1, %v3626_v22 }
0x1881   :  { %8717 = vmatpush3.xpose.msk.msra.mxu1 %vm211_vm1, %v3626_v22 }
0x1882   :  { %8718 = vmatprep.subr.msk.mxu1 %vm211_vm1, %v3625_v23 }
0x1885   :  { %8719 = vmatpush3.xpose.msk.msra.mxu1 %vm211_vm1, %v3625_v23  ;;  %v7911_v23 = vld [vmem:[%s11149_s27 + $0xb8] sm:$0xff] }
0x1886   :  { %8720 = vmatprep.subr.msk.mxu1 %vm211_vm1, %v3624_v24  ;;  %8754 = vmatprep.subr.msk.mxu0 %vm211_vm1, %v7911_v23 }
0x1889   :  { %8721 = vmatpush3.xpose.msk.msra.mxu1 %vm211_vm1, %v3624_v24  ;;  %v7910_v24 = vld [vmem:[%s11149_s27 + $0xb0] sm:$0xff] }
0x188a   :  { %8722 = vmatprep.subr.msk.mxu1 %vm211_vm1, %v3623_v31 }
0x188d   :  { %8723 = vmatpush3.xpose.msk.msra.mxu1 %vm211_vm1, %v3623_v31  ;;  %v7909_v31 = vld [vmem:[%s11149_s27 + $0xa8] sm:$0xff] }
0x188e   :  { %8724 = vmatprep.subr.msk.mxu1 %vm211_vm1, %v3622_v28 }
0x1891   :  { %8725 = vmatpush3.xpose.msk.msra.mxu1 %vm211_vm1, %v3622_v28  ;;  %v7908_v28 = vld [vmem:[%s11149_s27 + $0xa0] sm:$0xff] }
0x1892   :  { %8726 = vmatprep.subr.msk.mxu1 %vm211_vm1, %v3621_v2 }
0x1895   :  { %8727 = vmatpush3.xpose.msk.msra.mxu1 %vm211_vm1, %v3621_v2 }
0x1896   :  { %8728 = vmatprep.subr.msk.mxu1 %vm211_vm1, %v3620_v39 }
0x1899   :  { %8729 = vmatpush3.xpose.msk.msra.mxu1 %vm211_vm1, %v3620_v39 }
0x189a   :  { %8730 = vmatprep.subr.msk.mxu1 %vm211_vm1, %v3619_v46 }
0x189d   :  { %8731 = vmatpush3.xpose.msk.msra.mxu1 %vm211_vm1, %v3619_v46  ;;  %v7905_v46 = vld [vmem:[%s11149_s27 + $0x88] sm:$0xff] }
0x189e   :  { %8732 = vmatprep.subr.msk.mxu1 %vm211_vm1, %v3618_v47 }
0x18a1   :  { %8733 = vmatpush3.xpose.msk.msra.mxu1 %vm211_vm1, %v3618_v47  ;;  %v7904_v47 = vld [vmem:[%s11149_s27 + $0x80] sm:$0xff] }
0x18a2   :  { %8734 = vmatprep.subr.msk.mxu1 %vm211_vm1, %v3617_v49 }
0x18a5   :  { %8735 = vmatpush3.xpose.msk.msra.mxu1 %vm211_vm1, %v3617_v49  ;;  %v7903_v49 = vld [vmem:[%s11149_s27 + $0x78] sm:$0xff] }
0x18a6   :  { %8736 = vmatprep.subr.msk.mxu1 %vm211_vm1, %v3616_v50 }
0x18a9   :  { %8737 = vmatpush3.xpose.msk.msra.mxu1 %vm211_vm1, %v3616_v50  ;;  %v7902_v50 = vld [vmem:[%s11149_s27 + $0x70] sm:$0xff] }
0x18aa   :  { %8738 = vmatprep.subr.msk.mxu1 %vm211_vm1, %v3615_v52 }
0x18ad   :  { %8739 = vmatpush3.xpose.msk.msra.mxu1 %vm211_vm1, %v3615_v52  ;;  %v7901_v52 = vld [vmem:[%s11149_s27 + $0x68] sm:$0xff] }
0x18ae   :  { %8781 = vmatprep.subr.mxu1 %v9308_v27 }
0x1901   :  { %v3582_v29 = vpop.xlane.xlu1 %3581 }
0x1902   :  { %v3584_v30 = vmul.f32 0.03125, %v3582_v29  ;;  %v7907_v29 = vld [vmem:[%s11149_s27 + $0x98] sm:$0xff] }
0x1903   :  { %v3579_v33 = vpop.xlane.xlu0 %3578 }
0x1904   :  { %v3583_v35 = vmul.f32 0.03125, %v3579_v33  ;;  %v3586_v38 = vsub.f32 %v3576_v16, %v3584_v30  ;;  %v7906_v30 = vld [vmem:[%s11149_s27 + $0x90] sm:$0xff]  ;;  %s11165_s27 = smov 56  }
0x1906   :  { %v3585_v40 = vsub.f32 %v3575_v54, %v3583_v35  ;;  %v3588_v45 = vmul.f32 %v3586_v38, %v3586_v38 }
0x1908   :  { %v3587_v44 = vmul.f32 %v3585_v40, %v3585_v40  ;;  %v3592_v58 = vsel %vm211_vm1, %v3588_v45, 0.0 }
0x190a   :  { %v3589_v56 = vsel %vm211_vm1, %v3587_v44, 0.0 }
0x190b   :  { %3590 = vadd.xlane.f32.xlu0 %v3589_v56 }
0x190f   :  { %3593 = vadd.xlane.f32.xlu0 %v3592_v58 }
0x1994   :  { %v3591_v57 = vpop.xlane.xlu0 %3590 }
0x1995   :  { %v3595_v37 = vmul.f32 0.03125, %v3591_v57 }
0x1997   :  { %v3597_v59 = vadd.f32 1e-05, %v3595_v37 }
0x1998   :  { %v3594_v60 = vpop.xlane.xlu0 %3593 }
0x1999   :  { %9196 = vrsqrt.f32 %v3597_v59  ;;  %v3596_v1 = vmul.f32 0.03125, %v3594_v60 }
0x199b   :  { %v3598_v4 = vadd.f32 1e-05, %v3596_v1 }
0x199d   :  { %9198 = vrsqrt.f32 %v3598_v4  ;;  %v3885_v4 = vsub.s32 4, %v9833_v41 }
0x19a6   :  { %v9197_v0 = vpop.eup %9196 }
0x19a7   :  { %v3601_v34 = vmul.f32 %v9197_v0, %v3585_v40  ;;  %v9280_v0 = vld [vmem:[%s11100_s19] sm:$0x3f] }
0x19a9   :  { %v3607_v26 = vmul.f32 %v3606_v63, %v3601_v34  ;;  %v3886_v34 = vrot.slane %v9280_v0, %v3885_v4 }
0x19aa   :  { %v9199_v6 = vpop.eup %9198 }
0x19ab   :  { %v3602_v7 = vmul.f32 %v9199_v6, %v3586_v38  ;;  %v3613_v62 = vadd.f32 %v3612_v5, %v3607_v26 }
0x19ad   :  { %v3608_v8 = vmul.f32 %v3606_v63, %v3602_v7  ;;  %8740 = vmatprep.mubr.msk.f32.mxu1 %vm211_vm1, %v3613_v62 }
0x19af   :  { %v3614_v9 = vadd.f32 %v3612_v5, %v3608_v8  ;;  %v3891_v5 = vsub.s32 5, %v9833_v41 }
0x19b1   :  { %8741 = vmatmul.mubr.msk.f32.vlgmr.msra.gmra.mxu1 %vm211_vm1, %v3614_v9  ;;  %v3892_v8 = vrot.slane %v9280_v0, %v3891_v5 }
0x19b2   :  { %8783 = vmatprep.mubr.msk.f32.mxu1 %vm9309_vm2, %v9308_v27 }
0x1a71   :  { %v8742_v12 = vpop.f32.mrf.mxu1 }
0x1a72   :  { %v3764_v48 = vadd.f32 %v8742_v12, %v7879_v11 }
0x1a73   :  { %v3758_v13 = vpop.f32.mrf.mxu1 }
0x1a74   :  { %v3759_v14 = vadd.f32 %v7879_v11, %v3758_v13  ;;  %v3768_v16 = vmax.f32 %v3764_v48, 0.0  ;;  %v7913_v11 = vld [vmem:[%s11152_s23 + $0x1] ss:$0 sm:$0xff]  ;;  %s11162_s23 = smov 64  }
0x1a76   :  { %v3767_v15 = vmax.f32 %v3759_v14, 0.0 }
0x1a78   :  { %8751 = vmatprep.mubr.f32.mxu0 %v3767_v15 }
0x1a79   :  { %8752 = vmatmul.mubr.f32.vlgmr.msra.gmra.mxu0 %v3768_v16 }
0x1a7a   :  { %8755 = vmatpush3.xpose.msk.msra.mxu0 %vm211_vm1, %v7911_v23 }
0x1a7b   :  { %8756 = vmatprep.subr.msk.mxu0 %vm211_vm1, %v7910_v24 }
0x1a7e   :  { %8757 = vmatpush3.xpose.msk.msra.mxu0 %vm211_vm1, %v7910_v24 }
0x1a7f   :  { %8758 = vmatprep.subr.msk.mxu0 %vm211_vm1, %v7909_v31 }
0x1a82   :  { %8759 = vmatpush3.xpose.msk.msra.mxu0 %vm211_vm1, %v7909_v31 }
0x1a83   :  { %8760 = vmatprep.subr.msk.mxu0 %vm211_vm1, %v7908_v28 }
0x1a86   :  { %8761 = vmatpush3.xpose.msk.msra.mxu0 %vm211_vm1, %v7908_v28 }
0x1a87   :  { %8762 = vmatprep.subr.msk.mxu0 %vm211_vm1, %v7907_v29 }
0x1a8a   :  { %8763 = vmatpush3.xpose.msk.msra.mxu0 %vm211_vm1, %v7907_v29 }
0x1a8b   :  { %8764 = vmatprep.subr.msk.mxu0 %vm211_vm1, %v7906_v30 }
0x1a8e   :  { %8765 = vmatpush3.xpose.msk.msra.mxu0 %vm211_vm1, %v7906_v30 }
0x1a8f   :  { %8766 = vmatprep.subr.msk.mxu0 %vm211_vm1, %v7905_v46 }
0x1a92   :  { %8767 = vmatpush3.xpose.msk.msra.mxu0 %vm211_vm1, %v7905_v46 }
0x1a93   :  { %8768 = vmatprep.subr.msk.mxu0 %vm211_vm1, %v7904_v47 }
0x1a96   :  { %8769 = vmatpush3.xpose.msk.msra.mxu0 %vm211_vm1, %v7904_v47 }
0x1a97   :  { %8770 = vmatprep.subr.msk.mxu0 %vm211_vm1, %v7903_v49 }
0x1a9a   :  { %8771 = vmatpush3.xpose.msk.msra.mxu0 %vm211_vm1, %v7903_v49 }
0x1a9b   :  { %8772 = vmatprep.subr.msk.mxu0 %vm211_vm1, %v7902_v50 }
0x1a9e   :  { %8773 = vmatpush3.xpose.msk.msra.mxu0 %vm211_vm1, %v7902_v50 }
0x1a9f   :  { %8774 = vmatprep.subr.msk.mxu0 %vm211_vm1, %v7901_v52 }
0x1aa2   :  { %8775 = vmatpush3.xpose.msk.msra.mxu0 %vm211_vm1, %v7901_v52 }
0x1aa3   :  { %8776 = vmatprep.subr.msk.mxu0 %vm211_vm1, %v7900_v55 }
0x1aa6   :  { %8777 = vmatpush3.xpose.msk.msra.mxu0 %vm211_vm1, %v7900_v55 }
0x1aa7   :  { %8801 = vmatprep.subr.mxu0 %v9308_v27 }
0x1b39   :  { %v8753_v18 = vpop.f32.mrf.mxu0 }
0x1b3a   :  { %v3852_v54 = vadd.f32 %v8753_v18, %v7898_v17 }
0x1b3b   :  { %v3846_v19 = vpop.f32.mrf.mxu0 }
0x1b3c   :  { %v3856_v20 = vadd.f32 %v3852_v54, %v3614_v9  ;;  %v3847_v21 = vadd.f32 %v7898_v17, %v3846_v19 }
0x1b3e   :  { %v3855_v51 = vadd.f32 %v3847_v21, %v3613_v62  ;;  %v3860_v53 = vsel %vm211_vm1, %v3856_v20, 0.0 }
0x1b3f   :  { %3861 = vadd.xlane.f32.xlu0 %v3860_v53 }
0x1b40   :  { %v3857_v22 = vsel %vm211_vm1, %v3855_v51, 0.0 }
0x1b41   :  { %3858 = vadd.xlane.f32.xlu1 %v3857_v22 }
0x1bc8   :  { %v3862_v33 = vpop.xlane.xlu0 %3861 }
0x1bc9   :  { %v3864_v35 = vmul.f32 0.03125, %v3862_v33 }
0x1bca   :  { %v3859_v38 = vpop.xlane.xlu1 %3858 }
0x1bcb   :  { %v3866_v40 = vsub.f32 %v3856_v20, %v3864_v35  ;;  %v3863_v44 = vmul.f32 0.03125, %v3859_v38 }
0x1bcd   :  { %v3865_v56 = vsub.f32 %v3855_v51, %v3863_v44  ;;  %v3868_v45 = vmul.f32 %v3866_v40, %v3866_v40 }
0x1bcf   :  { %v3872_v58 = vsel %vm211_vm1, %v3868_v45, 0.0  ;;  %v3867_v2 = vmul.f32 %v3865_v56, %v3865_v56 }
0x1bd0   :  { %3873 = vadd.xlane.f32.xlu0 %v3872_v58 }
0x1bd1   :  { %v3869_v39 = vsel %vm211_vm1, %v3867_v2, 0.0 }
0x1bd2   :  { %3870 = vadd.xlane.f32.xlu1 %v3869_v39 }
0x1c59   :  { %v3874_v3 = vpop.xlane.xlu0 %3873 }
0x1c5a   :  { %v3876_v57 = vmul.f32 0.03125, %v3874_v3 }
0x1c5b   :  { %v3871_v37 = vpop.xlane.xlu1 %3870 }
0x1c5c   :  { %v3878_v59 = vadd.f32 1e-05, %v3876_v57  ;;  %v3875_v60 = vmul.f32 0.03125, %v3871_v37 }
0x1c5e   :  { %9200 = vrsqrt.f32 %v3878_v59  ;;  %v3877_v1 = vadd.f32 1e-05, %v3875_v60 }
0x1c60   :  { %9202 = vrsqrt.f32 %v3877_v1 }
0x1c6b   :  { %v9201_v63 = vpop.eup %9200 }
0x1c6c   :  { %v3882_v26 = vmul.f32 %v9201_v63, %v3866_v40 }
0x1c6d   :  { %v9203_v6 = vpop.eup %9202 }
0x1c6e   :  { %v3881_v7 = vmul.f32 %v9203_v6, %v3865_v56  ;;  %v3888_v62 = vmul.f32 %v3886_v34, %v3882_v26 }
0x1c70   :  { %v3887_v9 = vmul.f32 %v3886_v34, %v3881_v7  ;;  %v10309_v42 = vadd.f32 %v3892_v8, %v3888_v62 }
0x1c72   :  { %v10307_v10 = vadd.f32 %v3892_v8, %v3887_v9 }
0x1c74   :  { %8778 = vmatprep.mubr.msk.f32.mxu0 %vm211_vm1, %v10307_v10 }
0x1c75   :  { %8779 = vmatmul.mubr.msk.f32.vlgmr.msra.gmra.mxu0 %vm211_vm1, %v10309_v42 }
0x1c76   :  { %8803 = vmatprep.mubr.msk.f32.mxu0 %vm9309_vm2, %v9308_v27 }
0x1d35   :  { %v8780_v12 = vpop.f32.mrf.mxu0 }
0x1d36   :  { %v10320_v48 = vadd.f32 %v8780_v12, %v7913_v11 }
0x1d37   :  { %v4026_v13 = vpop.f32.mrf.mxu0 }
0x1d38   :  { %v10322_v14 = vadd.f32 %v7913_v11, %v4026_v13  ;;  %4116 = vrot.lane.b32.xlu0 %v10320_v48, %s11161_s24  ;;  %v10339_v18 = vmul.f32 0.35355338, %v10320_v48 }
0x1d3a   :  { %4038 = vrot.lane.b32.xlu1 %v10322_v14, %s11161_s24  ;;  %v10330_v16 = vmul.f32 0.35355338, %v10322_v14 }
0x1daa   :  { %v4117_v17 = vpop.permute.xlu0 %4116 }
0x1dac   :  { %v4039_v15 = vpop.permute.xlu1 %4038 }
0x1dad   :  { %8782 = vmatpush3.xpose.msk.msra.mxu1 %vm334_vm3, %v4039_v15 }
0x1dae   :  { %8786 = vmatprep.subr.mxu1 %v9308_v27 }
0x1db0   :  { %8784 = vmatmul.mubr.msk.f32.vlgmr.msra.gmra.mxu1 %vm334_vm3, %v10330_v16 }
0x1db1   :  { %8787 = vmatpush3.xpose.msk.msra.mxu1 %vm334_vm3, %v4117_v17  ;;  %8788 = vmatprep.mubr.msk.f32.mxu1 %vm9309_vm2, %v9308_v27 }
0x1db2   :  { %8791 = vmatprep.subr.mxu1 %v9308_v27 }
0x1db4   :  { %8789 = vmatmul.mubr.msk.f32.vlgmr.msra.gmra.mxu1 %vm334_vm3, %v10339_v18 }
0x1db5   :  { %8793 = vmatprep.mubr.msk.f32.mxu1 %vm9309_vm2, %v9308_v27 }
0x1e70   :  { %v4111_v54 = vpop.f32.mrf.mxu1 }
0x1e71   :  { %v4193_v19 = vsel %vm334_vm3, %v4111_v54, -inf }
0x1e72   :  { %4194 = vmax.xlane.f32.xlu1 %v4193_v19  ;;  %v8785_v20 = vpop.f32.mrf.mxu1 }
0x1e74   :  { %v4189_v21 = vpop.f32.mrf.mxu1 }
0x1e75   :  { %v4196_v51 = vsel %vm334_vm3, %v4189_v21, -inf }
0x1e76   :  { %4197 = vmax.xlane.f32.xlu0 %v4196_v51  ;;  %v8790_v53 = vpop.f32.mrf.mxu1 }
0x1e83   :  { %4215 = vrot.lane.b32.xlu1 %v10322_v14, %s11162_s23 }
0x1e87   :  { %4369 = vrot.lane.b32.xlu1 %v10322_v14, %s11163_s3 }
0x1e8b   :  { %4447 = vrot.lane.b32.xlu1 %v10320_v48, %s11163_s3 }
0x1e8c   :  { %4291 = vrot.lane.b32.xlu0 %v10320_v48, %s11162_s23 }
0x1efb   :  { %v4195_v22 = vpop.xlane.xlu1 %4194 }
0x1efc   :  { %v4199_v23 = vsub.f32 %v4111_v54, %v4195_v22 }
0x1efe   :  { %v4201_v24 = vmul.f32 1.442695, %v4199_v23 }
0x1eff   :  { %v4216_v31 = vpop.permute.xlu1 %4215  ;;  %v4198_v28 = vpop.xlane.xlu0 %4197 }
0x1f00   :  { %9204 = vpow2.f32 %v4201_v24  ;;  %v4200_v29 = vsub.f32 %v4189_v21, %v4198_v28  ;;  %8792 = vmatpush3.msra.mxu1 %v4216_v31 }
0x1f01   :  { %8796 = vmatprep.subr.mxu1 %v9308_v27 }
0x1f02   :  { %v4203_v30 = vmul.f32 1.442695, %v4200_v29 }
0x1f03   :  { %v4370_v33 = vpop.permute.xlu1 %4369  ;;  %v4292_v45 = vpop.permute.xlu0 %4291 }
0x1f04   :  { %9206 = vpow2.f32 %v4203_v30  ;;  %8802 = vmatpush3.xpose.msk.msra.mxu0 %vm334_vm3, %v4370_v33 }
0x1f05   :  { %8811 = vmatprep.subr.mxu0 %v9308_v27 }
0x1f07   :  { %v4448_v56 = vpop.permute.xlu1 %4447 }
0x1f0d   :  { %v9205_v35 = vpop.eup %9204 }
0x1f0e   :  { %v4205_v38 = vsel %vm334_vm3, %v9205_v35, 0.0 }
0x1f0f   :  { %4206 = vadd.xlane.f32.xlu1 %v4205_v38 }
0x1f11   :  { %v9207_v40 = vpop.eup %9206 }
0x1f12   :  { %v4208_v44 = vsel %vm334_vm3, %v9207_v40, 0.0 }
0x1f13   :  { %4209 = vadd.xlane.f32.xlu0 %v4208_v44 }
0x1f20   :  { %4445 = vrot.lane.b32.xlu1 %v10339_v18, %s11164_s0 }
0x1f29   :  { %4367 = vrot.lane.b32.xlu0 %v10330_v16, %s11164_s0 }
0x1f98   :  { %v4207_v58 = vpop.xlane.xlu1 %4206 }
0x1f99   :  { %9208 = vrcp.f32 %v4207_v58 }
0x1f9c   :  { %v4210_v2 = vpop.xlane.xlu0 %4209  ;;  %v4446_v52 = vpop.permute.xlu1 %4445 }
0x1f9d   :  { %9210 = vrcp.f32 %v4210_v2 }
0x1fa0   :  { %v4368_v39 = vpop.permute.xlu0 %4367 }
0x1fa1   :  { %8804 = vmatmul.mubr.msk.f32.vlgmr.msra.gmra.mxu0 %vm334_vm3, %v4368_v39 }
0x1fa2   :  { %8813 = vmatprep.mubr.msk.f32.mxu0 %vm9309_vm2, %v9308_v27 }
0x1fa6   :  { %v9209_v46 = vpop.eup %9208 }
0x1fa7   :  { %v4213_v47 = vmul.f32 %v9209_v46, %v9205_v35 }
0x1fa9   :  { %8794 = vmatmul.mubr.msk.f32.vlgmr.msra.gmra.mxu1 %vm334_vm3, %v4213_v47 }
0x1faa   :  { %v9211_v49 = vpop.eup %9210  ;;  %8797 = vmatpush3.msra.mxu1 %v4292_v45  ;;  %8798 = vmatprep.mubr.msk.f32.mxu1 %vm9309_vm2, %v9308_v27 }
0x1fab   :  { %8806 = vmatprep.subr.mxu1 %v9308_v27  ;;  %v4214_v50 = vmul.f32 %v9211_v49, %v9207_v40 }
0x1fad   :  { %8799 = vmatmul.mubr.msk.f32.vlgmr.msra.gmra.mxu1 %vm334_vm3, %v4214_v50 }
0x1fae   :  { %8807 = vmatpush3.xpose.msk.msra.mxu1 %vm334_vm3, %v4448_v56  ;;  %8808 = vmatprep.mubr.msk.f32.mxu1 %vm9309_vm2, %v9308_v27 }
0x1faf   :  { %8816 = vmatprep.subr.mxu1 %v9308_v27 }
0x1fb1   :  { %8809 = vmatmul.mubr.msk.f32.vlgmr.msra.gmra.mxu1 %vm334_vm3, %v4446_v52 }
0x1fb2   :  { %8818 = vmatprep.mubr.msk.f32.mxu1 %vm9309_vm2, %v9308_v27 }
0x2061   :  { %v4441_v55 = vpop.f32.mrf.mxu0 }
0x2062   :  { %v4523_v3 = vsel %vm334_vm3, %v4441_v55, -inf }
0x2063   :  { %4524 = vmax.xlane.f32.xlu0 %v4523_v3  ;;  %v8805_v57 = vpop.f32.mrf.mxu0 }
0x2069   :  { %v10381_v37 = vpop.f32.mrf.mxu1 }
0x206b   :  { %v8795_v59 = vpop.f32.mrf.mxu1 }
0x206d   :  { %v10383_v60 = vpop.f32.mrf.mxu1 }
0x206f   :  { %v8800_v1 = vpop.f32.mrf.mxu1 }
0x2071   :  { %v4519_v63 = vpop.f32.mrf.mxu1 }
0x2072   :  { %v4526_v0 = vsel %vm334_vm3, %v4519_v63, -inf }
0x2073   :  { %4527 = vmax.xlane.f32.xlu1 %v4526_v0  ;;  %v8810_v34 = vpop.f32.mrf.mxu1 }
0x2084   :  { %4545 = vrot.lane.b32.xlu1 %v10322_v14, %s11165_s27 }
0x2088   :  { %4699 = vrot.lane.b32.xlu1 %v10322_v14, %s11155_s30 }
0x208c   :  { %4777 = vrot.lane.b32.xlu1 %v10320_v48, %s11155_s30 }
0x2090   :  { %4775 = vrot.lane.b32.xlu1 %v10339_v18, %s11154_s28 }
0x20ec   :  { %v4525_v26 = vpop.xlane.xlu0 %4524 }
0x20ed   :  { %v4529_v6 = vsub.f32 %v4441_v55, %v4525_v26 }
0x20ef   :  { %v4531_v7 = vmul.f32 1.442695, %v4529_v6 }
0x20f1   :  { %9212 = vpow2.f32 %v4531_v7 }
0x20fc   :  { %v4528_v62 = vpop.xlane.xlu1 %4527 }
0x20fd   :  { %v4530_v12 = vsub.f32 %v4519_v63, %v4528_v62 }
0x20fe   :  { %v9213_v8 = vpop.eup %9212 }
0x20ff   :  { %v4535_v9 = vsel %vm334_vm3, %v9213_v8, 0.0  ;;  %v4533_v13 = vmul.f32 1.442695, %v4530_v12 }
0x2100   :  { %4536 = vadd.xlane.f32.xlu0 %v4535_v9  ;;  %v4546_v11 = vpop.permute.xlu1 %4545 }
0x2101   :  { %8812 = vmatpush3.msra.mxu0 %v4546_v11  ;;  %9214 = vpow2.f32 %v4533_v13 }
0x2102   :  { %8821 = vmatprep.subr.mxu0 %v9308_v27 }
0x2104   :  { %v4700_v51 = vpop.permute.xlu1 %4699 }
0x2108   :  { %v4778_v24 = vpop.permute.xlu1 %4777 }
0x210c   :  { %v4776_v28 = vpop.permute.xlu1 %4775 }
0x210e   :  { %v9215_v15 = vpop.eup %9214 }
0x210f   :  { %v4538_v17 = vsel %vm334_vm3, %v9215_v15, 0.0 }
0x2116   :  { %4621 = vrot.lane.b32.xlu0 %v10320_v48, %s11165_s27 }
0x2135   :  { %4539 = vadd.xlane.f32.xlu0 %v4538_v17 }
0x214b   :  { %4697 = vrot.lane.b32.xlu0 %v10330_v16, %s11154_s28 }
0x2189   :  { %v4537_v54 = vpop.xlane.xlu0 %4536 }
0x218a   :  { %9216 = vrcp.f32 %v4537_v54 }
0x218d   :  { %v4622_v19 = vpop.permute.xlu0 %4621 }
0x218e   :  { %8817 = vmatpush3.msra.mxu1 %v4622_v19 }
0x218f   :  { %8826 = vmatprep.subr.mxu1 %v9308_v27 }
0x2197   :  { %v9217_v20 = vpop.eup %9216 }
0x2198   :  { %v4543_v21 = vmul.f32 %v9217_v20, %v9213_v8 }
0x219a   :  { %8814 = vmatmul.mubr.msk.f32.vlgmr.msra.gmra.mxu0 %vm334_vm3, %v4543_v21 }
0x219b   :  { %8822 = vmatpush3.xpose.msk.msra.mxu0 %vm334_vm3, %v4700_v51  ;;  %8823 = vmatprep.mubr.msk.f32.mxu0 %vm9309_vm2, %v9308_v27 }
0x219c   :  { %8831 = vmatprep.subr.mxu0 %v9308_v27 }
0x21be   :  { %v4540_v53 = vpop.xlane.xlu0 %4539 }
0x21bf   :  { %9218 = vrcp.f32 %v4540_v53 }
0x21c2   :  { %v4698_v22 = vpop.permute.xlu0 %4697 }
0x21c3   :  { %8824 = vmatmul.mubr.msk.f32.vlgmr.msra.gmra.mxu0 %vm334_vm3, %v4698_v22 }
0x21c4   :  { %8833 = vmatprep.mubr.msk.f32.mxu0 %vm9309_vm2, %v9308_v27 }
0x21cc   :  { %v9219_v23 = vpop.eup %9218 }
0x21cd   :  { %v4544_v31 = vmul.f32 %v9219_v23, %v9215_v15 }
0x21cf   :  { %8819 = vmatmul.mubr.msk.f32.vlgmr.msra.gmra.mxu1 %vm334_vm3, %v4544_v31 }
0x21d0   :  { %8827 = vmatpush3.xpose.msk.msra.mxu1 %vm334_vm3, %v4778_v24  ;;  %8828 = vmatprep.mubr.msk.f32.mxu1 %vm9309_vm2, %v9308_v27 }
0x21d1   :  { %8836 = vmatprep.subr.mxu1 %v9308_v27 }
0x21d3   :  { %8829 = vmatmul.mubr.msk.f32.vlgmr.msra.gmra.mxu1 %vm334_vm3, %v4776_v28 }
0x21d4   :  { %8838 = vmatprep.mubr.msk.f32.mxu1 %vm9309_vm2, %v9308_v27 }
0x225a   :  { %v10418_v29 = vpop.f32.mrf.mxu0 }
0x225c   :  { %v8815_v30 = vpop.f32.mrf.mxu0 }
0x2283   :  { %v4771_v33 = vpop.f32.mrf.mxu0 }
0x2284   :  { %v4853_v35 = vsel %vm334_vm3, %v4771_v33, -inf }
0x2285   :  { %4854 = vmax.xlane.f32.xlu0 %v4853_v35  ;;  %v8825_v38 = vpop.f32.mrf.mxu0 }
0x228f   :  { %v10421_v40 = vpop.f32.mrf.mxu1 }
0x2291   :  { %v8820_v44 = vpop.f32.mrf.mxu1 }
0x2293   :  { %v4849_v56 = vpop.f32.mrf.mxu1 }
0x2294   :  { %v4856_v45 = vsel %vm334_vm3, %v4849_v56, -inf }
0x2295   :  { %4857 = vmax.xlane.f32.xlu1 %v4856_v45  ;;  %v8830_v58 = vpop.f32.mrf.mxu1 }
0x22a6   :  { %4875 = vrot.lane.b32.xlu1 %v10322_v14, %s11166_s25 }
0x22aa   :  { %5029 = vrot.lane.b32.xlu1 %v10322_v14, %s11157_s5 }
0x22ae   :  { %5107 = vrot.lane.b32.xlu1 %v10320_v48, %s11157_s5 }
0x22b2   :  { %5105 = vrot.lane.b32.xlu1 %v10339_v18, %s11156_s29 }
0x230e   :  { %v4855_v2 = vpop.xlane.xlu0 %4854 }
0x230f   :  { %v4859_v39 = vsub.f32 %v4771_v33, %v4855_v2  ;;  %v7954_v2 = vld [vmem:[%s11088_s7 + $0x30] sm:$0xff] }
0x2311   :  { %v4861_v46 = vmul.f32 1.442695, %v4859_v39  ;;  %v7953_v39 = vld [vmem:[%s11088_s7 + $0x28] sm:$0xff] }
0x2313   :  { %9220 = vpow2.f32 %v4861_v46  ;;  %v7952_v46 = vld [vmem:[%s11088_s7 + $0x20] sm:$0xff] }
0x231e   :  { %v4858_v47 = vpop.xlane.xlu1 %4857 }
0x231f   :  { %v4860_v55 = vsub.f32 %v4849_v56, %v4858_v47 }
0x2320   :  { %v9221_v49 = vpop.eup %9220 }
0x2321   :  { %v4865_v50 = vsel %vm334_vm3, %v9221_v49, 0.0  ;;  %v4863_v3 = vmul.f32 1.442695, %v4860_v55 }
0x2322   :  { %4866 = vadd.xlane.f32.xlu0 %v4865_v50  ;;  %v4876_v52 = vpop.permute.xlu1 %4875 }
0x2323   :  { %8832 = vmatpush3.msra.mxu0 %v4876_v52  ;;  %9222 = vpow2.f32 %v4863_v3 }
0x2324   :  { %8841 = vmatprep.subr.mxu0 %v9308_v27 }
0x2326   :  { %v5030_v34 = vpop.permute.xlu1 %5029 }
0x232a   :  { %v5108_v7 = vpop.permute.xlu1 %5107 }
0x232e   :  { %v5106_v8 = vpop.permute.xlu1 %5105 }
0x2330   :  { %v9223_v18 = vpop.eup %9222 }
0x2331   :  { %v4868_v57 = vsel %vm334_vm3, %v9223_v18, 0.0 }
0x2338   :  { %4951 = vrot.lane.b32.xlu0 %v10320_v48, %s11166_s25 }
0x2357   :  { %4869 = vadd.xlane.f32.xlu0 %v4868_v57 }
0x236d   :  { %5027 = vrot.lane.b32.xlu0 %v10330_v16, %s11156_s29 }
0x23ab   :  { %v4867_v59 = vpop.xlane.xlu0 %4866 }
0x23ac   :  { %9224 = vrcp.f32 %v4867_v59 }
0x23af   :  { %v4952_v1 = vpop.permute.xlu0 %4951 }
0x23b0   :  { %8837 = vmatpush3.msra.mxu1 %v4952_v1 }
0x23b1   :  { %8846 = vmatprep.subr.mxu1 %v9308_v27 }
0x23b9   :  { %v9225_v63 = vpop.eup %9224 }
0x23ba   :  { %v4873_v0 = vmul.f32 %v9225_v63, %v9221_v49 }
0x23bc   :  { %8834 = vmatmul.mubr.msk.f32.vlgmr.msra.gmra.mxu0 %vm334_vm3, %v4873_v0 }
0x23bd   :  { %8842 = vmatpush3.xpose.msk.msra.mxu0 %vm334_vm3, %v5030_v34  ;;  %8843 = vmatprep.mubr.msk.f32.mxu0 %vm9309_vm2, %v9308_v27 }
0x23be   :  { %8851 = vmatprep.subr.mxu0 %v9308_v27 }
0x23e0   :  { %v4870_v26 = vpop.xlane.xlu0 %4869 }
0x23e1   :  { %9226 = vrcp.f32 %v4870_v26 }
0x23e4   :  { %v5028_v16 = vpop.permute.xlu0 %5027 }
0x23e5   :  { %8844 = vmatmul.mubr.msk.f32.vlgmr.msra.gmra.mxu0 %vm334_vm3, %v5028_v16 }
0x23e6   :  { %8853 = vmatprep.mubr.msk.f32.mxu0 %vm9309_vm2, %v9308_v27 }
0x23ee   :  { %v9227_v6 = vpop.eup %9226 }
0x23ef   :  { %v4874_v62 = vmul.f32 %v9227_v6, %v9223_v18 }
0x23f1   :  { %8839 = vmatmul.mubr.msk.f32.vlgmr.msra.gmra.mxu1 %vm334_vm3, %v4874_v62 }
0x23f2   :  { %8847 = vmatpush3.xpose.msk.msra.mxu1 %vm334_vm3, %v5108_v7  ;;  %8848 = vmatprep.mubr.msk.f32.mxu1 %vm9309_vm2, %v9308_v27  ;;  %v7957_v7 = vld [vmem:[%s11089_s8 + $0x1] ss:$0 sm:$0xff] }
0x23f3   :  { %8856 = vmatprep.subr.mxu1 %v9308_v27 }
0x23f5   :  { %8849 = vmatmul.mubr.msk.f32.vlgmr.msra.gmra.mxu1 %vm334_vm3, %v5106_v8 }
0x23f6   :  { %8858 = vmatprep.mubr.msk.f32.mxu1 %vm9309_vm2, %v9308_v27 }
0x247c   :  { %v4947_v9 = vpop.f32.mrf.mxu0 }
0x247e   :  { %v8835_v11 = vpop.f32.mrf.mxu0 }
0x24a5   :  { %v5101_v12 = vpop.f32.mrf.mxu0 }
0x24a6   :  { %v5183_v13 = vsel %vm334_vm3, %v5101_v12, -inf }
0x24a7   :  { %5184 = vmax.xlane.f32.xlu0 %v5183_v13  ;;  %v8845_v15 = vpop.f32.mrf.mxu0 }
0x24b1   :  { %v5023_v17 = vpop.f32.mrf.mxu1 }
0x24b3   :  { %v8840_v54 = vpop.f32.mrf.mxu1 }
0x24b4   :  { %v7982_v54 = vld [vmem:[%s11092_s11 + $0x70] sm:$0xff] }
0x24b5   :  { %v5179_v19 = vpop.f32.mrf.mxu1 }
0x24b6   :  { %v5186_v20 = vsel %vm334_vm3, %v5179_v19, -inf }
0x24b7   :  { %5187 = vmax.xlane.f32.xlu1 %v5186_v20  ;;  %v8850_v21 = vpop.f32.mrf.mxu1 }
0x24c8   :  { %5205 = vrot.lane.b32.xlu1 %v10322_v14, %s11167_s1 }
0x24cc   :  { %5359 = vrot.lane.b32.xlu1 %v10418_v29, %s11158_s26 }
0x24d0   :  { %5361 = vrot.lane.b32.xlu1 %v10421_v40, %s11158_s26 }
0x24d4   :  { %5369 = vrot.lane.b32.xlu1 %v5023_v17, %s11159_s2  ;;  %v7983_v17 = vld [vmem:[%s11092_s11 + $0x78] sm:$0xff] }
0x2530   :  { %v5185_v51 = vpop.xlane.xlu0 %5184 }
0x2531   :  { %v5189_v53 = vsub.f32 %v5101_v12, %v5185_v51 }
0x2533   :  { %v5191_v22 = vmul.f32 1.442695, %v5189_v53 }
0x2535   :  { %9228 = vpow2.f32 %v5191_v22 }
0x2540   :  { %v5188_v23 = vpop.xlane.xlu1 %5187 }
0x2541   :  { %v5190_v24 = vsub.f32 %v5179_v19, %v5188_v23 }
0x2542   :  { %v9229_v31 = vpop.eup %9228 }
0x2543   :  { %v5193_v28 = vmul.f32 1.442695, %v5190_v24  ;;  %v5195_v30 = vsel %vm334_vm3, %v9229_v31, 0.0 }
0x2544   :  { %5196 = vadd.xlane.f32.xlu0 %v5195_v30  ;;  %v5206_v14 = vpop.permute.xlu1 %5205  ;;  %v7979_v30 = vld [vmem:[%s11092_s11 + $0x58] sm:$0xff] }
0x2545   :  { %9230 = vpow2.f32 %v5193_v28  ;;  %8852 = vmatpush3.msra.mxu0 %v5206_v14  ;;  %v7980_v28 = vld [vmem:[%s11092_s11 + $0x60] sm:$0xff]  ;;  %v7978_v14 = vld [vmem:[%s11092_s11 + $0x50] sm:$0xff] }
0x2548   :  { %v5360_v55 = vpop.permute.xlu1 %5359 }
0x2549   :  { %v5381_v18 = vsel %vm334_vm3, %v10381_v37, %v5360_v55  ;;  %v9281_v37 = vld [vmem:[%s11153_s4] sm:$0xff] }
0x254c   :  { %v5362_v63 = vpop.permute.xlu1 %5361 }
0x254d   :  { %v5382_v34 = vsel %vm334_vm3, %v10383_v60, %v5362_v63 }
0x2550   :  { %v5370_v0 = vpop.permute.xlu1 %5369 }
0x2551   :  { %v5384_v26 = vsel %vm1678_vm4, %v5382_v34, %v5370_v0 }
0x2552   :  { %v9231_v29 = vpop.eup %9230 }
0x2553   :  { %v5198_v33 = vsel %vm334_vm3, %v9231_v29, 0.0 }
0x2554   :  { %5199 = vadd.xlane.f32.xlu0 %v5198_v33  ;;  %v7977_v33 = vld [vmem:[%s11092_s11 + $0x48] sm:$0xff] }
0x256a   :  { %5281 = vrot.lane.b32.xlu0 %v10320_v48, %s11167_s1  ;;  %v7955_v48 = vld [vmem:[%s11088_s7 + $0x38] sm:$0xff] }
0x256b   :  { %8861 = vmatprep.subr.msk.mxu0 %vm211_vm1, %v7955_v48 }
0x256e   :  { %5367 = vrot.lane.b32.xlu0 %v4947_v9, %s11159_s2 }
0x25cd   :  { %v5197_v35 = vpop.xlane.xlu0 %5196 }
0x25ce   :  { %9232 = vrcp.f32 %v5197_v35  ;;  %v7966_v35 = vld [vmem:[%s11090_s9 + $0x30] sm:$0xff] }
0x25db   :  { %v9233_v38 = vpop.eup %9232 }
0x25dc   :  { %v5203_v40 = vmul.f32 %v9233_v38, %v9229_v31  ;;  %v7976_v38 = vld [vmem:[%s11092_s11 + $0x40] sm:$0xff] }
0x25dd   :  { %v5200_v44 = vpop.xlane.xlu0 %5199 }
0x25de   :  { %9234 = vrcp.f32 %v5200_v44  ;;  %8854 = vmatmul.mubr.msk.f32.vlgmr.msra.gmra.mxu0 %vm334_vm3, %v5203_v40  ;;  %v7965_v40 = vld [vmem:[%s11090_s9 + $0x28] sm:$0xff]  ;;  %v7964_v44 = vld [vmem:[%s11090_s9 + $0x20] sm:$0xff] }
0x25df   :  { %8862 = vmatpush3.xpose.msk.msra.mxu0 %vm211_vm1, %v7955_v48 }
0x25e0   :  { %8863 = vmatprep.subr.msk.mxu0 %vm211_vm1, %v7954_v2 }
0x25e1   :  { %v5282_v56 = vpop.permute.xlu0 %5281 }
0x25e2   :  { %8857 = vmatpush3.msra.mxu1 %v5282_v56  ;;  %v9282_v56 = vld [vmem:[%s11153_s4 + $0x8] sm:$0xff] }
0x25e3   :  { %8864 = vmatpush3.xpose.msk.msra.mxu0 %vm211_vm1, %v7954_v2 }
0x25e4   :  { %8865 = vmatprep.subr.msk.mxu0 %vm211_vm1, %v7953_v39 }
0x25e5   :  { %v5368_v3 = vpop.permute.xlu0 %5367 }
0x25e6   :  { %v5383_v57 = vsel %vm1678_vm4, %v5381_v18, %v5368_v3 }
0x25e7   :  { %8866 = vmatpush3.xpose.msk.msra.mxu0 %vm211_vm1, %v7953_v39 }
0x25e8   :  { %8867 = vmatprep.subr.msk.mxu0 %vm211_vm1, %v7952_v46 }
0x25eb   :  { %v9235_v45 = vpop.eup %9234  ;;  %8868 = vmatpush3.xpose.msk.msra.mxu0 %vm211_vm1, %v7952_v46 }
0x25ec   :  { %v5204_v58 = vmul.f32 %v9235_v45, %v9231_v29  ;;  %8883 = vmatprep.subr.msk.mxu0 %vm211_vm1, %v7983_v17  ;;  %v7967_v29 = vld [vmem:[%s11090_s9 + $0x38] sm:$0xff]  ;;  %v9283_v45 = vld [vmem:[%s11153_s4 + $0x10] sm:$0xff] }
0x25ed   :  { %8872 = vmatprep.subr.msk.mxu1 %vm211_vm1, %v7967_v29 }
0x25ee   :  { %8859 = vmatmul.mubr.msk.f32.vlgmr.msra.gmra.mxu1 %vm334_vm3, %v5204_v58  ;;  %v9284_v58 = vld [vmem:[%s11153_s4 + $0x18] sm:$0xff] }
0x25ef   :  { %8873 = vmatpush3.xpose.msk.msra.mxu1 %vm211_vm1, %v7967_v29 }
0x25f0   :  { %8874 = vmatprep.subr.msk.mxu1 %vm211_vm1, %v7966_v35 }
0x25f3   :  { %8875 = vmatpush3.xpose.msk.msra.mxu1 %vm211_vm1, %v7966_v35 }
0x25f4   :  { %8876 = vmatprep.subr.msk.mxu1 %vm211_vm1, %v7965_v40 }
0x25f7   :  { %8877 = vmatpush3.xpose.msk.msra.mxu1 %vm211_vm1, %v7965_v40 }
0x25f8   :  { %8878 = vmatprep.subr.msk.mxu1 %vm211_vm1, %v7964_v44 }
0x25fb   :  { %8879 = vmatpush3.xpose.msk.msra.mxu1 %vm211_vm1, %v7964_v44 }
0x25fc   :  { %8905 = vmatprep.subr.mxu1 %v9308_v27 }
0x269e   :  { %v5277_v47 = vpop.f32.mrf.mxu0 }
0x269f   :  { %5375 = vrot.lane.b32.xlu0 %v5277_v47, %s11160_s6 }
0x26a0   :  { %v8855_v49 = vpop.f32.mrf.mxu0 }
0x26ae   :  { %v5353_v50 = vpop.f32.mrf.mxu1 }
0x26af   :  { %5377 = vrot.lane.b32.xlu1 %v5353_v50, %s11160_s6  ;;  %v10596_v50 = vld [vmem:[%s11100_s19 + $0x8] sm:$0x3f] }
0x26b0   :  { %v8860_v52 = vpop.f32.mrf.mxu1  ;;  %v5530_v18 = vrot.slane %v10596_v50, %v1825_v43 }
0x26b1   :  { %v5524_v52 = vrot.slane %v10596_v50, %v1819_v32  ;;  %v7985_v32 = vld [vmem:[%s11093_s12 + $0x1] ss:$0 sm:$0xff] }
0x2711   :  { %v5376_v59 = vpop.permute.xlu0 %5375 }
0x2712   :  { %v5385_v1 = vsel %vm1681_vm5, %v5383_v57, %v5376_v59 }
0x2713   :  { %8869 = vmatprep.mubr.msk.f32.mxu0 %vm211_vm1, %v5385_v1 }
0x2721   :  { %v5378_v16 = vpop.permute.xlu1 %5377 }
0x2722   :  { %v5386_v6 = vsel %vm1681_vm5, %v5384_v26, %v5378_v16 }
0x2723   :  { %8870 = vmatmul.mubr.msk.f32.vlgmr.msra.gmra.mxu0 %vm211_vm1, %v5386_v6 }
0x2724   :  { %8899 = vmatprep.mubr.msk.f32.mxu0 %vm211_vm1, %v9281_v37  ;;  %8884 = vmatpush3.xpose.msk.msra.mxu0 %vm211_vm1, %v7983_v17 }
0x2725   :  { %8885 = vmatprep.subr.msk.mxu0 %vm211_vm1, %v7982_v54 }
0x2728   :  { %8886 = vmatpush3.xpose.msk.msra.mxu0 %vm211_vm1, %v7982_v54 }
0x27e3   :  { %v8871_v62 = vpop.f32.mrf.mxu0 }
0x27e4   :  { %v5490_v8 = vadd.f32 %v8871_v62, %v7957_v7 }
0x27e5   :  { %v5484_v60 = vpop.f32.mrf.mxu0 }
0x27e6   :  { %v5494_v9 = vadd.f32 %v5490_v8, %v10309_v42  ;;  %v5485_v11 = vadd.f32 %v7957_v7, %v5484_v60  ;;  %v7969_v7 = vld [vmem:[%s11091_s10 + $0x1] ss:$0 sm:$0xff] }
0x27e8   :  { %v5493_v12 = vadd.f32 %v5485_v11, %v10307_v10  ;;  %v5498_v13 = vsel %vm211_vm1, %v5494_v9, 0.0  ;;  %v7981_v10 = vld [vmem:[%s11092_s11 + $0x68] sm:$0xff] }
0x27e9   :  { %5499 = vadd.xlane.f32.xlu1 %v5498_v13  ;;  %8887 = vmatprep.subr.msk.mxu0 %vm211_vm1, %v7981_v10 }
0x27ea   :  { %v5495_v15 = vsel %vm211_vm1, %v5493_v12, 0.0  ;;  %8888 = vmatpush3.xpose.msk.msra.mxu0 %vm211_vm1, %v7981_v10 }
0x27eb   :  { %5496 = vadd.xlane.f32.xlu0 %v5495_v15  ;;  %8889 = vmatprep.subr.msk.mxu0 %vm211_vm1, %v7980_v28 }
0x27ee   :  { %8890 = vmatpush3.xpose.msk.msra.mxu0 %vm211_vm1, %v7980_v28 }
0x27ef   :  { %8891 = vmatprep.subr.msk.mxu0 %vm211_vm1, %v7979_v30 }
0x27f2   :  { %8892 = vmatpush3.xpose.msk.msra.mxu0 %vm211_vm1, %v7979_v30 }
0x27f3   :  { %8893 = vmatprep.subr.msk.mxu0 %vm211_vm1, %v7978_v14 }
0x27f6   :  { %8894 = vmatpush3.xpose.msk.msra.mxu0 %vm211_vm1, %v7978_v14 }
0x27f7   :  { %8895 = vmatprep.subr.msk.mxu0 %vm211_vm1, %v7977_v33 }
0x27fa   :  { %8896 = vmatpush3.xpose.msk.msra.mxu0 %vm211_vm1, %v7977_v33 }
0x27fb   :  { %8897 = vmatprep.subr.msk.mxu0 %vm211_vm1, %v7976_v38 }
0x27fe   :  { %8898 = vmatpush3.xpose.msk.msra.mxu0 %vm211_vm1, %v7976_v38 }
0x27ff   :  { %8940 = vmatprep.subr.mxu0 %v9308_v27 }
0x2801   :  { %8900 = vmatmul.mubr.msk.f32.vlgmr.msra.gmra.mxu0 %vm211_vm1, %v9282_v56 }
0x2802   :  { %8902 = vmatprep.mubr.msk.f32.mxu0 %vm211_vm1, %v9283_v45 }
0x2805   :  { %8903 = vmatmul.mubr.msk.f32.gmra.mxu0 %vm211_vm1, %v9284_v58 }
0x2806   :  { %8944 = vmatprep.mubr.msk.f32.mxu0 %vm9309_vm2, %v9308_v27 }
0x2872   :  { %v5500_v42 = vpop.xlane.xlu1 %5499 }
0x2873   :  { %v5502_v19 = vmul.f32 0.03125, %v5500_v42 }
0x2874   :  { %v5497_v20 = vpop.xlane.xlu0 %5496 }
0x2875   :  { %v5501_v21 = vmul.f32 0.03125, %v5497_v20  ;;  %v5504_v51 = vsub.f32 %v5494_v9, %v5502_v19 }
0x2877   :  { %v5503_v53 = vsub.f32 %v5493_v12, %v5501_v21  ;;  %v5506_v24 = vmul.f32 %v5504_v51, %v5504_v51 }
0x2879   :  { %v5505_v22 = vmul.f32 %v5503_v53, %v5503_v53  ;;  %v5510_v31 = vsel %vm211_vm1, %v5506_v24, 0.0 }
0x287b   :  { %v5507_v23 = vsel %vm211_vm1, %v5505_v22, 0.0 }
0x287c   :  { %5508 = vadd.xlane.f32.xlu0 %v5507_v23 }
0x2880   :  { %5511 = vadd.xlane.f32.xlu0 %v5510_v31 }
0x28c1   :  { %v8901_v43 = vpop.f32.mrf.mxu0 }
0x28c2   :  { %v10617_v26 = vadd.f32 %v8901_v43, %v7985_v32 }
0x28c3   :  { %v5746_v16 = vpop.f32.mrf.mxu0 }
0x28c4   :  { %v10621_v6 = vadd.f32 %v7985_v32, %v5746_v16 }
0x28c5   :  { %v8904_v60 = vpop.f32.mrf.mxu0 }
0x28c6   :  { %v10630_v9 = vadd.f32 %v8904_v60, %v7985_v32 }
0x28c7   :  { %v5756_v12 = vpop.f32.mrf.mxu0 }
0x28c8   :  { %v10641_v15 = vadd.f32 %v7985_v32, %v5756_v12 }
0x2905   :  { %v5509_v48 = vpop.xlane.xlu0 %5508 }
0x2906   :  { %v5513_v2 = vmul.f32 0.03125, %v5509_v48 }
0x2908   :  { %v5515_v39 = vadd.f32 1e-05, %v5513_v2 }
0x2909   :  { %v5512_v46 = vpop.xlane.xlu0 %5511 }
0x290a   :  { %9236 = vrsqrt.f32 %v5515_v39  ;;  %v5514_v47 = vmul.f32 0.03125, %v5512_v46 }
0x290c   :  { %v5516_v49 = vadd.f32 1e-05, %v5514_v47 }
0x290e   :  { %9238 = vrsqrt.f32 %v5516_v49 }
0x2917   :  { %v9237_v55 = vpop.eup %9236 }
0x2918   :  { %v5519_v3 = vmul.f32 %v9237_v55, %v5503_v53 }
0x291a   :  { %v5525_v57 = vmul.f32 %v5524_v52, %v5519_v3 }
0x291b   :  { %v9239_v59 = vpop.eup %9238 }
0x291c   :  { %v5520_v1 = vmul.f32 %v9239_v59, %v5504_v51  ;;  %v10604_v63 = vadd.f32 %v5530_v18, %v5525_v57 }
0x291e   :  { %v5526_v0 = vmul.f32 %v5524_v52, %v5520_v1  ;;  %8880 = vmatprep.mubr.msk.f32.mxu1 %vm211_vm1, %v10604_v63 }
0x2920   :  { %v10608_v34 = vadd.f32 %v5530_v18, %v5526_v0 }
0x2922   :  { %8881 = vmatmul.mubr.msk.f32.vlgmr.msra.gmra.mxu1 %vm211_vm1, %v10608_v34 }
0x2923   :  { %8909 = vmatprep.mubr.msk.f32.mxu1 %vm9309_vm2, %v9308_v27  ;;  %8906 = vmatpush3.xpose.msk.msra.mxu1 %vm334_vm3, %v10617_v26 }
0x2924   :  { %8907 = vmatprep.subr.mxu1 %v9308_v27 }
0x2927   :  { %8908 = vmatpush3.xpose.msk.msra.mxu1 %vm334_vm3, %v10621_v6 }
0x2928   :  { %8912 = vmatprep.subr.mxu1 %v9308_v27 }
0x29e2   :  { %v8882_v37 = vpop.f32.mrf.mxu1 }
0x29e3   :  { %v5636_v13 = vadd.f32 %v8882_v37, %v7969_v7 }
0x29e4   :  { %v5630_v62 = vpop.f32.mrf.mxu1 }
0x29e5   :  { %v5631_v8 = vadd.f32 %v7969_v7, %v5630_v62  ;;  %v10645_v17 = vmul.f32 0.35355338, %v5636_v13 }
0x29e7   :  { %v10632_v11 = vmul.f32 0.35355338, %v5631_v8 }
0x29e9   :  { %8910 = vmatmul.mubr.msk.f32.vlgmr.msra.gmra.mxu1 %vm334_vm3, %v10632_v11 }
0x29ea   :  { %8913 = vmatpush3.xpose.msk.msra.mxu1 %vm334_vm3, %v10630_v9  ;;  %8916 = vmatprep.mubr.msk.f32.mxu1 %vm9309_vm2, %v9308_v27 }
0x29eb   :  { %8914 = vmatprep.subr.mxu1 %v9308_v27 }
0x29ee   :  { %8915 = vmatpush3.xpose.msk.msra.mxu1 %vm334_vm3, %v10641_v15 }
0x29ef   :  { %8919 = vmatprep.subr.mxu1 %v9308_v27 }
0x29f1   :  { %8917 = vmatmul.mubr.msk.f32.vlgmr.msra.gmra.mxu1 %vm334_vm3, %v10645_v17 }
0x29f2   :  { %8923 = vmatprep.mubr.msk.f32.mxu1 %vm9309_vm2, %v9308_v27 }
0x2aa9   :  { %v5842_v54 = vpop.f32.mrf.mxu1 }
0x2aaa   :  { %v5843_v10 = vadd.f32 %v5842_v54, %v9897_v25 }
0x2aab   :  { %v8911_v42 = vpop.f32.mrf.mxu1 }
0x2aac   :  { %v5925_v19 = vsel %vm1678_vm4, %v5843_v10, -inf }
0x2aad   :  { %5926 = vmax.xlane.f32.xlu1 %v5925_v19 }
0x2ab1   :  { %v5921_v20 = vpop.f32.mrf.mxu1 }
0x2ab2   :  { %v5922_v21 = vadd.f32 %v5921_v20, %v9897_v25 }
0x2ab3   :  { %v8918_v51 = vpop.f32.mrf.mxu1 }
0x2ab4   :  { %v5928_v53 = vsel %vm1678_vm4, %v5922_v21, -inf }
0x2ab5   :  { %5929 = vmax.xlane.f32.xlu0 %v5928_v53 }
0x2abe   :  { %5949 = vrot.lane.b32.xlu1 %v10617_v26, %s11161_s24 }
0x2ac2   :  { %6028 = vrot.lane.b32.xlu1 %v10630_v9, %s11161_s24 }
0x2ac6   :  { %6026 = vrot.lane.b32.xlu1 %v10641_v15, %s11161_s24 }
0x2acb   :  { %5947 = vrot.lane.b32.xlu0 %v10621_v6, %s11161_s24 }
0x2b36   :  { %v5927_v22 = vpop.xlane.xlu1 %5926 }
0x2b37   :  { %v5931_v23 = vsub.f32 %v5843_v10, %v5927_v22 }
0x2b39   :  { %v5933_v24 = vmul.f32 1.442695, %v5931_v23 }
0x2b3a   :  { %v5950_v31 = vpop.permute.xlu1 %5949 }
0x2b3b   :  { %9240 = vpow2.f32 %v5933_v24  ;;  %8920 = vmatpush3.msra.mxu1 %v5950_v31 }
0x2b3c   :  { %8921 = vmatprep.subr.mxu1 %v9308_v27 }
0x2b3e   :  { %v5930_v28 = vpop.xlane.xlu0 %5929  ;;  %v6029_v44 = vpop.permute.xlu1 %6028 }
0x2b3f   :  { %v5932_v30 = vsub.f32 %v5922_v21, %v5930_v28 }
0x2b41   :  { %v5935_v14 = vmul.f32 1.442695, %v5932_v30 }
0x2b42   :  { %v5948_v29 = vpop.permute.xlu0 %5947  ;;  %v6027_v56 = vpop.permute.xlu1 %6026 }
0x2b43   :  { %9242 = vpow2.f32 %v5935_v14  ;;  %8922 = vmatpush3.msra.mxu1 %v5948_v29 }
0x2b44   :  { %8926 = vmatprep.subr.mxu1 %v9308_v27 }
0x2b48   :  { %v9241_v33 = vpop.eup %9240 }
0x2b49   :  { %v5937_v35 = vsel %vm1678_vm4, %v9241_v33, 0.0 }
0x2b4a   :  { %5938 = vadd.xlane.f32.xlu1 %v5937_v35 }
0x2b50   :  { %v9243_v38 = vpop.eup %9242 }
0x2b51   :  { %v5940_v40 = vsel %vm1678_vm4, %v9243_v38, 0.0 }
0x2b52   :  { %5941 = vadd.xlane.f32.xlu0 %v5940_v40 }
0x2b5b   :  { %6107 = vrot.lane.b32.xlu1 %v10621_v6, %s11164_s0 }
0x2b5f   :  { %6105 = vrot.lane.b32.xlu1 %v10632_v11, %s11164_s0 }
0x2b63   :  { %6187 = vrot.lane.b32.xlu1 %v10645_v17, %s11164_s0 }
0x2b68   :  { %6109 = vrot.lane.b32.xlu0 %v10617_v26, %s11164_s0 }
0x2b6c   :  { %6191 = vrot.lane.b32.xlu0 %v10630_v9, %s11164_s0 }
0x2b70   :  { %6189 = vrot.lane.b32.xlu0 %v10641_v15, %s11164_s0 }
0x2bd3   :  { %v5939_v45 = vpop.xlane.xlu1 %5938 }
0x2bd4   :  { %9244 = vrcp.f32 %v5939_v45 }
0x2bd7   :  { %v6108_v48 = vpop.permute.xlu1 %6107 }
0x2bdb   :  { %v5942_v58 = vpop.xlane.xlu0 %5941  ;;  %v6106_v49 = vpop.permute.xlu1 %6105 }
0x2bdc   :  { %9246 = vrcp.f32 %v5942_v58 }
0x2bdf   :  { %v6110_v2 = vpop.permute.xlu0 %6109  ;;  %v6188_v3 = vpop.permute.xlu1 %6187 }
0x2be1   :  { %v9245_v39 = vpop.eup %9244 }
0x2be2   :  { %v5945_v46 = vmul.f32 %v9245_v39, %v9241_v33 }
0x2be3   :  { %v6192_v47 = vpop.permute.xlu0 %6191 }
0x2be4   :  { %8941 = vmatpush3.xpose.msk.msra.mxu0 %vm334_vm3, %v6192_v47  ;;  %8924 = vmatmul.mubr.msk.f32.vlgmr.msra.gmra.mxu1 %vm1678_vm4, %v5945_v46 }
0x2be5   :  { %8927 = vmatpush3.msra.mxu1 %v6029_v44  ;;  %8942 = vmatprep.subr.mxu0 %v9308_v27 }
0x2be6   :  { %8928 = vmatprep.subr.mxu1 %v9308_v27  ;;  %8930 = vmatprep.mubr.msk.f32.mxu1 %vm9309_vm2, %v9308_v27 }
0x2be7   :  { %8929 = vmatpush3.msra.mxu1 %v6027_v56  ;;  %v6190_v52 = vpop.permute.xlu0 %6189 }
0x2be8   :  { %8943 = vmatpush3.xpose.msk.msra.mxu0 %vm334_vm3, %v6190_v52  ;;  %8933 = vmatprep.subr.mxu1 %v9308_v27 }
0x2be9   :  { %v9247_v55 = vpop.eup %9246  ;;  %8961 = vmatprep.subr.mxu0 %v9308_v27 }
0x2bea   :  { %v5946_v18 = vmul.f32 %v9247_v55, %v9243_v38 }
0x2beb   :  { %8945 = vmatmul.mubr.msk.f32.vlgmr.msra.gmra.mxu0 %vm334_vm3, %v6188_v3 }
0x2bec   :  { %8931 = vmatmul.mubr.msk.f32.vlgmr.msra.gmra.mxu1 %vm1678_vm4, %v5946_v18  ;;  %8965 = vmatprep.mubr.msk.f32.mxu0 %vm9309_vm2, %v9308_v27 }
0x2bed   :  { %8934 = vmatpush3.xpose.msk.msra.mxu1 %vm334_vm3, %v6110_v2  ;;  %8937 = vmatprep.mubr.msk.f32.mxu1 %vm9309_vm2, %v9308_v27 }
0x2bee   :  { %8935 = vmatprep.subr.mxu1 %v9308_v27 }
0x2bf1   :  { %8936 = vmatpush3.xpose.msk.msra.mxu1 %vm334_vm3, %v6108_v48 }
0x2bf2   :  { %8947 = vmatprep.subr.mxu1 %v9308_v27 }
0x2bf4   :  { %8938 = vmatmul.mubr.msk.f32.vlgmr.msra.gmra.mxu1 %vm334_vm3, %v6106_v49 }
0x2bf5   :  { %8951 = vmatprep.mubr.msk.f32.mxu1 %vm9309_vm2, %v9308_v27 }
0x2ca4   :  { %v10702_v57 = vpop.f32.mrf.mxu1 }
0x2ca6   :  { %v8925_v59 = vpop.f32.mrf.mxu1 }
0x2cab   :  { %v6265_v1 = vpop.f32.mrf.mxu0 }
0x2cac   :  { %v6266_v0 = vadd.f32 %v6265_v1, %v9897_v25  ;;  %v10705_v32 = vpop.f32.mrf.mxu1 }
0x2cad   :  { %v8946_v43 = vpop.f32.mrf.mxu0 }
0x2cae   :  { %v8932_v16 = vpop.f32.mrf.mxu1  ;;  %v6272_v37 = vsel %vm1678_vm4, %v6266_v0, -inf }
0x2caf   :  { %6273 = vmax.xlane.f32.xlu1 %v6272_v37 }
0x2cb4   :  { %v6183_v7 = vpop.f32.mrf.mxu1 }
0x2cb5   :  { %v6184_v62 = vadd.f32 %v6183_v7, %v9897_v25 }
0x2cb6   :  { %v8939_v8 = vpop.f32.mrf.mxu1 }
0x2cb7   :  { %v6269_v60 = vsel %vm1678_vm4, %v6184_v62, -inf }
0x2cb8   :  { %6270 = vmax.xlane.f32.xlu0 %v6269_v60 }
0x2cc0   :  { %6293 = vrot.lane.b32.xlu1 %v10617_v26, %s11163_s3 }
0x2cc4   :  { %6372 = vrot.lane.b32.xlu1 %v10630_v9, %s11163_s3 }
0x2cc8   :  { %6370 = vrot.lane.b32.xlu1 %v10641_v15, %s11163_s3 }
0x2ccc   :  { %6535 = vrot.lane.b32.xlu1 %v10630_v9, %s11154_s28 }
0x2cd0   :  { %6533 = vrot.lane.b32.xlu1 %v10641_v15, %s11154_s28 }
0x2cd4   :  { %6531 = vrot.lane.b32.xlu1 %v10645_v17, %s11154_s28 }
0x2d38   :  { %v6274_v12 = vpop.xlane.xlu1 %6273 }
0x2d39   :  { %v6276_v13 = vsub.f32 %v6266_v0, %v6274_v12 }
0x2d3b   :  { %v6279_v54 = vmul.f32 1.442695, %v6276_v13 }
0x2d3c   :  { %v6294_v10 = vpop.permute.xlu1 %6293 }
0x2d3d   :  { %9248 = vpow2.f32 %v6279_v54  ;;  %8948 = vmatpush3.msra.mxu1 %v6294_v10 }
0x2d3e   :  { %8949 = vmatprep.subr.mxu1 %v9308_v27 }
0x2d40   :  { %v6373_v28 = vpop.permute.xlu1 %6372 }
0x2d41   :  { %v6271_v20 = vpop.xlane.xlu0 %6270 }
0x2d42   :  { %v6275_v21 = vsub.f32 %v6184_v62, %v6271_v20 }
0x2d44   :  { %v6277_v51 = vmul.f32 1.442695, %v6275_v21  ;;  %v6371_v29 = vpop.permute.xlu1 %6370 }
0x2d46   :  { %9250 = vpow2.f32 %v6277_v51 }
0x2d48   :  { %v6536_v44 = vpop.permute.xlu1 %6535 }
0x2d4a   :  { %v9249_v42 = vpop.eup %9248 }
0x2d4b   :  { %v6284_v19 = vsel %vm1678_vm4, %v9249_v42, 0.0 }
0x2d4c   :  { %6285 = vadd.xlane.f32.xlu0 %v6284_v19  ;;  %v6534_v45 = vpop.permute.xlu1 %6533 }
0x2d50   :  { %v6532_v58 = vpop.permute.xlu1 %6531 }
0x2d53   :  { %v9251_v53 = vpop.eup %9250 }
0x2d54   :  { %v6281_v22 = vsel %vm1678_vm4, %v9251_v53, 0.0 }
0x2d62   :  { %6291 = vrot.lane.b32.xlu0 %v10621_v6, %s11163_s3 }
0x2d81   :  { %6282 = vadd.xlane.f32.xlu0 %v6281_v22 }
0x2d97   :  { %6453 = vrot.lane.b32.xlu0 %v10617_v26, %s11154_s28 }
0x2d9b   :  { %6451 = vrot.lane.b32.xlu0 %v10621_v6, %s11154_s28 }
0x2d9f   :  { %6449 = vrot.lane.b32.xlu0 %v10632_v11, %s11154_s28 }
0x2dd5   :  { %v6286_v23 = vpop.xlane.xlu0 %6285 }
0x2dd9   :  { %v6292_v24 = vpop.permute.xlu0 %6291 }
0x2dda   :  { %8950 = vmatpush3.msra.mxu1 %v6292_v24 }
0x2ddb   :  { %8954 = vmatprep.subr.mxu1 %v9308_v27 }
0x2e0a   :  { %v6283_v31 = vpop.xlane.xlu0 %6282 }
0x2e0b   :  { %9252 = vrcp.f32 %v6283_v31 }
0x2e0c   :  { %9254 = vrcp.f32 %v6286_v23 }
0x2e0e   :  { %v6454_v30 = vpop.permute.xlu0 %6453 }
0x2e0f   :  { %8962 = vmatpush3.xpose.msk.msra.mxu0 %vm334_vm3, %v6454_v30 }
0x2e10   :  { %8963 = vmatprep.subr.mxu0 %v9308_v27 }
0x2e12   :  { %v6452_v14 = vpop.permute.xlu0 %6451 }
0x2e13   :  { %8964 = vmatpush3.xpose.msk.msra.mxu0 %vm334_vm3, %v6452_v14 }
0x2e14   :  { %8975 = vmatprep.subr.mxu0 %v9308_v27 }
0x2e16   :  { %v6450_v33 = vpop.permute.xlu0 %6449 }
0x2e17   :  { %8966 = vmatmul.mubr.msk.f32.vlgmr.msra.gmra.mxu0 %vm334_vm3, %v6450_v33 }
0x2e18   :  { %v9253_v35 = vpop.eup %9252  ;;  %8979 = vmatprep.mubr.msk.f32.mxu0 %vm9309_vm2, %v9308_v27 }
0x2e19   :  { %v6289_v38 = vmul.f32 %v9253_v35, %v9251_v53  ;;  %v9255_v40 = vpop.eup %9254 }
0x2e1a   :  { %v6290_v56 = vmul.f32 %v9255_v40, %v9249_v42 }
0x2e1b   :  { %8952 = vmatmul.mubr.msk.f32.vlgmr.msra.gmra.mxu1 %vm1678_vm4, %v6289_v38 }
0x2e1c   :  { %8955 = vmatpush3.msra.mxu1 %v6373_v28  ;;  %8958 = vmatprep.mubr.msk.f32.mxu1 %vm9309_vm2, %v9308_v27 }
0x2e1d   :  { %8956 = vmatprep.subr.mxu1 %v9308_v27 }
0x2e1e   :  { %8957 = vmatpush3.msra.mxu1 %v6371_v29 }
0x2e1f   :  { %8968 = vmatprep.subr.mxu1 %v9308_v27  ;;  %8959 = vmatmul.mubr.msk.f32.vlgmr.msra.gmra.mxu1 %vm1678_vm4, %v6290_v56 }
0x2e20   :  { %8969 = vmatpush3.xpose.msk.msra.mxu1 %vm334_vm3, %v6536_v44  ;;  %8972 = vmatprep.mubr.msk.f32.mxu1 %vm9309_vm2, %v9308_v27 }
0x2e21   :  { %8970 = vmatprep.subr.mxu1 %v9308_v27 }
0x2e24   :  { %8971 = vmatpush3.xpose.msk.msra.mxu1 %vm334_vm3, %v6534_v45 }
0x2e25   :  { %8982 = vmatprep.subr.mxu1 %v9308_v27 }
0x2e27   :  { %8973 = vmatmul.mubr.msk.f32.vlgmr.msra.gmra.mxu1 %vm334_vm3, %v6532_v58 }
0x2e28   :  { %8986 = vmatprep.mubr.msk.f32.mxu1 %vm9309_vm2, %v9308_v27 }
0x2ed7   :  { %v6527_v48 = vpop.f32.mrf.mxu0 }
0x2ed8   :  { %v6528_v2 = vadd.f32 %v6527_v48, %v9897_v25 }
0x2ed9   :  { %v8967_v39 = vpop.f32.mrf.mxu0 }
0x2eda   :  { %v6613_v46 = vsel %vm1678_vm4, %v6528_v2, -inf }
0x2edb   :  { %6614 = vmax.xlane.f32.xlu0 %v6613_v46  ;;  %v10758_v47 = vpop.f32.mrf.mxu1 }
0x2edd   :  { %v8953_v49 = vpop.f32.mrf.mxu1 }
0x2edf   :  { %v10760_v52 = vpop.f32.mrf.mxu1 }
0x2ee1   :  { %v8960_v55 = vpop.f32.mrf.mxu1 }
0x2ee7   :  { %v6609_v3 = vpop.f32.mrf.mxu1 }
0x2ee8   :  { %v6610_v18 = vadd.f32 %v6609_v3, %v9897_v25 }
0x2ee9   :  { %v8974_v59 = vpop.f32.mrf.mxu1 }
0x2eea   :  { %v6616_v1 = vsel %vm1678_vm4, %v6610_v18, -inf }
0x2eeb   :  { %6617 = vmax.xlane.f32.xlu1 %v6616_v1 }
0x2efc   :  { %6637 = vrot.lane.b32.xlu1 %v10617_v26, %s11155_s30 }
0x2f00   :  { %6635 = vrot.lane.b32.xlu1 %v10621_v6, %s11155_s30 }
0x2f04   :  { %6714 = vrot.lane.b32.xlu1 %v10641_v15, %s11155_s30 }
0x2f08   :  { %6879 = vrot.lane.b32.xlu1 %v10630_v9, %s11156_s29 }
0x2f0c   :  { %6877 = vrot.lane.b32.xlu1 %v10641_v15, %s11156_s29 }
0x2f10   :  { %6875 = vrot.lane.b32.xlu1 %v10645_v17, %s11156_s29 }
0x2f64   :  { %v6615_v0 = vpop.xlane.xlu0 %6614 }
0x2f65   :  { %v6619_v43 = vsub.f32 %v6528_v2, %v6615_v0 }
0x2f67   :  { %v6621_v16 = vmul.f32 1.442695, %v6619_v43 }
0x2f69   :  { %9256 = vpow2.f32 %v6621_v16 }
0x2f74   :  { %v6618_v37 = vpop.xlane.xlu1 %6617 }
0x2f75   :  { %v6620_v17 = vsub.f32 %v6610_v18, %v6618_v37 }
0x2f76   :  { %v9257_v7 = vpop.eup %9256 }
0x2f77   :  { %v6625_v62 = vsel %vm1678_vm4, %v9257_v7, 0.0  ;;  %v6623_v12 = vmul.f32 1.442695, %v6620_v17 }
0x2f78   :  { %v6638_v8 = vpop.permute.xlu1 %6637  ;;  %6626 = vadd.xlane.f32.xlu0 %v6625_v62 }
0x2f79   :  { %8976 = vmatpush3.msra.mxu0 %v6638_v8  ;;  %9258 = vpow2.f32 %v6623_v12  ;;  %v8032_v8 = vld [vmem:[%s11094_s13 + $0x30] sm:$0xff] }
0x2f7a   :  { %8977 = vmatprep.subr.mxu0 %v9308_v27 }
0x2f7c   :  { %v6636_v60 = vpop.permute.xlu1 %6635 }
0x2f7d   :  { %8978 = vmatpush3.msra.mxu0 %v6636_v60  ;;  %v8030_v60 = vld [vmem:[%s11094_s13 + $0x20] sm:$0xff] }
0x2f7e   :  { %8989 = vmatprep.subr.mxu0 %v9308_v27 }
0x2f80   :  { %v6715_v19 = vpop.permute.xlu1 %6714 }
0x2f84   :  { %v6880_v23 = vpop.permute.xlu1 %6879 }
0x2f86   :  { %v9259_v13 = vpop.eup %9258 }
0x2f87   :  { %v6628_v54 = vsel %vm1678_vm4, %v9259_v13, 0.0 }
0x2f88   :  { %v6878_v28 = vpop.permute.xlu1 %6877 }
0x2f8c   :  { %v6876_v30 = vpop.permute.xlu1 %6875 }
0x2f8e   :  { %6716 = vrot.lane.b32.xlu0 %v10630_v9, %s11155_s30 }
0x2f92   :  { %6797 = vrot.lane.b32.xlu0 %v10617_v26, %s11156_s29 }
0x2fb1   :  { %6629 = vadd.xlane.f32.xlu0 %v6628_v54 }
0x2fc7   :  { %6795 = vrot.lane.b32.xlu0 %v10621_v6, %s11156_s29 }
0x2fcb   :  { %6793 = vrot.lane.b32.xlu0 %v10632_v11, %s11156_s29 }
0x3001   :  { %v6627_v10 = vpop.xlane.xlu0 %6626 }
0x3002   :  { %9260 = vrcp.f32 %v6627_v10 }
0x3005   :  { %v6717_v42 = vpop.permute.xlu0 %6716 }
0x3006   :  { %8983 = vmatpush3.msra.mxu1 %v6717_v42 }
0x3007   :  { %8984 = vmatprep.subr.mxu1 %v9308_v27 }
0x3008   :  { %8985 = vmatpush3.msra.mxu1 %v6715_v19 }
0x3009   :  { %8996 = vmatprep.subr.mxu1 %v9308_v27  ;;  %v6798_v51 = vpop.permute.xlu0 %6797 }
0x300f   :  { %v9261_v20 = vpop.eup %9260 }
0x3010   :  { %v6633_v21 = vmul.f32 %v9261_v20, %v9257_v7 }
0x3012   :  { %8980 = vmatmul.mubr.msk.f32.vlgmr.msra.gmra.mxu0 %vm1678_vm4, %v6633_v21 }
0x3013   :  { %8990 = vmatpush3.xpose.msk.msra.mxu0 %vm334_vm3, %v6798_v51  ;;  %8993 = vmatprep.mubr.msk.f32.mxu0 %vm9309_vm2, %v9308_v27 }
0x3014   :  { %8991 = vmatprep.subr.mxu0 %v9308_v27 }
0x303a   :  { %v6630_v11 = vpop.xlane.xlu0 %6629 }
0x303b   :  { %9262 = vrcp.f32 %v6630_v11 }
0x303e   :  { %v6796_v53 = vpop.permute.xlu0 %6795 }
0x303f   :  { %8992 = vmatpush3.xpose.msk.msra.mxu0 %vm334_vm3, %v6796_v53 }
0x3040   :  { %9003 = vmatprep.subr.mxu0 %v9308_v27 }
0x3042   :  { %v6794_v22 = vpop.permute.xlu0 %6793 }
0x3043   :  { %8994 = vmatmul.mubr.msk.f32.vlgmr.msra.gmra.mxu0 %vm334_vm3, %v6794_v22 }
0x3044   :  { %9007 = vmatprep.mubr.msk.f32.mxu0 %vm9309_vm2, %v9308_v27 }
0x3048   :  { %v9263_v24 = vpop.eup %9262 }
0x3049   :  { %v6634_v31 = vmul.f32 %v9263_v24, %v9259_v13 }
0x304b   :  { %8987 = vmatmul.mubr.msk.f32.vlgmr.msra.gmra.mxu1 %vm1678_vm4, %v6634_v31 }
0x304c   :  { %8997 = vmatpush3.xpose.msk.msra.mxu1 %vm334_vm3, %v6880_v23  ;;  %9000 = vmatprep.mubr.msk.f32.mxu1 %vm9309_vm2, %v9308_v27 }
0x304d   :  { %8998 = vmatprep.subr.mxu1 %v9308_v27 }
0x3050   :  { %8999 = vmatpush3.xpose.msk.msra.mxu1 %vm334_vm3, %v6878_v28 }
0x3051   :  { %9010 = vmatprep.subr.mxu1 %v9308_v27 }
0x3053   :  { %9001 = vmatmul.mubr.msk.f32.vlgmr.msra.gmra.mxu1 %vm334_vm3, %v6876_v30 }
0x3054   :  { %9014 = vmatprep.mubr.msk.f32.mxu1 %vm9309_vm2, %v9308_v27 }
0x30d2   :  { %v6710_v14 = vpop.f32.mrf.mxu0 }
0x30d4   :  { %v8981_v29 = vpop.f32.mrf.mxu0 }
0x3103   :  { %v6871_v33 = vpop.f32.mrf.mxu0 }
0x3104   :  { %v6872_v35 = vadd.f32 %v6871_v33, %v9897_v25 }
0x3105   :  { %v8995_v38 = vpop.f32.mrf.mxu0 }
0x3106   :  { %v6957_v40 = vsel %vm1678_vm4, %v6872_v35, -inf }
0x3107   :  { %6958 = vmax.xlane.f32.xlu0 %v6957_v40  ;;  %v8057_v40 = vld [vmem:[%s11096_s15 + $0xf8] sm:$0xff] }
0x310b   :  { %v6789_v44 = vpop.f32.mrf.mxu1 }
0x310d   :  { %v8988_v56 = vpop.f32.mrf.mxu1 }
0x310e   :  { %v8053_v56 = vld [vmem:[%s11096_s15 + $0xd8] sm:$0xff] }
0x3113   :  { %v6953_v45 = vpop.f32.mrf.mxu1 }
0x3114   :  { %v6954_v58 = vadd.f32 %v6953_v45, %v9897_v25  ;;  %v8052_v45 = vld [vmem:[%s11096_s15 + $0xd0] sm:$0xff] }
0x3115   :  { %v9002_v48 = vpop.f32.mrf.mxu1 }
0x3116   :  { %v6960_v2 = vsel %vm1678_vm4, %v6954_v58, -inf  ;;  %v8050_v48 = vld [vmem:[%s11096_s15 + $0xc0] sm:$0xff] }
0x3117   :  { %6961 = vmax.xlane.f32.xlu1 %v6960_v2  ;;  %v8049_v2 = vld [vmem:[%s11096_s15 + $0xb8] sm:$0xff] }
0x3128   :  { %6981 = vrot.lane.b32.xlu1 %v10617_v26, %s11157_s5 }
0x312c   :  { %6979 = vrot.lane.b32.xlu1 %v10621_v6, %s11157_s5 }
0x3130   :  { %7058 = vrot.lane.b32.xlu1 %v10641_v15, %s11157_s5 }
0x3134   :  { %7141 = vrot.lane.b32.xlu1 %v10760_v52, %s11158_s26 }
0x3138   :  { %7149 = vrot.lane.b32.xlu1 %v6789_v44, %s11159_s2  ;;  %v8056_v44 = vld [vmem:[%s11096_s15 + $0xf0] sm:$0xff] }
0x3190   :  { %v6959_v39 = vpop.xlane.xlu0 %6958 }
0x3191   :  { %v6963_v25 = vsub.f32 %v6872_v35, %v6959_v39 }
0x3193   :  { %v6965_v46 = vmul.f32 1.442695, %v6963_v25 }
0x3195   :  { %9264 = vpow2.f32 %v6965_v46 }
0x31a0   :  { %v6962_v49 = vpop.xlane.xlu1 %6961 }
0x31a1   :  { %v6964_v55 = vsub.f32 %v6954_v58, %v6962_v49  ;;  %v8051_v58 = vld [vmem:[%s11096_s15 + $0xc8] sm:$0xff] }
0x31a2   :  { %v9265_v3 = vpop.eup %9264 }
0x31a3   :  { %v6967_v18 = vmul.f32 1.442695, %v6964_v55  ;;  %v6969_v26 = vsel %vm1678_vm4, %v9265_v3, 0.0 }
0x31a4   :  { %v6982_v59 = vpop.permute.xlu1 %6981  ;;  %6970 = vadd.xlane.f32.xlu0 %v6969_v26 }
0x31a5   :  { %9266 = vpow2.f32 %v6967_v18  ;;  %9004 = vmatpush3.msra.mxu0 %v6982_v59 }
0x31a6   :  { %9005 = vmatprep.subr.mxu0 %v9308_v27 }
0x31a8   :  { %v6980_v6 = vpop.permute.xlu1 %6979 }
0x31a9   :  { %9006 = vmatpush3.msra.mxu0 %v6980_v6 }
0x31ac   :  { %v7059_v7 = vpop.permute.xlu1 %7058 }
0x31b0   :  { %v7142_v11 = vpop.permute.xlu1 %7141 }
0x31b1   :  { %v7162_v22 = vsel %vm334_vm3, %v10705_v32, %v7142_v11 }
0x31b2   :  { %v9267_v15 = vpop.eup %9266 }
0x31b3   :  { %v6972_v52 = vsel %vm1678_vm4, %v9267_v15, 0.0 }
0x31b4   :  { %6973 = vadd.xlane.f32.xlu0 %v6972_v52  ;;  %v7150_v53 = vpop.permute.xlu1 %7149  ;;  %v8047_v52 = vld [vmem:[%s11096_s15 + $0xa8] sm:$0xff] }
0x31b5   :  { %v7164_v23 = vsel %vm1678_vm4, %v7162_v22, %v7150_v53 }
0x31ca   :  { %7060 = vrot.lane.b32.xlu0 %v10630_v9, %s11157_s5 }
0x31ce   :  { %7139 = vrot.lane.b32.xlu0 %v10758_v47, %s11158_s26  ;;  %v8033_v47 = vld [vmem:[%s11094_s13 + $0x38] sm:$0xff] }
0x31cf   :  { %9017 = vmatprep.subr.msk.mxu0 %vm211_vm1, %v8033_v47 }
0x31d2   :  { %7147 = vrot.lane.b32.xlu0 %v6710_v14, %s11159_s2 }
0x322d   :  { %v6971_v1 = vpop.xlane.xlu0 %6970 }
0x322e   :  { %9268 = vrcp.f32 %v6971_v1  ;;  %v8046_v1 = vld [vmem:[%s11096_s15 + $0xa0] sm:$0xff] }
0x323b   :  { %v9269_v0 = vpop.eup %9268 }
0x323c   :  { %v6977_v43 = vmul.f32 %v9269_v0, %v9265_v3  ;;  %v8045_v0 = vld [vmem:[%s11096_s15 + $0x98] sm:$0xff] }
0x323d   :  { %v6974_v16 = vpop.xlane.xlu0 %6973 }
0x323e   :  { %9270 = vrcp.f32 %v6974_v16  ;;  %9008 = vmatmul.mubr.msk.f32.vlgmr.msra.gmra.mxu0 %vm1678_vm4, %v6977_v43  ;;  %v8044_v43 = vld [vmem:[%s11096_s15 + $0x90] sm:$0xff]  ;;  %v8043_v16 = vld [vmem:[%s11096_s15 + $0x88] sm:$0xff] }
0x323f   :  { %9018 = vmatpush3.xpose.msk.msra.mxu0 %vm211_vm1, %v8033_v47 }
0x3240   :  { %9019 = vmatprep.subr.msk.mxu0 %vm211_vm1, %v8032_v8 }
0x3241   :  { %v7061_v37 = vpop.permute.xlu0 %7060 }
0x3242   :  { %9011 = vmatpush3.msra.mxu1 %v7061_v37  ;;  %v8042_v37 = vld [vmem:[%s11096_s15 + $0x80] sm:$0xff] }
0x3243   :  { %9012 = vmatprep.subr.mxu1 %v9308_v27  ;;  %v8031_v27 = vld [vmem:[%s11094_s13 + $0x28] sm:$0xff]  ;;  %9020 = vmatpush3.xpose.msk.msra.mxu0 %vm211_vm1, %v8032_v8 }
0x3244   :  { %9013 = vmatpush3.msra.mxu1 %v7059_v7  ;;  %9021 = vmatprep.subr.msk.mxu0 %vm211_vm1, %v8031_v27  ;;  %v8081_v7 = vld [vmem:[%s11098_s17 + $0x38] sm:$0xff] }
0x3245   :  { %v7140_v10 = vpop.permute.xlu0 %7139  ;;  %9028 = vmatprep.subr.msk.mxu1 %vm211_vm1, %v8057_v40 }
0x3246   :  { %v7161_v19 = vsel %vm334_vm3, %v10702_v57, %v7140_v10  ;;  %v8035_v57 = vld [vmem:[%s11095_s14 + $0x1] ss:$0 sm:$0xff]  ;;  %v7310_v10 = vrot.slane %v10596_v50, %v3611_v61 }
0x3247   :  { %9022 = vmatpush3.xpose.msk.msra.mxu0 %vm211_vm1, %v8031_v27  ;;  %v8078_v61 = vld [vmem:[%s11098_s17 + $0x20] sm:$0xff] }
0x3248   :  { %9023 = vmatprep.subr.msk.mxu0 %vm211_vm1, %v8030_v60 }
0x3249   :  { %v7148_v42 = vpop.permute.xlu0 %7147 }
0x324a   :  { %v7163_v20 = vsel %vm1678_vm4, %v7161_v19, %v7148_v42 }
0x324b   :  { %v9271_v9 = vpop.eup %9270  ;;  %9024 = vmatpush3.xpose.msk.msra.mxu0 %vm211_vm1, %v8030_v60 }
0x324c   :  { %v6978_v62 = vmul.f32 %v9271_v9, %v9267_v15  ;;  %v8048_v15 = vld [vmem:[%s11096_s15 + $0xb0] sm:$0xff]  ;;  %9063 = vmatprep.subr.mxu0 %v8081_v7 }
0x324d   :  { %v8080_v9 = vld [vmem:[%s11098_s17 + $0x30] sm:$0xff] }
0x324e   :  { %9015 = vmatmul.mubr.msk.f32.vlgmr.msra.gmra.mxu1 %vm1678_vm4, %v6978_v62 }
0x324f   :  { %9029 = vmatpush3.xpose.msk.msra.mxu1 %vm211_vm1, %v8057_v40 }
0x3250   :  { %9030 = vmatprep.subr.msk.mxu1 %vm211_vm1, %v8056_v44 }
0x3253   :  { %9031 = vmatpush3.xpose.msk.msra.mxu1 %vm211_vm1, %v8056_v44  ;;  %v7612_v44 = vld [vmem:[%s11101_s20 + $0x78] sm:$0xff] }
0x32fe   :  { %v7054_v17 = vpop.f32.mrf.mxu0 }
0x32ff   :  { %7155 = vrot.lane.b32.xlu0 %v7054_v17, %s11160_s6 }
0x3300   :  { %v9009_v12 = vpop.f32.mrf.mxu0 }
0x3301   :  { %v7304_v12 = vrot.slane %v10596_v50, %v3605_v36  ;;  %v8079_v36 = vld [vmem:[%s11098_s17 + $0x28] sm:$0xff]  ;;  %v8059_v50 = vld [vmem:[%s11097_s16 + $0x1] ss:$0 sm:$0xff] }
0x330e   :  { %v7133_v13 = vpop.f32.mrf.mxu1 }
0x330f   :  { %7157 = vrot.lane.b32.xlu1 %v7133_v13, %s11160_s6  ;;  %s9325_s6 = smov [#allocation2]  }
0x3310   :  { %v9016_v54 = vpop.f32.mrf.mxu1  ;;  %s7756_s3 = sshll.u32 %s9325_s6, 4  ;;  %s7757_s3 = int_to_ptr.vmem [resolvable:$true] %s7756_s3 }
0x3311   :  { %s9286_s0 = scalar_lea.vmem %s7757_s3, 256  ;;  %p9291_p1 = scmp.lt.s32.totalorder %s7757_s3, %s7757_s3 }
0x3312   :  { %p9287_p0 = scmp.ne.s32.totalorder %s7757_s3, %s9286_s0  ;;  %p9292_p2 = scmp.lt.s32.totalorder %s9286_s0, %s9286_s0 }
0x3314   :  { %p9293_p3 = por %p9292_p2, %p9291_p1 }
0x3316   :  { %p9294_p4 = pnand %p9293_p3, %p9287_p0 }
0x3371   :  { %v7156_v21 = vpop.permute.xlu0 %7155 }
0x3372   :  { %v7165_v51 = vsel %vm1681_vm5, %v7163_v20, %v7156_v21 }
0x3373   :  { %9025 = vmatprep.mubr.msk.f32.mxu0 %vm211_vm1, %v7165_v51 }
0x3381   :  { %v7158_v24 = vpop.permute.xlu1 %7157 }
0x3382   :  { %v7166_v31 = vsel %vm1681_vm5, %v7164_v23, %v7158_v24 }
0x3383   :  { %9026 = vmatmul.mubr.msk.f32.vlgmr.msra.gmra.mxu0 %vm211_vm1, %v7166_v31 }
0x3384   :  { %9064 = vmatpush3.xpose.msra.mxu0 %v8081_v7  ;;  %v7597_v7 = vld [vmem:[%s11101_s20] sm:$0xff] }
0x3385   :  { %9065 = vmatprep.subr.mxu0 %v8080_v9 }
0x3388   :  { %9066 = vmatpush3.xpose.msra.mxu0 %v8080_v9 }
0x3389   :  { %9067 = vmatprep.subr.mxu0 %v8079_v36 }
0x338c   :  { %9068 = vmatpush3.xpose.msra.mxu0 %v8079_v36 }
0x338d   :  { %9069 = vmatprep.subr.mxu0 %v8078_v61 }
0x3390   :  { %9070 = vmatpush3.xpose.msra.mxu0 %v8078_v61 }
0x3391   :  { %9074 = vmatprep.subr.msk.mxu0 %vm211_vm1, %v7612_v44 }
0x3443   :  { %v9027_v28 = vpop.f32.mrf.mxu0 }
0x3444   :  { %v7270_v30 = vadd.f32 %v9027_v28, %v8035_v57  ;;  %v8083_v28 = vld [vmem:[%s11099_s18 + $0x1] ss:$0 sm:$0xff] }
0x3445   :  { %v7264_v14 = vpop.f32.mrf.mxu0 }
0x3446   :  { %v7274_v29 = vadd.f32 %v7270_v30, %v10608_v34  ;;  %v7265_v33 = vadd.f32 %v8035_v57, %v7264_v14  ;;  %v8054_v34 = vld [vmem:[%s11096_s15 + $0xe0] sm:$0xff] }
0x3448   :  { %v7273_v35 = vadd.f32 %v7265_v33, %v10604_v63  ;;  %v7278_v32 = vsel %vm211_vm1, %v7274_v29, 0.0  ;;  %v8055_v63 = vld [vmem:[%s11096_s15 + $0xe8] sm:$0xff] }
0x3449   :  { %7279 = vadd.xlane.f32.xlu1 %v7278_v32  ;;  %9032 = vmatprep.subr.msk.mxu1 %vm211_vm1, %v8055_v63 }
0x344a   :  { %v7275_v38 = vsel %vm211_vm1, %v7273_v35, 0.0  ;;  %9033 = vmatpush3.xpose.msk.msra.mxu1 %vm211_vm1, %v8055_v63  ;;  %v7611_v63 = vld [vmem:[%s11101_s20 + $0x70] sm:$0xff] }
0x344b   :  { %7276 = vadd.xlane.f32.xlu0 %v7275_v38  ;;  %9034 = vmatprep.subr.msk.mxu1 %vm211_vm1, %v8054_v34 }
0x344e   :  { %9035 = vmatpush3.xpose.msk.msra.mxu1 %vm211_vm1, %v8054_v34  ;;  %v7610_v34 = vld [vmem:[%s11101_s20 + $0x68] sm:$0xff] }
0x344f   :  { %9036 = vmatprep.subr.msk.mxu1 %vm211_vm1, %v8053_v56 }
0x3452   :  { %9037 = vmatpush3.xpose.msk.msra.mxu1 %vm211_vm1, %v8053_v56  ;;  %v7609_v56 = vld [vmem:[%s11101_s20 + $0x60] sm:$0xff] }
0x3453   :  { %9038 = vmatprep.subr.msk.mxu1 %vm211_vm1, %v8052_v45 }
0x3456   :  { %9039 = vmatpush3.xpose.msk.msra.mxu1 %vm211_vm1, %v8052_v45  ;;  %v7608_v45 = vld [vmem:[%s11101_s20 + $0x58] sm:$0xff] }
0x3457   :  { %9040 = vmatprep.subr.msk.mxu1 %vm211_vm1, %v8051_v58 }
0x345a   :  { %9041 = vmatpush3.xpose.msk.msra.mxu1 %vm211_vm1, %v8051_v58  ;;  %v7607_v58 = vld [vmem:[%s11101_s20 + $0x50] sm:$0xff] }
0x345b   :  { %9042 = vmatprep.subr.msk.mxu1 %vm211_vm1, %v8050_v48 }
0x345e   :  { %9043 = vmatpush3.xpose.msk.msra.mxu1 %vm211_vm1, %v8050_v48  ;;  %v7606_v48 = vld [vmem:[%s11101_s20 + $0x48] sm:$0xff] }
0x345f   :  { %9044 = vmatprep.subr.msk.mxu1 %vm211_vm1, %v8049_v2 }
0x3462   :  { %9045 = vmatpush3.xpose.msk.msra.mxu1 %vm211_vm1, %v8049_v2  ;;  %v7605_v2 = vld [vmem:[%s11101_s20 + $0x40] sm:$0xff] }
0x3463   :  { %9046 = vmatprep.subr.msk.mxu1 %vm211_vm1, %v8048_v15 }
0x3466   :  { %9047 = vmatpush3.xpose.msk.msra.mxu1 %vm211_vm1, %v8048_v15 }
0x3467   :  { %9048 = vmatprep.subr.msk.mxu1 %vm211_vm1, %v8047_v52 }
0x346a   :  { %9049 = vmatpush3.xpose.msk.msra.mxu1 %vm211_vm1, %v8047_v52 }
0x346b   :  { %9050 = vmatprep.subr.msk.mxu1 %vm211_vm1, %v8046_v1 }
0x346e   :  { %9051 = vmatpush3.xpose.msk.msra.mxu1 %vm211_vm1, %v8046_v1  ;;  %v7602_v1 = vld [vmem:[%s11101_s20 + $0x28] sm:$0xff] }
0x346f   :  { %9052 = vmatprep.subr.msk.mxu1 %vm211_vm1, %v8045_v0 }
0x3472   :  { %9053 = vmatpush3.xpose.msk.msra.mxu1 %vm211_vm1, %v8045_v0  ;;  %v7601_v0 = vld [vmem:[%s11101_s20 + $0x20] sm:$0xff] }
0x3473   :  { %9054 = vmatprep.subr.msk.mxu1 %vm211_vm1, %v8044_v43 }
0x3476   :  { %9055 = vmatpush3.xpose.msk.msra.mxu1 %vm211_vm1, %v8044_v43  ;;  %v7600_v43 = vld [vmem:[%s11101_s20 + $0x18] sm:$0xff] }
0x3477   :  { %9056 = vmatprep.subr.msk.mxu1 %vm211_vm1, %v8043_v16 }
0x347a   :  { %9057 = vmatpush3.xpose.msk.msra.mxu1 %vm211_vm1, %v8043_v16  ;;  %v7599_v16 = vld [vmem:[%s11101_s20 + $0x10] sm:$0xff] }
0x347b   :  { %9058 = vmatprep.subr.msk.mxu1 %vm211_vm1, %v8042_v37 }
0x347e   :  { %9059 = vmatpush3.xpose.msk.msra.mxu1 %vm211_vm1, %v8042_v37  ;;  %v7598_v37 = vld [vmem:[%s11101_s20 + $0x8] sm:$0xff] }
0x34d2   :  { %v7280_v39 = vpop.xlane.xlu1 %7279 }
0x34d3   :  { %v7282_v25 = vmul.f32 0.03125, %v7280_v39  ;;  %v7604_v39 = vld [vmem:[%s11101_s20 + $0x38] sm:$0xff] }
0x34d4   :  { %v7277_v46 = vpop.xlane.xlu0 %7276 }
0x34d5   :  { %v7281_v49 = vmul.f32 0.03125, %v7277_v46  ;;  %v7284_v55 = vsub.f32 %v7274_v29, %v7282_v25  ;;  %v7603_v25 = vld [vmem:[%s11101_s20 + $0x30] sm:$0xff] }
0x34d7   :  { %v7283_v3 = vsub.f32 %v7273_v35, %v7281_v49  ;;  %v7286_v59 = vmul.f32 %v7284_v55, %v7284_v55 }
0x34d9   :  { %v7285_v18 = vmul.f32 %v7283_v3, %v7283_v3  ;;  %v7290_v6 = vsel %vm211_vm1, %v7286_v59, 0.0 }
0x34db   :  { %v7287_v26 = vsel %vm211_vm1, %v7285_v18, 0.0 }
0x34dc   :  { %7288 = vadd.xlane.f32.xlu0 %v7287_v26 }
0x34e0   :  { %7291 = vadd.xlane.f32.xlu0 %v7290_v6 }
0x3565   :  { %v7289_v62 = vpop.xlane.xlu0 %7288 }
0x3566   :  { %v7293_v47 = vmul.f32 0.03125, %v7289_v62 }
0x3568   :  { %v7295_v8 = vadd.f32 1e-05, %v7293_v47 }
0x3569   :  { %v7292_v27 = vpop.xlane.xlu0 %7291 }
0x356a   :  { %9272 = vrsqrt.f32 %v7295_v8  ;;  %v7294_v60 = vmul.f32 0.03125, %v7292_v27 }
0x356c   :  { %v7296_v17 = vadd.f32 1e-05, %v7294_v60 }
0x356e   :  { %9274 = vrsqrt.f32 %v7296_v17 }
0x3577   :  { %v9273_v13 = vpop.eup %9272 }
0x3578   :  { %v7299_v54 = vmul.f32 %v9273_v13, %v7283_v3 }
0x357a   :  { %v7305_v42 = vmul.f32 %v7304_v12, %v7299_v54 }
0x357b   :  { %v9275_v19 = vpop.eup %9274 }
0x357c   :  { %v7300_v20 = vmul.f32 %v9275_v19, %v7284_v55  ;;  %v7311_v21 = vadd.f32 %v7310_v10, %v7305_v42 }
0x357e   :  { %v7306_v51 = vmul.f32 %v7304_v12, %v7300_v20  ;;  %9060 = vmatprep.mubr.msk.f32.mxu1 %vm211_vm1, %v7311_v21  ;;  %v9285_v12 = vld [vmem:[%s11100_s19 + $0x8] sm:$0x3f]  ;;  %s11168_s19 = sld [smem:[#allocation12_spill]] }
0x357f   :  { %v7588_v13 = vrot.slane %v9285_v12, %v3885_v4  ;;  %v7594_v20 = vrot.slane %v9285_v12, %v3891_v5 }
0x3580   :  { %v7312_v11 = vadd.f32 %v7310_v10, %v7306_v51 }
0x3582   :  { %9061 = vmatmul.mubr.msk.f32.vlgmr.msra.gmra.mxu1 %vm211_vm1, %v7312_v11 }
0x3584   :  { %v8084_v36 = vld [vmem:[%s11168_s19] ss:$0 sm:$0xff] }
0x3642   :  { %v9062_v53 = vpop.f32.mrf.mxu1 }
0x3643   :  { %v7464_v22 = vadd.f32 %v9062_v53, %v8059_v50 }
0x3644   :  { %v7458_v23 = vpop.f32.mrf.mxu1 }
0x3645   :  { %v7459_v24 = vadd.f32 %v8059_v50, %v7458_v23  ;;  %v7468_v57 = vmax.f32 %v7464_v22, 0.0 }
0x3647   :  { %v7467_v31 = vmax.f32 %v7459_v24, 0.0 }
0x3649   :  { %9071 = vmatprep.mubr.f32.mxu0 %v7467_v31 }
0x364a   :  { %9072 = vmatmul.mubr.f32.vlgmr.msra.gmra.mxu0 %v7468_v57 }
0x364b   :  { %9075 = vmatpush3.xpose.msk.msra.mxu0 %vm211_vm1, %v7612_v44 }
0x364c   :  { %9076 = vmatprep.subr.msk.mxu0 %vm211_vm1, %v7611_v63 }
0x364f   :  { %9077 = vmatpush3.xpose.msk.msra.mxu0 %vm211_vm1, %v7611_v63 }
0x3650   :  { %9078 = vmatprep.subr.msk.mxu0 %vm211_vm1, %v7610_v34 }
0x3653   :  { %9079 = vmatpush3.xpose.msk.msra.mxu0 %vm211_vm1, %v7610_v34 }
0x3654   :  { %9080 = vmatprep.subr.msk.mxu0 %vm211_vm1, %v7609_v56 }
0x3657   :  { %9081 = vmatpush3.xpose.msk.msra.mxu0 %vm211_vm1, %v7609_v56 }
0x3658   :  { %9082 = vmatprep.subr.msk.mxu0 %vm211_vm1, %v7608_v45 }
0x365b   :  { %9083 = vmatpush3.xpose.msk.msra.mxu0 %vm211_vm1, %v7608_v45 }
0x365c   :  { %9084 = vmatprep.subr.msk.mxu0 %vm211_vm1, %v7607_v58 }
0x365f   :  { %9085 = vmatpush3.xpose.msk.msra.mxu0 %vm211_vm1, %v7607_v58 }
0x3660   :  { %9086 = vmatprep.subr.msk.mxu0 %vm211_vm1, %v7606_v48 }
0x3663   :  { %9087 = vmatpush3.xpose.msk.msra.mxu0 %vm211_vm1, %v7606_v48 }
0x3664   :  { %9088 = vmatprep.subr.msk.mxu0 %vm211_vm1, %v7605_v2 }
0x3667   :  { %9089 = vmatpush3.xpose.msk.msra.mxu0 %vm211_vm1, %v7605_v2 }
0x3668   :  { %9090 = vmatprep.subr.msk.mxu0 %vm211_vm1, %v7604_v39 }
0x366b   :  { %9091 = vmatpush3.xpose.msk.msra.mxu0 %vm211_vm1, %v7604_v39 }
0x366c   :  { %9092 = vmatprep.subr.msk.mxu0 %vm211_vm1, %v7603_v25 }
0x366f   :  { %9093 = vmatpush3.xpose.msk.msra.mxu0 %vm211_vm1, %v7603_v25 }
0x3670   :  { %9094 = vmatprep.subr.msk.mxu0 %vm211_vm1, %v7602_v1 }
0x3673   :  { %9095 = vmatpush3.xpose.msk.msra.mxu0 %vm211_vm1, %v7602_v1 }
0x3674   :  { %9096 = vmatprep.subr.msk.mxu0 %vm211_vm1, %v7601_v0 }
0x3677   :  { %9097 = vmatpush3.xpose.msk.msra.mxu0 %vm211_vm1, %v7601_v0 }
0x3678   :  { %9098 = vmatprep.subr.msk.mxu0 %vm211_vm1, %v7600_v43 }
0x367b   :  { %9099 = vmatpush3.xpose.msk.msra.mxu0 %vm211_vm1, %v7600_v43 }
0x367c   :  { %9100 = vmatprep.subr.msk.mxu0 %vm211_vm1, %v7599_v16 }
0x367f   :  { %9101 = vmatpush3.xpose.msk.msra.mxu0 %vm211_vm1, %v7599_v16 }
0x3680   :  { %9102 = vmatprep.subr.msk.mxu0 %vm211_vm1, %v7598_v37 }
0x3683   :  { %9103 = vmatpush3.xpose.msk.msra.mxu0 %vm211_vm1, %v7598_v37 }
0x3684   :  { %9104 = vmatprep.subr.msk.mxu0 %vm211_vm1, %v7597_v7 }
0x3687   :  { %9105 = vmatpush3.xpose.msk.msra.mxu0 %vm211_vm1, %v7597_v7 }
0x370a   :  { %v9073_v30 = vpop.f32.mrf.mxu0 }
0x370b   :  { %v7554_v14 = vadd.f32 %v9073_v30, %v8083_v28 }
0x370c   :  { %v7548_v29 = vpop.f32.mrf.mxu0 }
0x370d   :  { %v7558_v33 = vadd.f32 %v7554_v14, %v7312_v11  ;;  %v7549_v35 = vadd.f32 %v8083_v28, %v7548_v29 }
0x370f   :  { %v7557_v32 = vadd.f32 %v7549_v35, %v7311_v21  ;;  %v7562_v38 = vsel %vm211_vm1, %v7558_v33, 0.0 }
0x3710   :  { %7563 = vadd.xlane.f32.xlu0 %v7562_v38 }
0x3711   :  { %v7559_v40 = vsel %vm211_vm1, %v7557_v32, 0.0 }
0x3712   :  { %7560 = vadd.xlane.f32.xlu1 %v7559_v40 }
0x3799   :  { %v7564_v46 = vpop.xlane.xlu0 %7563 }
0x379a   :  { %v7566_v49 = vmul.f32 0.03125, %v7564_v46 }
0x379b   :  { %v7561_v55 = vpop.xlane.xlu1 %7560 }
0x379c   :  { %v7568_v3 = vsub.f32 %v7558_v33, %v7566_v49  ;;  %v7565_v18 = vmul.f32 0.03125, %v7561_v55 }
0x379e   :  { %v7567_v26 = vsub.f32 %v7557_v32, %v7565_v18  ;;  %v7570_v59 = vmul.f32 %v7568_v3, %v7568_v3 }
0x37a0   :  { %v7574_v6 = vsel %vm211_vm1, %v7570_v59, 0.0  ;;  %v7569_v15 = vmul.f32 %v7567_v26, %v7567_v26 }
0x37a1   :  { %7575 = vadd.xlane.f32.xlu0 %v7574_v6 }
0x37a2   :  { %v7571_v52 = vsel %vm211_vm1, %v7569_v15, 0.0 }
0x37a3   :  { %7572 = vadd.xlane.f32.xlu1 %v7571_v52 }
0x382a   :  { %v7576_v9 = vpop.xlane.xlu0 %7575 }
0x382b   :  { %v7578_v62 = vmul.f32 0.03125, %v7576_v9 }
0x382c   :  { %v7573_v47 = vpop.xlane.xlu1 %7572 }
0x382d   :  { %v7580_v8 = vadd.f32 1e-05, %v7578_v62  ;;  %v7577_v27 = vmul.f32 0.03125, %v7573_v47 }
0x382f   :  { %9276 = vrsqrt.f32 %v7580_v8  ;;  %v7579_v60 = vadd.f32 1e-05, %v7577_v27 }
0x3831   :  { %9278 = vrsqrt.f32 %v7579_v60 }
0x383c   :  { %v9277_v17 = vpop.eup %9276 }
0x383d   :  { %v7584_v54 = vmul.f32 %v9277_v17, %v7568_v3 }
0x383e   :  { %v9279_v10 = vpop.eup %9278 }
0x383f   :  { %v7583_v42 = vmul.f32 %v9279_v10, %v7567_v26  ;;  %v7590_v19 = vmul.f32 %v7588_v13, %v7584_v54 }
0x3841   :  { %v7589_v21 = vmul.f32 %v7588_v13, %v7583_v42  ;;  %v7596_v11 = vadd.f32 %v7594_v20, %v7590_v19 }
0x3843   :  { %v7595_v51 = vadd.f32 %v7594_v20, %v7589_v21 }
0x3845   :  { %9106 = vmatprep.mubr.msk.f32.mxu0 %vm211_vm1, %v7595_v51 }
0x3846   :  { %9107 = vmatmul.mubr.msk.f32.vlgmr.msra.gmra.mxu0 %vm211_vm1, %v7596_v11 }
0x3906   :  { %v9108_v61 = vpop.f32.mrf.mxu0 }
0x3907   :  { %v7746_v4 = vadd.f32 %v9108_v61, %v8084_v36 }
0x3908   :  { %v7740_v50 = vpop.f32.mrf.mxu0 }
0x3909   :  { %7750 = vst [vmem:[#allocation2 + $0x8] sm:$0xff] %v7746_v4  ;;  %v7741_v53 = vadd.f32 %v8084_v36, %v7740_v50 }
0x390b   :  { %7749 = vst [vmem:[#allocation2] sm:$0xff] %v7741_v53 }
0x390c   :  { %9297 = shalt.err (!%p9294_p4)
}
0x390d   :  { %s9326_s1 = smov 128   ;;  %s11169_s23 = sld [smem:[#allocation13_spill]] }
0x3913   :  { %7762 = dma.vmem_to_hbm [thread:$0]  %s7757_s3, 256, %s11169_s23, [#allocation3], %s9326_s1, %s9326_s1, %s11158_s26  }
0x3914   :  { %9306 = dma.done.wait [#allocation3], 256  }
0x3915   :  { %9307 = vsyncadd [#allocation3], 4294967040 }
0x3916   :  { %7766 = vsyncpa [#allocation3], 1 }

</bundles_post_ra>
